<compile_context>
chip_gen: v7x
topology: tpu7x:2x2x1
jax: 0.10.0
libtpu: 0.0.40
codegen_flags: <defaults>
</compile_context>

<pallas_src>
import jax
import jax.numpy as jnp
from jax.experimental import pallas as pl
from jax.experimental.pallas import tpu as pltpu


def _round_up(v, m):
    return ((v + m - 1) // m) * m


def mlp_kernel(x_ref, w1_ref, b1_ref, w2_ref, b2_ref,
               w3_ref, b3_ref, w4_ref, b4_ref, o_ref):
    """Fused 4-layer MLP on one batch tile. Weights are bf16, accumulation is f32."""
    op_dt = w1_ref.dtype  # matmul operand dtype (bf16)

    # Layer 1: Linear(c_in, 64) + ReLU
    h = jnp.dot(x_ref[...].astype(op_dt), w1_ref[...],
                preferred_element_type=jnp.float32) + b1_ref[...]
    h = jnp.maximum(h, 0.0)
    # Layer 2: Linear(64, 1024) + ReLU
    h = jnp.dot(h.astype(op_dt), w2_ref[...],
                preferred_element_type=jnp.float32) + b2_ref[...]
    h = jnp.maximum(h, 0.0)
    # Layer 3: Linear(1024, 1024) + ReLU   (dominant FLOPs)
    h = jnp.dot(h.astype(op_dt), w3_ref[...],
                preferred_element_type=jnp.float32) + b3_ref[...]
    h = jnp.maximum(h, 0.0)
    # Layer 4: Linear(1024, c_out_padded) + Softplus
    h = jnp.dot(h.astype(op_dt), w4_ref[...],
                preferred_element_type=jnp.float32) + b4_ref[...]
    # numerically-stable softplus: log(1 + exp(h)) = max(h, 0) + log1p(exp(-|h|))
    o_ref[...] = jnp.maximum(h, 0.0) + jnp.log1p(jnp.exp(-jnp.abs(h)))


def msci_model_forward(x, params, *, batch_tile=256, matmul_dtype=jnp.bfloat16):
    """x: (B, C_in) float32.  params: dict of transposed f32 weights/biases."""
    B, c_in = x.shape
    c_out = params["w4"].shape[1]

    # ---- host-side layout plumbing -----------------------------------------
    # Batch tile: fill the MXU rows, but never exceed the (8-aligned) batch, and
    # pad the batch so it divides evenly.  Large batches -> grid >= 2, so the
    # "parallel" axis shards across v7x's two TensorCores.
    tile = min(batch_tile, _round_up(B, 8))
    b_pad = _round_up(B, tile)
    if b_pad != B:
        x = jnp.pad(x, ((0, b_pad - B), (0, 0)))

    # Lane-dense output: pad output channels up to a multiple of 128 so the final
    # store is unmasked; padded columns (softplus(0) = log 2) are sliced off below.
    c_out_p = max(128, _round_up(c_out, 128))

    w1 = params["w1"].astype(matmul_dtype)
    w2 = params["w2"].astype(matmul_dtype)
    w3 = params["w3"].astype(matmul_dtype)
    w4 = jnp.pad(params["w4"], ((0, 0), (0, c_out_p - c_out))).astype(matmul_dtype)
    b1 = params["b1"].astype(jnp.float32)
    b2 = params["b2"].astype(jnp.float32)
    b3 = params["b3"].astype(jnp.float32)
    b4 = jnp.pad(params["b4"], ((0, 0), (0, c_out_p - c_out))).astype(jnp.float32)

    grid = (b_pad // tile,)

    # Weights/biases are fully VMEM-resident every grid step (constant index_map),
    # only the batch dimension of x / out is tiled.
    def full(a):
        return pl.BlockSpec(a.shape, lambda i: (0,) * a.ndim)

    out = pl.pallas_call(
        mlp_kernel,
        out_shape=jax.ShapeDtypeStruct((b_pad, c_out_p), jnp.float32),
        grid_spec=pltpu.PrefetchScalarGridSpec(
            num_scalar_prefetch=0,
            grid=grid,
            in_specs=[
                pl.BlockSpec((tile, c_in), lambda i: (i, 0)),  # x batch tile
                full(w1), full(b1),
                full(w2), full(b2),
                full(w3), full(b3),
                full(w4), full(b4),
            ],
            out_specs=pl.BlockSpec((tile, c_out_p), lambda i: (i, 0)),
        ),
        compiler_params=pltpu.CompilerParams(
            dimension_semantics=("parallel",),
            vmem_limit_bytes=48 * 1024 * 1024,  # fits v7x's 64 MiB physical VMEM
        ),
    )(x, w1, b1, w2, b2, w3, b3, w4, b4)

    return out[:B, :c_out]


def init_params(key, input_channel, output_channel):
    """Deterministic synthetic init (PyTorch Linear shapes, stored transposed, f32)."""
    dims = [(input_channel, 64), (64, 1024), (1024, 1024), (1024, output_channel)]
    params = {}
    for idx, (fan_in, fan_out) in enumerate(dims, start=1):
        key, kw, kb = jax.random.split(key, 3)
        bound = 1.0 / (fan_in ** 0.5)
        # PyTorch weight is (out, in); we store (in, out) so the kernel does x @ W.
        params[f"w{idx}"] = jax.random.uniform(
            kw, (fan_in, fan_out), jnp.float32, -bound, bound)
        params[f"b{idx}"] = jax.random.uniform(
            kb, (1, fan_out), jnp.float32, -bound, bound)
    return params


def reference_forward(x, params, matmul_dtype=jnp.bfloat16):
    """Pure-JAX reference using the same bf16-operand / f32-accumulate matmuls."""
    h = x
    for idx in range(1, 5):
        w = params[f"w{idx}"].astype(matmul_dtype)
        h = jnp.dot(h.astype(matmul_dtype), w,
                    preferred_element_type=jnp.float32) + params[f"b{idx}"]
        if idx < 4:
            h = jnp.maximum(h, 0.0)
    return jnp.maximum(h, 0.0) + jnp.log1p(jnp.exp(-jnp.abs(h)))


if __name__ == "__main__":
    key = jax.random.PRNGKey(0)
    input_channel, output_channel, batch = 32, 16, 64

    key, kx = jax.random.split(key)
    x = jax.random.normal(kx, (batch, input_channel), jnp.float32)
    params = init_params(key, input_channel, output_channel)

    out = jax.block_until_ready(msci_model_forward(x, params))

    ref = reference_forward(x, params)
    assert out.shape == (batch, output_channel)
    assert jnp.allclose(out, ref, atol=2e-3, rtol=2e-3), \
        float(jnp.max(jnp.abs(out - ref)))
    print("KERNEL_OK")
</pallas_src>

<mosaic_0001>
module attributes {stable_mosaic.version = 11 : i64} {
  func.func @mlp_kernel(%arg0: i32, %arg1: memref<64x32xf32, #tpu.memory_space<vmem>>, %arg2: memref<32x64xbf16, #tpu.memory_space<vmem>>, %arg3: memref<1x64xf32, #tpu.memory_space<vmem>>, %arg4: memref<64x1024xbf16, #tpu.memory_space<vmem>>, %arg5: memref<1x1024xf32, #tpu.memory_space<vmem>>, %arg6: memref<1024x1024xbf16, #tpu.memory_space<vmem>>, %arg7: memref<1x1024xf32, #tpu.memory_space<vmem>>, %arg8: memref<1024x128xbf16, #tpu.memory_space<vmem>>, %arg9: memref<1x128xf32, #tpu.memory_space<vmem>>, %arg10: memref<64x128xf32, #tpu.memory_space<vmem>>) attributes {dimension_semantics = [#tpu.dimension_semantics<parallel>], iteration_bounds = array<i64: 1>, scalar_prefetch = 0 : i64, scratch_operands = 0 : i64, tpu.core_type = #tpu.core_type<tc>, window_params = [{transform_indices = @transform_0, window_bounds = array<i64: 64, 32>}, {pipeline_mode = #tpu.pipeline_mode<synchronous>, transform_indices = @transform_1, window_bounds = array<i64: 32, 64>}, {pipeline_mode = #tpu.pipeline_mode<synchronous>, transform_indices = @transform_2, window_bounds = array<i64: 1, 64>}, {pipeline_mode = #tpu.pipeline_mode<synchronous>, transform_indices = @transform_3, window_bounds = array<i64: 64, 1024>}, {pipeline_mode = #tpu.pipeline_mode<synchronous>, transform_indices = @transform_4, window_bounds = array<i64: 1, 1024>}, {pipeline_mode = #tpu.pipeline_mode<synchronous>, transform_indices = @transform_5, window_bounds = array<i64: 1024, 1024>}, {pipeline_mode = #tpu.pipeline_mode<synchronous>, transform_indices = @transform_6, window_bounds = array<i64: 1, 1024>}, {pipeline_mode = #tpu.pipeline_mode<synchronous>, transform_indices = @transform_7, window_bounds = array<i64: 1024, 128>}, {pipeline_mode = #tpu.pipeline_mode<synchronous>, transform_indices = @transform_8, window_bounds = array<i64: 1, 128>}, {transform_indices = @transform_9, window_bounds = array<i64: 64, 128>}]} {
    %c0 = arith.constant 0 : index
    %c0_0 = arith.constant 0 : index
    %0 = vector.load %arg1[%c0, %c0_0] : memref<64x32xf32, #tpu.memory_space<vmem>>, vector<64x32xf32>
    %1 = arith.truncf %0 : vector<64x32xf32> to vector<64x32xbf16>
    %c0_1 = arith.constant 0 : index
    %c0_2 = arith.constant 0 : index
    %2 = vector.load %arg2[%c0_1, %c0_2] : memref<32x64xbf16, #tpu.memory_space<vmem>>, vector<32x64xbf16>
    %cst = arith.constant dense<0.000000e+00> : vector<64x64xf32>
    %3 = tpu.matmul %1, %2, %cst {dimension_numbers = #tpu.dot_dimension_numbers<[1], [0], [0], [1], [0, 0, 1, 1], [], []>} : vector<64x32xbf16>, vector<32x64xbf16>, vector<64x64xf32> -> vector<64x64xf32>
    %c0_3 = arith.constant 0 : index
    %c0_4 = arith.constant 0 : index
    %4 = vector.load %arg3[%c0_3, %c0_4] : memref<1x64xf32, #tpu.memory_space<vmem>>, vector<1x64xf32>
    %5 = vector.broadcast %4 : vector<1x64xf32> to vector<64x64xf32>
    %6 = arith.addf %3, %5 : vector<64x64xf32>
    %cst_5 = arith.constant 0.000000e+00 : f32
    %7 = vector.broadcast %cst_5 : f32 to vector<64x64xf32>
    %8 = arith.maximumf %6, %7 : vector<64x64xf32>
    %9 = arith.truncf %8 : vector<64x64xf32> to vector<64x64xbf16>
    %c0_6 = arith.constant 0 : index
    %c0_7 = arith.constant 0 : index
    %10 = vector.load %arg4[%c0_6, %c0_7] : memref<64x1024xbf16, #tpu.memory_space<vmem>>, vector<64x1024xbf16>
    %cst_8 = arith.constant dense<0.000000e+00> : vector<64x1024xf32>
    %11 = tpu.matmul %9, %10, %cst_8 {dimension_numbers = #tpu.dot_dimension_numbers<[1], [0], [0], [1], [0, 0, 1, 1], [], []>} : vector<64x64xbf16>, vector<64x1024xbf16>, vector<64x1024xf32> -> vector<64x1024xf32>
    %c0_9 = arith.constant 0 : index
    %c0_10 = arith.constant 0 : index
    %12 = vector.load %arg5[%c0_9, %c0_10] : memref<1x1024xf32, #tpu.memory_space<vmem>>, vector<1x1024xf32>
    %13 = vector.broadcast %12 : vector<1x1024xf32> to vector<64x1024xf32>
    %14 = arith.addf %11, %13 : vector<64x1024xf32>
    %cst_11 = arith.constant 0.000000e+00 : f32
    %15 = vector.broadcast %cst_11 : f32 to vector<64x1024xf32>
    %16 = arith.maximumf %14, %15 : vector<64x1024xf32>
    %17 = arith.truncf %16 : vector<64x1024xf32> to vector<64x1024xbf16>
    %c0_12 = arith.constant 0 : index
    %c0_13 = arith.constant 0 : index
    %18 = vector.load %arg6[%c0_12, %c0_13] : memref<1024x1024xbf16, #tpu.memory_space<vmem>>, vector<1024x1024xbf16>
    %cst_14 = arith.constant dense<0.000000e+00> : vector<64x1024xf32>
    %19 = tpu.matmul %17, %18, %cst_14 {dimension_numbers = #tpu.dot_dimension_numbers<[1], [0], [0], [1], [0, 0, 1, 1], [], []>} : vector<64x1024xbf16>, vector<1024x1024xbf16>, vector<64x1024xf32> -> vector<64x1024xf32>
    %c0_15 = arith.constant 0 : index
    %c0_16 = arith.constant 0 : index
    %20 = vector.load %arg7[%c0_15, %c0_16] : memref<1x1024xf32, #tpu.memory_space<vmem>>, vector<1x1024xf32>
    %21 = vector.broadcast %20 : vector<1x1024xf32> to vector<64x1024xf32>
    %22 = arith.addf %19, %21 : vector<64x1024xf32>
    %cst_17 = arith.constant 0.000000e+00 : f32
    %23 = vector.broadcast %cst_17 : f32 to vector<64x1024xf32>
    %24 = arith.maximumf %22, %23 : vector<64x1024xf32>
    %25 = arith.truncf %24 : vector<64x1024xf32> to vector<64x1024xbf16>
    %c0_18 = arith.constant 0 : index
    %c0_19 = arith.constant 0 : index
    %26 = vector.load %arg8[%c0_18, %c0_19] : memref<1024x128xbf16, #tpu.memory_space<vmem>>, vector<1024x128xbf16>
    %cst_20 = arith.constant dense<0.000000e+00> : vector<64x128xf32>
    %27 = tpu.matmul %25, %26, %cst_20 {dimension_numbers = #tpu.dot_dimension_numbers<[1], [0], [0], [1], [0, 0, 1, 1], [], []>} : vector<64x1024xbf16>, vector<1024x128xbf16>, vector<64x128xf32> -> vector<64x128xf32>
    %c0_21 = arith.constant 0 : index
    %c0_22 = arith.constant 0 : index
    %28 = vector.load %arg9[%c0_21, %c0_22] : memref<1x128xf32, #tpu.memory_space<vmem>>, vector<1x128xf32>
    %29 = vector.broadcast %28 : vector<1x128xf32> to vector<64x128xf32>
    %30 = arith.addf %27, %29 : vector<64x128xf32>
    %cst_23 = arith.constant 0.000000e+00 : f32
    %31 = vector.broadcast %cst_23 : f32 to vector<64x128xf32>
    %32 = arith.maximumf %30, %31 : vector<64x128xf32>
    %33 = math.absf %30 : vector<64x128xf32>
    %cst_24 = arith.constant 0.000000e+00 : f32
    %34 = vector.broadcast %cst_24 : f32 to vector<64x128xf32>
    %35 = arith.subf %34, %33 : vector<64x128xf32>
    %36 = math.exp %35 : vector<64x128xf32>
    %37 = math.log1p %36 : vector<64x128xf32>
    %38 = arith.addf %32, %37 : vector<64x128xf32>
    %c0_25 = arith.constant 0 : index
    %c0_26 = arith.constant 0 : index
    %39 = vector.load %arg10[%c0_25, %c0_26] : memref<64x128xf32, #tpu.memory_space<vmem>>, vector<64x128xf32>
    tpu.vector_store %arg10[%c0_25, %c0_26], %38 {strides = array<i32>} : memref<64x128xf32, #tpu.memory_space<vmem>>, vector<64x128xf32>,
    return
  }
  func.func @transform_0(%arg0: i32) -> (i32, i32) {
    %c0_i32 = arith.constant 0 : i32
    %c0_i32_0 = arith.constant 0 : i32
    return %arg0, %c0_i32 : i32, i32
  }
  func.func @transform_1(%arg0: i32) -> (i32, i32) {
    %c0_i32 = arith.constant 0 : i32
    %c0_i32_0 = arith.constant 0 : i32
    %c0_i32_1 = arith.constant 0 : i32
    return %c0_i32, %c0_i32_0 : i32, i32
  }
  func.func @transform_2(%arg0: i32) -> (i32, i32) {
    %c0_i32 = arith.constant 0 : i32
    %c0_i32_0 = arith.constant 0 : i32
    %c0_i32_1 = arith.constant 0 : i32
    return %c0_i32, %c0_i32_0 : i32, i32
  }
  func.func @transform_3(%arg0: i32) -> (i32, i32) {
    %c0_i32 = arith.constant 0 : i32
    %c0_i32_0 = arith.constant 0 : i32
    %c0_i32_1 = arith.constant 0 : i32
    return %c0_i32, %c0_i32_0 : i32, i32
  }
  func.func @transform_4(%arg0: i32) -> (i32, i32) {
    %c0_i32 = arith.constant 0 : i32
    %c0_i32_0 = arith.constant 0 : i32
    %c0_i32_1 = arith.constant 0 : i32
    return %c0_i32, %c0_i32_0 : i32, i32
  }
  func.func @transform_5(%arg0: i32) -> (i32, i32) {
    %c0_i32 = arith.constant 0 : i32
    %c0_i32_0 = arith.constant 0 : i32
    %c0_i32_1 = arith.constant 0 : i32
    return %c0_i32, %c0_i32_0 : i32, i32
  }
  func.func @transform_6(%arg0: i32) -> (i32, i32) {
    %c0_i32 = arith.constant 0 : i32
    %c0_i32_0 = arith.constant 0 : i32
    %c0_i32_1 = arith.constant 0 : i32
    return %c0_i32, %c0_i32_0 : i32, i32
  }
  func.func @transform_7(%arg0: i32) -> (i32, i32) {
    %c0_i32 = arith.constant 0 : i32
    %c0_i32_0 = arith.constant 0 : i32
    %c0_i32_1 = arith.constant 0 : i32
    return %c0_i32, %c0_i32_0 : i32, i32
  }
  func.func @transform_8(%arg0: i32) -> (i32, i32) {
    %c0_i32 = arith.constant 0 : i32
    %c0_i32_0 = arith.constant 0 : i32
    %c0_i32_1 = arith.constant 0 : i32
    return %c0_i32, %c0_i32_0 : i32, i32
  }
  func.func @transform_9(%arg0: i32) -> (i32, i32) {
    %c0_i32 = arith.constant 0 : i32
    %c0_i32_0 = arith.constant 0 : i32
    return %arg0, %c0_i32 : i32, i32
  }
}

</mosaic_0001>

<bundles_post_ra>
// kernel: tpu_custom_call.1
= control target key start
LH: loop header
LB: loop body
LE: loop exit
PB: predicated region body
PF: predicated region fallthrough
CT: control target
= control target key end

     0   :  { %14 = vsyncpa [#allocation3], 0  ;;  %s8667_s0 = inlined_call_operand.vmem [shape: f32[64,32], index: 0, kind: input, shape index: {}]   ;;  %s8668_s1 = inlined_call_operand.hbm [shape: bf16[32,64], index: 1, kind: input, shape index: {}]   ;;  %s8669_s2 = inlined_call_operand.hbm [shape: f32[1,64], index: 2, kind: input, shape index: {}]   ;;  %s8670_s3 = inlined_call_operand.hbm [shape: bf16[64,1024], index: 3, kind: input, shape index: {}]   ;;  %s8671_s4 = inlined_call_operand.hbm [shape: f32[1,1024], index: 4, kind: input, shape index: {}]   ;;  %s8672_s5 = inlined_call_operand.hbm [shape: bf16[1024,1024], index: 5, kind: input, shape index: {}]   ;;  %s8673_s6 = inlined_call_operand.hbm [shape: f32[1,1024], index: 6, kind: input, shape index: {}]   ;;  %s8674_s7 = inlined_call_operand.hbm [shape: bf16[1024,128], index: 7, kind: input, shape index: {}]   ;;  %s8675_s8 = inlined_call_operand.hbm [shape: f32[1,128], index: 8, kind: input, shape index: {}]   ;;  %s8676_s9 = inlined_call_operand.hbm [shape: f32[64,128], index: 9, kind: output, shape index: {}]  }
   0x1   :  { %15 = vsyncpa [#allocation6], 0 }
   0x2   :  { %16 = vsyncpa [#allocation9], 0 }
   0x3   :  { %17 = vsyncpa [#allocation12], 0 }
   0x4   :  { %18 = vsyncpa [#allocation15], 0 }
   0x5   :  { %19 = vsyncpa [#allocation4], 0  ;;  %s7591_s30 = smov [#allocation5]   ;;  %s7592_s11 = smov [#allocation8]  }
   0x6   :  { %s40_s10 = sshll.u32 %s7591_s30, 4  ;;  %s62_s12 = sshll.u32 %s7592_s11, 4  ;;  %s41_s10 = int_to_ptr.vmem [resolvable:$true] %s40_s10  ;;  %s63_s12 = int_to_ptr.vmem [resolvable:$true] %s62_s12 }
   0x7   :  { %s7381_s15 = scalar_lea.hbm %s8669_s2, 16 }
   0x8   :  { %p7382_p0 = scmp.ne.s32.totalorder %s8669_s2, %s7381_s15  ;;  %p7385_p1 = scmp.lt.u32.totalorder %s7381_s15, %s8669_s2 }
   0xa   :  { %p7387_p2 = pnand %p7385_p1, %p7382_p0 }
   0xc   :  { %7390 = shalt.err (!%p7387_p2)
}
   0xd   :  { %s7391_s20 = scalar_lea.vmem %s41_s10, 16  ;;  %s7395_s21 = scalar_lea.vmem %s41_s10, 32 }
   0xe   :  { %p7392_p3 = scmp.ne.s32.totalorder %s41_s10, %s7391_s20  ;;  %p7396_p4 = scmp.lt.s32.totalorder %s41_s10, %s41_s10 }
   0xf   :  { %p7397_p5 = scmp.lt.s32.totalorder %s7395_s21, %s7391_s20 }
  0x11   :  { %p7398_p6 = por %p7397_p5, %p7396_p4 }
  0x13   :  { %p7399_p7 = pnand %p7398_p6, %p7392_p3 }
  0x15   :  { %7402 = shalt.err (!%p7399_p7)
}
  0x16   :  { %43 = dma.hbm_to_vmem [thread:$0]  %s8669_s2, 16, %s41_s10, [#allocation6]  }
  0x17   :  { %s7403_s26 = scalar_lea.hbm %s8671_s4, 128 }
  0x18   :  { %p7404_p8 = scmp.ne.s32.totalorder %s8671_s4, %s7403_s26  ;;  %p7407_p9 = scmp.lt.u32.totalorder %s7403_s26, %s8671_s4 }
  0x1a   :  { %p7409_p10 = pnand %p7407_p9, %p7404_p8 }
  0x1c   :  { %7412 = shalt.err (!%p7409_p10)
}
  0x1d   :  { %s7413_s11 = scalar_lea.vmem %s63_s12, 128  ;;  %p7418_p12 = scmp.lt.s32.totalorder %s63_s12, %s63_s12 }
  0x1e   :  { %p7414_p11 = scmp.ne.s32.totalorder %s63_s12, %s7413_s11  ;;  %p7419_p13 = scmp.lt.s32.totalorder %s7413_s11, %s7413_s11 }
  0x20   :  { %p7420_p0 = por %p7419_p13, %p7418_p12 }
  0x22   :  { %p7421_p1 = pnand %p7420_p0, %p7414_p11 }
  0x24   :  { %7424 = shalt.err (!%p7421_p1)
}
  0x25   :  { %65 = dma.hbm_to_vmem [thread:$0]  %s8671_s4, 128, %s63_s12, [#allocation9]  }
  0x26   :  { %s7593_s13 = smov [#allocation11]   ;;  %s7594_s15 = smov [#allocation2]  }
  0x27   :  { %s84_s14 = sshll.u32 %s7593_s13, 4  ;;  %s27_s16 = sshll.u32 %s7594_s15, 4  ;;  %s85_s14 = int_to_ptr.vmem [resolvable:$true] %s84_s14  ;;  %s7681_s16 = int_to_ptr.vmem [resolvable:$true] %s27_s16 }
  0x28   :  { %s7425_s19 = scalar_lea.hbm %s8673_s6, 128 }
  0x29   :  { %p7426_p2 = scmp.ne.s32.totalorder %s8673_s6, %s7425_s19  ;;  %p7429_p3 = scmp.lt.u32.totalorder %s7425_s19, %s8673_s6 }
  0x2b   :  { %p7431_p4 = pnand %p7429_p3, %p7426_p2 }
  0x2d   :  { %7434 = shalt.err (!%p7431_p4)
}
  0x2e   :  { %s7435_s4 = scalar_lea.vmem %s85_s14, 128  ;;  %p7440_p6 = scmp.lt.s32.totalorder %s85_s14, %s85_s14 }
  0x2f   :  { %p7436_p5 = scmp.ne.s32.totalorder %s85_s14, %s7435_s4  ;;  %p7441_p7 = scmp.lt.s32.totalorder %s7435_s4, %s7435_s4 }
  0x31   :  { %p7442_p8 = por %p7441_p7, %p7440_p6 }
  0x33   :  { %p7443_p9 = pnand %p7442_p8, %p7436_p5 }
  0x35   :  { %7446 = shalt.err (!%p7443_p9)
}
  0x36   :  { %87 = dma.hbm_to_vmem [thread:$0]  %s8673_s6, 128, %s85_s14, [#allocation12]  }
  0x37   :  { %s7447_s27 = scalar_lea.hbm %s8668_s1, 256 }
  0x38   :  { %p7448_p10 = scmp.ne.s32.totalorder %s8668_s1, %s7447_s27  ;;  %p7451_p11 = scmp.lt.u32.totalorder %s7447_s27, %s8668_s1 }
  0x3a   :  { %p7453_p12 = pnand %p7451_p11, %p7448_p10 }
  0x3c   :  { %7456 = shalt.err (!%p7453_p12)
}
  0x3d   :  { %s7457_s2 = scalar_lea.vmem %s7681_s16, 256  ;;  %p7462_p0 = scmp.lt.s32.totalorder %s7681_s16, %s7681_s16 }
  0x3e   :  { %p7458_p13 = scmp.ne.s32.totalorder %s7681_s16, %s7457_s2  ;;  %p7463_p1 = scmp.lt.s32.totalorder %s7457_s2, %s7457_s2 }
  0x40   :  { %p7464_p2 = por %p7463_p1, %p7462_p0 }
  0x42   :  { %p7465_p3 = pnand %p7464_p2, %p7458_p13 }
  0x44   :  { %7468 = shalt.err (!%p7465_p3)
}
  0x45   :  { %s7595_s6 = smov 64   ;;  %s7596_s10 = smov 4  }
  0x46   :  { %33 = dma.hbm_to_vmem [thread:$0]  %s8668_s1, 256, %s7681_s16, [#allocation3], %s7595_s6, %s7595_s6, %s7596_s10  }
  0x47   :  { %s7597_s15 = smov [#allocation7]   ;;  %s7469_s20 = scalar_lea.hbm %s8670_s3, 4096 }
  0x48   :  { %s49_s17 = sshll.u32 %s7597_s15, 4  ;;  %p7470_p4 = scmp.ne.s32.totalorder %s8670_s3, %s7469_s20  ;;  %s50_s17 = int_to_ptr.vmem [resolvable:$true] %s49_s17 }
  0x49   :  { %p7473_p5 = scmp.lt.u32.totalorder %s7469_s20, %s8670_s3 }
  0x4b   :  { %p7475_p6 = pnand %p7473_p5, %p7470_p4 }
  0x4d   :  { %7478 = shalt.err (!%p7475_p6)
}
  0x4e   :  { %s7479_s12 = scalar_lea.vmem %s50_s17, 4096  ;;  %p7484_p8 = scmp.lt.s32.totalorder %s50_s17, %s50_s17 }
  0x4f   :  { %p7480_p7 = scmp.ne.s32.totalorder %s50_s17, %s7479_s12  ;;  %p7485_p9 = scmp.lt.s32.totalorder %s7479_s12, %s7479_s12 }
  0x51   :  { %p7486_p10 = por %p7485_p9, %p7484_p8 }
  0x53   :  { %p7487_p11 = pnand %p7486_p10, %p7480_p7 }
  0x55   :  { %7490 = shalt.err (!%p7487_p11)
}
  0x56   :  { %s7598_s1 = smov 512   ;;  %s7599_s16 = smov 32  }
  0x57   :  { %55 = dma.hbm_to_vmem [thread:$0]  %s8670_s3, 4096, %s50_s17, [#allocation6], %s7598_s1, %s7598_s1, %s7599_s16  }
  0x58   :  { %s7600_s26 = smov [#allocation10]   ;;  %s7601_s28 = smov [#allocation13]  }
  0x59   :  { %s71_s27 = sshll.u32 %s7600_s26, 4  ;;  %s93_s29 = sshll.u32 %s7601_s28, 4  ;;  %s72_s27 = int_to_ptr.vmem [resolvable:$true] %s71_s27  ;;  %s94_s29 = int_to_ptr.vmem [resolvable:$true] %s93_s29 }
  0x5a   :  { %s7491_s2 = scalar_lea.hbm %s8672_s5, 65536 }
  0x5b   :  { %p7492_p12 = scmp.ne.s32.totalorder %s8672_s5, %s7491_s2  ;;  %p7495_p13 = scmp.lt.u32.totalorder %s7491_s2, %s8672_s5 }
  0x5d   :  { %p7497_p0 = pnand %p7495_p13, %p7492_p12 }
  0x5f   :  { %7500 = shalt.err (!%p7497_p0)
}
  0x60   :  { %s7501_s3 = scalar_lea.vmem %s72_s27, 65536  ;;  %p7506_p2 = scmp.lt.s32.totalorder %s72_s27, %s72_s27 }
  0x61   :  { %p7502_p1 = scmp.ne.s32.totalorder %s72_s27, %s7501_s3  ;;  %p7507_p3 = scmp.lt.s32.totalorder %s7501_s3, %s7501_s3 }
  0x63   :  { %p7508_p4 = por %p7507_p3, %p7506_p2 }
  0x65   :  { %p7509_p5 = pnand %p7508_p4, %p7502_p1 }
  0x67   :  { %7512 = shalt.err (!%p7509_p5)
}
  0x68   :  { %77 = dma.hbm_to_vmem [thread:$0]  %s8672_s5, 65536, %s72_s27, [#allocation9], %s7598_s1, %s7598_s1, %s7599_s16  }
  0x69   :  { %s7513_s22 = scalar_lea.hbm %s8674_s7, 8192 }
  0x6a   :  { %p7514_p6 = scmp.ne.s32.totalorder %s8674_s7, %s7513_s22  ;;  %p7517_p7 = scmp.lt.u32.totalorder %s7513_s22, %s8674_s7 }
  0x6c   :  { %p7519_p8 = pnand %p7517_p7, %p7514_p6 }
  0x6e   :  { %7522 = shalt.err (!%p7519_p8)
}
  0x6f   :  { %s7523_s25 = scalar_lea.vmem %s94_s29, 8192  ;;  %p7528_p10 = scmp.lt.s32.totalorder %s94_s29, %s94_s29 }
  0x70   :  { %p7524_p9 = scmp.ne.s32.totalorder %s94_s29, %s7523_s25  ;;  %p7529_p11 = scmp.lt.s32.totalorder %s7523_s25, %s7523_s25 }
  0x72   :  { %p7530_p12 = por %p7529_p11, %p7528_p10 }
  0x74   :  { %p7531_p13 = pnand %p7530_p12, %p7524_p9 }
  0x76   :  { %7534 = shalt.err (!%p7531_p13)
}
  0x77   :  { %99 = dma.hbm_to_vmem [thread:$0]  %s8674_s7, 8192, %s94_s29, [#allocation12], %s7595_s6, %s7595_s6, %s7596_s10  }
  0x78   :  { %s7602_s16 = smov [#allocation14]   ;;  %s7535_s30 = scalar_lea.hbm %s8675_s8, 16 }
  0x79   :  { %s106_s26 = sshll.u32 %s7602_s16, 4  ;;  %p7536_p0 = scmp.ne.s32.totalorder %s8675_s8, %s7535_s30  ;;  %s107_s26 = int_to_ptr.vmem [resolvable:$true] %s106_s26 }
  0x7a   :  { %p7539_p1 = scmp.lt.u32.totalorder %s7535_s30, %s8675_s8 }
  0x7c   :  { %p7541_p2 = pnand %p7539_p1, %p7536_p0 }
  0x7e   :  { %7544 = shalt.err (!%p7541_p2)
}
  0x7f   :  { %s7545_s15 = scalar_lea.vmem %s107_s26, 16  ;;  %s7549_s7 = scalar_lea.vmem %s107_s26, 32 }
  0x80   :  { %p7546_p3 = scmp.ne.s32.totalorder %s107_s26, %s7545_s15  ;;  %p7550_p4 = scmp.lt.s32.totalorder %s107_s26, %s107_s26 }
  0x81   :  { %p7551_p5 = scmp.lt.s32.totalorder %s7549_s7, %s7545_s15 }
  0x83   :  { %p7552_p6 = por %p7551_p5, %p7550_p4 }
  0x85   :  { %p7553_p7 = pnand %p7552_p6, %p7546_p3 }
  0x87   :  { %7556 = shalt.err (!%p7553_p7)
}
  0x88   :  { %109 = dma.hbm_to_vmem [thread:$0]  %s8675_s8, 16, %s107_s26, [#allocation15]  }
  0x89   :  { %7579 = dma.done.wait [#allocation3], 256  }
  0x8a   :  { %7580 = vsyncadd [#allocation3], 4294967040 }
  0x8b   :  { %7581 = dma.done.wait [#allocation6], 4112  }
  0x8c   :  { %7582 = vsyncadd [#allocation6], 4294963184 }
  0x8d   :  { %7583 = dma.done.wait [#allocation9], 65664  }
  0x8e   :  { %7584 = vsyncadd [#allocation9], 4294901632 }
  0x8f   :  { %7585 = dma.done.wait [#allocation12], 8320  }
  0x90   :  { %7586 = vsyncadd [#allocation12], 4294958976 }
  0x91   :  { %7587 = dma.done.wait [#allocation15], 16  }
  0x92   :  { %7588 = vsyncadd [#allocation15], 4294967280  ;;  %v7283_v0 = vld [vmem:[#allocation2] sm:$0xff]   ;;  %v7284_v1 = vld [vmem:[#allocation2 + $0x8] sm:$0xff]   ;;  %vm170_vm0 = vcmask 261120   ;;  %v7603_v46 = vmov 0  }
  0x93   :  { %6999 = vmatprep.subr.bf16.mxu0 %v7283_v0  ;;  %v135_v2 = vld [vmem:[%s8667_s0] sm:$0xff]  ;;  %v136_v3 = vld [vmem:[%s8667_s0 + $0x8] sm:$0xff]  ;;  %v137_v5 = vld [vmem:[%s8667_s0 + $0x10] sm:$0xff]  ;;  %539 = vmatprep.mubr.bf16.mxu1 %v7603_v46  ;;  %vm494_vm1 = vcmask 523264  }
  0x94   :  { %7000 = vmatpush3.bf16.msra.mxu0 %v7283_v0  ;;  %v143_v4 = vpack.c.bf16 %v136_v3, %v135_v2  ;;  %v138_v6 = vld [vmem:[%s8667_s0 + $0x18] sm:$0xff]  ;;  %v139_v7 = vld [vmem:[%s8667_s0 + $0x20] sm:$0xff]  ;;  %v140_v8 = vld [vmem:[%s8667_s0 + $0x28] sm:$0xff] }
  0x95   :  { %7001 = vmatprep.subr.bf16.mxu0 %v7284_v1  ;;  %v260_v9 = vld [vmem:[#allocation7] sm:$0xff]  ;;  %v261_v11 = vld [vmem:[#allocation7 + $0x8] sm:$0xff]  ;;  %v144_v13 = vpack.c.bf16 %v138_v6, %v137_v5  ;;  %v145_v20 = vpack.c.bf16 %v140_v8, %v139_v7  ;;  %v262_v47 = vld [vmem:[#allocation7 + $0x10] sm:$0xff] }
  0x96   :  { %7003 = vmatprep.mubr.msk.bf16.mxu0 %vm170_vm0, %v143_v4  ;;  %v264_v10 = vld [vmem:[#allocation7 + $0x20] sm:$0xff]  ;;  %v265_v12 = vld [vmem:[#allocation7 + $0x28] sm:$0xff]  ;;  %v266_v48 = vld [vmem:[#allocation7 + $0x30] sm:$0xff] }
  0x97   :  { %v6209_v14 = vcombine.high %v260_v9, %v264_v10  ;;  %v6211_v15 = vcombine.high %v261_v11, %v265_v12  ;;  %v6208_v16 = vcombine.low %v260_v9, %v264_v10  ;;  %v268_v17 = vld [vmem:[#allocation7 + $0x40] sm:$0xff]  ;;  %v269_v19 = vld [vmem:[#allocation7 + $0x48] sm:$0xff]  ;;  %v6210_v21 = vcombine.low %v261_v11, %v265_v12  ;;  %v263_v49 = vld [vmem:[#allocation7 + $0x18] sm:$0xff] }
  0x98   :  { %v272_v18 = vld [vmem:[#allocation7 + $0x60] sm:$0xff]  ;;  %7002 = vmatpush3.bf16.msra.mxu0 %v7284_v1  ;;  %v273_v23 = vld [vmem:[#allocation7 + $0x68] sm:$0xff]  ;;  %v6213_v50 = vcombine.high %v262_v47, %v266_v48  ;;  %v267_v51 = vld [vmem:[#allocation7 + $0x38] sm:$0xff]  ;;  %v6212_v52 = vcombine.low %v262_v47, %v266_v48 }
  0x99   :  { %v6217_v22 = vcombine.high %v268_v17, %v272_v18  ;;  %507 = vmatprep.subr.bf16.mxu1 %v6209_v14  ;;  %580 = vmatprep.subr.bf16.mxu0 %v6211_v15  ;;  %v6219_v24 = vcombine.high %v269_v19, %v273_v23  ;;  %v141_v25 = vld [vmem:[%s8667_s0 + $0x30] sm:$0xff]  ;;  %v142_v26 = vld [vmem:[%s8667_s0 + $0x38] sm:$0xff]  ;;  %v6216_v27 = vcombine.low %v268_v17, %v272_v18  ;;  %v270_v2 = vld [vmem:[#allocation7 + $0x50] sm:$0xff]  ;;  %s7604_s0 = smov [#allocation16]  }
  0x9a   :  { %508 = vmatpush1.bf16.msra.mxu1 %v6208_v16  ;;  %v6218_v28 = vcombine.low %v269_v19, %v273_v23  ;;  %v146_v29 = vpack.c.bf16 %v142_v26, %v141_v25  ;;  %v276_v30 = vld [vmem:[#allocation7 + $0x80] sm:$0xff]  ;;  %v277_v32 = vld [vmem:[#allocation7 + $0x88] sm:$0xff]  ;;  %v6214_v53 = vcombine.low %v263_v49, %v267_v51  ;;  %v6215_v54 = vcombine.high %v263_v49, %v267_v51  ;;  %v6201_v55 = vld [vmem:[#allocation5] ss:$0 sm:$0xff]  ;;  %s6185_s16 = sshll.u32 %s7604_s0, 4  ;;  %s6186_s16 = int_to_ptr.vmem [resolvable:$true] %s6185_s16 }
  0x9b   :  { %7004 = vmatmul.mubr.msk.bf16.vlgmr.msra.gmra.mrb[0].mxu0 %vm170_vm0, %v144_v13  ;;  %509 = vmatprep.subr.bf16.mxu1 %v6217_v22  ;;  %v280_v31 = vld [vmem:[#allocation7 + $0xa0] sm:$0xff]  ;;  %v281_v34 = vld [vmem:[#allocation7 + $0xa8] sm:$0xff]  ;;  %v274_v5 = vld [vmem:[#allocation7 + $0x70] sm:$0xff]  ;;  %s7557_s26 = scalar_lea.vmem %s6186_s16, 1024  ;;  %p7562_p9 = scmp.lt.s32.totalorder %s6186_s16, %s6186_s16 }
  0x9c   :  { %7007 = vmatprep.mubr.msk.bf16.mxu0 %vm170_vm0, %v145_v20  ;;  %581 = vmatpush1.bf16.msra.mxu0 %v6210_v21  ;;  %v6225_v33 = vcombine.high %v276_v30, %v280_v31  ;;  %v6226_v35 = vcombine.low %v277_v32, %v281_v34  ;;  %v6227_v36 = vcombine.high %v277_v32, %v281_v34  ;;  %v284_v38 = vld [vmem:[#allocation7 + $0xc0] sm:$0xff]  ;;  %v285_v40 = vld [vmem:[#allocation7 + $0xc8] sm:$0xff]  ;;  %v271_v6 = vld [vmem:[#allocation7 + $0x58] sm:$0xff]  ;;  %p7558_p8 = scmp.ne.s32.totalorder %s6186_s16, %s7557_s26  ;;  %p7563_p10 = scmp.lt.s32.totalorder %s7557_s26, %s7557_s26 }
  0x9d   :  { %582 = vmatprep.subr.bf16.mxu0 %v6219_v24  ;;  %v6224_v37 = vcombine.low %v276_v30, %v280_v31  ;;  %v288_v39 = vld [vmem:[#allocation7 + $0xe0] sm:$0xff]  ;;  %v289_v42 = vld [vmem:[#allocation7 + $0xe8] sm:$0xff]  ;;  %v275_v7 = vld [vmem:[#allocation7 + $0x78] sm:$0xff]  ;;  %v6221_v13 = vcombine.high %v270_v2, %v274_v5  ;;  %v6220_v26 = vcombine.low %v270_v2, %v274_v5 }
  0x9e   :  { %510 = vmatpush1.bf16.msra.mxu1 %v6216_v27  ;;  %v6233_v41 = vcombine.high %v284_v38, %v288_v39  ;;  %v6234_v43 = vcombine.low %v285_v40, %v289_v42  ;;  %v6235_v44 = vcombine.high %v285_v40, %v289_v42  ;;  %v6232_v45 = vcombine.low %v284_v38, %v288_v39  ;;  %v278_v15 = vld [vmem:[#allocation7 + $0x90] sm:$0xff]  ;;  %v279_v19 = vld [vmem:[#allocation7 + $0x98] sm:$0xff]  ;;  %v895_v42 = vld [vmem:[#allocation10] sm:$0xff]  ;;  %p7564_p11 = por %p7563_p10, %p7562_p9 }
  0x9f   :  { %511 = vmatprep.subr.bf16.mxu1 %v6225_v33  ;;  %v6223_v14 = vcombine.high %v271_v6, %v275_v7  ;;  %v282_v18 = vld [vmem:[#allocation7 + $0xb0] sm:$0xff]  ;;  %v283_v20 = vld [vmem:[#allocation7 + $0xb8] sm:$0xff]  ;;  %v6222_v27 = vcombine.low %v271_v6, %v275_v7  ;;  %v903_v51 = vld [vmem:[#allocation10 + $0x40] sm:$0xff] }
  0xa0   :  { %583 = vmatpush1.bf16.msra.mxu0 %v6218_v28  ;;  %v6231_v30 = vcombine.high %v279_v19, %v283_v20  ;;  %v286_v31 = vld [vmem:[#allocation7 + $0xd0] sm:$0xff]  ;;  %v287_v34 = vld [vmem:[#allocation7 + $0xd8] sm:$0xff]  ;;  %v6228_v38 = vcombine.low %v278_v15, %v282_v18  ;;  %v6230_v39 = vcombine.low %v279_v19, %v283_v20  ;;  %v935_v20 = vld [vmem:[#allocation10 + $0x140] sm:$0xff]  ;;  %p7565_p12 = pnand %p7564_p11, %p7558_p8 }
  0xa1   :  { %584 = vmatprep.subr.bf16.mxu0 %v6227_v36  ;;  %v290_v33 = vld [vmem:[#allocation7 + $0xf0] sm:$0xff] }
  0xa2   :  { %512 = vmatpush1.bf16.msra.mxu1 %v6224_v37  ;;  %v6237_v40 = vcombine.high %v286_v31, %v290_v33  ;;  %v6236_v47 = vcombine.low %v286_v31, %v290_v33  ;;  %v920_v5 = vld [vmem:[#allocation10 + $0xc8] sm:$0xff] }
  0xa3   :  { %7008 = vmatmul.mubr.msk.bf16.gmra.mrb[4].mxu0 %vm170_vm0, %v146_v29  ;;  %513 = vmatprep.subr.bf16.mxu1 %v6233_v41  ;;  %v6229_v29 = vcombine.high %v278_v15, %v282_v18  ;;  %v924_v6 = vld [vmem:[#allocation10 + $0xe8] sm:$0xff] }
  0xa4   :  { %585 = vmatpush1.bf16.msra.mxu0 %v6226_v35  ;;  %612 = vmatprep.mubr.bf16.mxu0 %v7603_v46  ;;  %v291_v35 = vld [vmem:[#allocation7 + $0xf8] sm:$0xff]  ;;  %v932_v15 = vld [vmem:[#allocation10 + $0x128] sm:$0xff] }
  0xa5   :  { %586 = vmatprep.subr.bf16.mxu0 %v6235_v44  ;;  %v6239_v41 = vcombine.high %v287_v34, %v291_v35  ;;  %v896_v44 = vld [vmem:[#allocation10 + $0x8] sm:$0xff]  ;;  %v6238_v48 = vcombine.low %v287_v34, %v291_v35  ;;  %v951_v35 = vld [vmem:[#allocation10 + $0x1c0] sm:$0xff] }
  0xa6   :  { %514 = vmatpush1.bf16.msra.mxu1 %v6232_v45  ;;  %v900_v45 = vld [vmem:[#allocation10 + $0x28] sm:$0xff] }
  0xa7   :  { %653 = vmatprep.subr.bf16.mxu1 %v6213_v50  ;;  %v6259_v50 = vcombine.high %v896_v44, %v900_v45 }
  0xa8   :  { %587 = vmatpush1.bf16.msra.mxu0 %v6234_v43  ;;  %v899_v43 = vld [vmem:[#allocation10 + $0x20] sm:$0xff] }
  0xa9   :  { %726 = vmatprep.subr.bf16.mxu0 %v6215_v54  ;;  %v6257_v49 = vcombine.high %v895_v42, %v899_v43  ;;  %v908_v54 = vld [vmem:[#allocation10 + $0x68] sm:$0xff] }
 0x16e   :  { %v7005_v56 = vpop.f32.mrb[0].mxu0 }
 0x16f   :  { %v226_v57 = vadd.f32 %v7005_v56, %v6201_v55  ;;  %v217_v58 = vpop.f32.mrb[1].mxu0  ;;  %v6258_v56 = vcombine.low %v896_v44, %v900_v45  ;;  %v963_v44 = vld [vmem:[#allocation10 + $0x220] sm:$0xff]  ;;  %v960_v45 = vld [vmem:[#allocation10 + $0x208] sm:$0xff] }
 0x170   :  { %v218_v59 = vadd.f32 %v6201_v55, %v217_v58  ;;  %v7006_v60 = vpop.f32.mrb[2].mxu0 }
 0x171   :  { %v229_v61 = vadd.f32 %v7006_v60, %v6201_v55  ;;  %v220_v62 = vpop.f32.mrb[3].mxu0  ;;  %v250_v0 = vmax.f32 %v226_v57, 0.0  ;;  %v915_v60 = vld [vmem:[#allocation10 + $0xa0] sm:$0xff] }
 0x172   :  { %v221_v63 = vadd.f32 %v6201_v55, %v220_v62  ;;  %v248_v3 = vmax.f32 %v218_v59, 0.0  ;;  %v911_v59 = vld [vmem:[#allocation10 + $0x80] sm:$0xff]  ;;  %v916_v62 = vld [vmem:[#allocation10 + $0xa8] sm:$0xff] }
 0x173   :  { %v251_v1 = vmax.f32 %v229_v61, 0.0  ;;  %v912_v61 = vld [vmem:[#allocation10 + $0x88] sm:$0xff]  ;;  %v6272_v7 = vcombine.low %v911_v59, %v915_v60 }
 0x174   :  { %v249_v4 = vmax.f32 %v221_v63, 0.0  ;;  %v6275_v2 = vcombine.high %v912_v61, %v916_v62 }
 0x175   :  { %v7796_v8 = vpack.c.bf16 %v251_v1, %v250_v0  ;;  %v6273_v1 = vcombine.high %v911_v59, %v915_v60  ;;  %v975_v59 = vld [vmem:[#allocation10 + $0x280] sm:$0xff] }
 0x176   :  { %v7798_v9 = vpack.c.bf16 %v249_v4, %v248_v3  ;;  %v7009_v10 = vpop.f32.mrb[4].mxu0  ;;  %v919_v3 = vld [vmem:[#allocation10 + $0xc0] sm:$0xff] }
 0x177   :  { %v242_v11 = vadd.f32 %v7009_v10, %v6201_v55  ;;  %v233_v12 = vpop.f32.mrb[5].mxu0  ;;  %v923_v4 = vld [vmem:[#allocation10 + $0xe0] sm:$0xff] }
 0x178   :  { %6240 = vmatmul.mubr.msk.bf16.vlgmr.msra.gmra.mrb[0].mxu1 %vm494_vm1, %v7798_v9  ;;  %6244 = vmatmul.mubr.msk.bf16.vlgmr.msra.gmra.mrb[8].mxu0 %vm494_vm1, %v7798_v9  ;;  %v234_v16 = vadd.f32 %v6201_v55, %v233_v12  ;;  %v7010_v17 = vpop.f32.mrb[6].mxu0  ;;  %v6281_v10 = vcombine.high %v919_v3, %v923_v4  ;;  %v927_v12 = vld [vmem:[#allocation10 + $0x100] sm:$0xff] }
 0x179   :  { %v254_v21 = vmax.f32 %v242_v11, 0.0  ;;  %549 = vmatprep.mubr.bf16.mxu1 %v7603_v46  ;;  %622 = vmatprep.mubr.bf16.mxu0 %v7603_v46  ;;  %v245_v22 = vadd.f32 %v7010_v17, %v6201_v55  ;;  %v236_v23 = vpop.f32.mrb[7].mxu0  ;;  %v6283_v11 = vcombine.high %v920_v5, %v924_v6  ;;  %v6282_v17 = vcombine.low %v920_v5, %v924_v6  ;;  %v979_v60 = vld [vmem:[#allocation10 + $0x2a0] sm:$0xff]  ;;  %v984_v5 = vld [vmem:[#allocation10 + $0x2c8] sm:$0xff] }
 0x17a   :  { %v252_v24 = vmax.f32 %v234_v16, 0.0  ;;  %v237_v25 = vadd.f32 %v6201_v55, %v236_v23  ;;  %654 = vmatpush1.bf16.msra.mxu1 %v6212_v52  ;;  %727 = vmatpush1.bf16.msra.mxu0 %v6214_v53  ;;  %v907_v52 = vld [vmem:[#allocation10 + $0x60] sm:$0xff]  ;;  %v904_v53 = vld [vmem:[#allocation10 + $0x48] sm:$0xff]  ;;  %v6256_v55 = vcombine.low %v895_v42, %v899_v43  ;;  %v6280_v16 = vcombine.low %v919_v3, %v923_v4 }
 0x17b   :  { %v255_v28 = vmax.f32 %v245_v22, 0.0  ;;  %655 = vmatprep.subr.bf16.mxu1 %v6221_v13  ;;  %728 = vmatprep.subr.bf16.mxu0 %v6223_v14  ;;  %v6265_v57 = vcombine.high %v903_v51, %v907_v52  ;;  %v6267_v58 = vcombine.high %v904_v53, %v908_v54  ;;  %v6264_v63 = vcombine.low %v903_v51, %v907_v52  ;;  %v931_v13 = vld [vmem:[#allocation10 + $0x120] sm:$0xff]  ;;  %v928_v14 = vld [vmem:[#allocation10 + $0x108] sm:$0xff] }
 0x17c   :  { %v253_v32 = vmax.f32 %v237_v25, 0.0  ;;  %v6266_v0 = vcombine.low %v904_v53, %v908_v54  ;;  %v6289_v18 = vcombine.high %v927_v12, %v931_v13  ;;  %v6291_v19 = vcombine.high %v928_v14, %v932_v15  ;;  %v936_v22 = vld [vmem:[#allocation10 + $0x148] sm:$0xff]  ;;  %v959_v43 = vld [vmem:[#allocation10 + $0x200] sm:$0xff] }
 0x17d   :  { %v7806_v36 = vpack.c.bf16 %v255_v28, %v254_v21  ;;  %v939_v21 = vld [vmem:[#allocation10 + $0x160] sm:$0xff]  ;;  %v940_v23 = vld [vmem:[#allocation10 + $0x168] sm:$0xff] }
 0x17e   :  { %v7808_v37 = vpack.c.bf16 %v253_v32, %v252_v24  ;;  %656 = vmatpush1.bf16.msra.mxu1 %v6220_v26  ;;  %729 = vmatpush1.bf16.msra.mxu0 %v6222_v27  ;;  %v6290_v24 = vcombine.low %v928_v14, %v932_v15  ;;  %v6297_v25 = vcombine.high %v935_v20, %v939_v21  ;;  %v943_v27 = vld [vmem:[#allocation10 + $0x180] sm:$0xff]  ;;  %v968_v54 = vld [vmem:[#allocation10 + $0x248] sm:$0xff] }
 0x17f   :  { %657 = vmatprep.subr.bf16.mxu1 %v6229_v29  ;;  %730 = vmatprep.subr.bf16.mxu0 %v6231_v30  ;;  %v6299_v26 = vcombine.high %v936_v22, %v940_v23  ;;  %v947_v28 = vld [vmem:[#allocation10 + $0x1a0] sm:$0xff]  ;;  %v944_v29 = vld [vmem:[#allocation10 + $0x188] sm:$0xff]  ;;  %v6296_v31 = vcombine.low %v935_v20, %v939_v21  ;;  %v6298_v32 = vcombine.low %v936_v22, %v940_v23 }
 0x180   :  { %6241 = vmatmul.mubr.msk.bf16.gmra.mrb[4].mxu1 %vm494_vm1, %v7796_v8  ;;  %6245 = vmatmul.mubr.msk.bf16.gmra.mrb[12].mxu0 %vm494_vm1, %v7796_v8  ;;  %v948_v30 = vld [vmem:[#allocation10 + $0x1a8] sm:$0xff]  ;;  %v6305_v33 = vcombine.high %v943_v27, %v947_v28  ;;  %v967_v52 = vld [vmem:[#allocation10 + $0x240] sm:$0xff] }
 0x181   :  { %559 = vmatprep.mubr.bf16.mxu1 %v7603_v46  ;;  %632 = vmatprep.mubr.bf16.mxu0 %v7603_v46  ;;  %v6307_v34 = vcombine.high %v944_v29, %v948_v30  ;;  %v971_v53 = vld [vmem:[#allocation10 + $0x260] sm:$0xff]  ;;  %v988_v6 = vld [vmem:[#allocation10 + $0x2e8] sm:$0xff] }
 0x182   :  { %658 = vmatpush1.bf16.msra.mxu1 %v6228_v38  ;;  %731 = vmatpush1.bf16.msra.mxu0 %v6230_v39  ;;  %v955_v38 = vld [vmem:[#allocation10 + $0x1e0] sm:$0xff]  ;;  %v952_v39 = vld [vmem:[#allocation10 + $0x1c8] sm:$0xff] }
 0x183   :  { %659 = vmatprep.subr.bf16.mxu1 %v6237_v40  ;;  %732 = vmatprep.subr.bf16.mxu0 %v6239_v41  ;;  %v956_v40 = vld [vmem:[#allocation10 + $0x1e8] sm:$0xff]  ;;  %v6306_v41 = vcombine.low %v944_v29, %v948_v30  ;;  %v6313_v42 = vcombine.high %v951_v35, %v955_v38  ;;  %v983_v3 = vld [vmem:[#allocation10 + $0x2c0] sm:$0xff] }
 0x184   :  { %v987_v4 = vld [vmem:[#allocation10 + $0x2e0] sm:$0xff]  ;;  %v992_v14 = vld [vmem:[#allocation10 + $0x308] sm:$0xff] }
 0x185   :  { %v996_v15 = vld [vmem:[#allocation10 + $0x328] sm:$0xff]  ;;  %v999_v20 = vld [vmem:[#allocation10 + $0x340] sm:$0xff] }
 0x186   :  { %660 = vmatpush1.bf16.msra.mxu1 %v6236_v47  ;;  %733 = vmatpush1.bf16.msra.mxu0 %v6238_v48  ;;  %v964_v47 = vld [vmem:[#allocation10 + $0x228] sm:$0xff]  ;;  %v6312_v48 = vcombine.low %v951_v35, %v955_v38  ;;  %v1003_v21 = vld [vmem:[#allocation10 + $0x360] sm:$0xff] }
 0x187   :  { %4009 = vmatprep.subr.bf16.mxu1 %v6257_v49  ;;  %4301 = vmatprep.subr.bf16.mxu0 %v6259_v50  ;;  %v6314_v49 = vcombine.low %v952_v39, %v956_v40  ;;  %v6321_v50 = vcombine.high %v959_v43, %v963_v44  ;;  %v6323_v51 = vcombine.high %v960_v45, %v964_v47  ;;  %v1000_v22 = vld [vmem:[#allocation10 + $0x348] sm:$0xff]  ;;  %v1007_v29 = vld [vmem:[#allocation10 + $0x380] sm:$0xff] }
 0x188   :  { %6242 = vmatmul.mubr.msk.bf16.gmra.mrb[8].mxu1 %vm494_vm1, %v7808_v37  ;;  %6246 = vmatmul.mubr.msk.bf16.gmra.mrb[16].mxu0 %vm494_vm1, %v7808_v37  ;;  %v1004_v23 = vld [vmem:[#allocation10 + $0x368] sm:$0xff]  ;;  %v1011_v30 = vld [vmem:[#allocation10 + $0x3a0] sm:$0xff] }
 0x189   :  { %569 = vmatprep.mubr.bf16.mxu1 %v7603_v46  ;;  %642 = vmatprep.mubr.bf16.mxu0 %v7603_v46  ;;  %v6368_v35 = vcombine.low %v1007_v29, %v1011_v30 }
 0x190   :  { %6243 = vmatmul.mubr.msk.bf16.gmra.mrb[12].mxu1 %vm494_vm1, %v7806_v36  ;;  %6247 = vmatmul.mubr.msk.bf16.gmra.mrb[20].mxu0 %vm494_vm1, %v7806_v36 }
 0x191   :  { %685 = vmatprep.mubr.bf16.mxu1 %v7603_v46  ;;  %758 = vmatprep.mubr.bf16.mxu0 %v7603_v46 }
 0x198   :  { %6248 = vmatmul.mubr.msk.bf16.vlgmr.msra.gmra.mrb[16].mxu1 %vm494_vm1, %v7798_v9  ;;  %6252 = vmatmul.mubr.msk.bf16.vlgmr.msra.gmra.mrb[24].mxu0 %vm494_vm1, %v7798_v9  ;;  %v6274_v9 = vcombine.low %v912_v61, %v916_v62  ;;  %v976_v61 = vld [vmem:[#allocation10 + $0x288] sm:$0xff] }
 0x199   :  { %695 = vmatprep.mubr.bf16.mxu1 %v7603_v46  ;;  %768 = vmatprep.mubr.bf16.mxu0 %v7603_v46  ;;  %v980_v62 = vld [vmem:[#allocation10 + $0x2a8] sm:$0xff] }
 0x19a   :  { %4010 = vmatpush1.bf16.msra.mxu1 %v6256_v55  ;;  %4302 = vmatpush1.bf16.msra.mxu0 %v6258_v56  ;;  %v972_v55 = vld [vmem:[#allocation10 + $0x268] sm:$0xff]  ;;  %v6320_v56 = vcombine.low %v959_v43, %v963_v44 }
 0x19b   :  { %4011 = vmatprep.subr.bf16.mxu1 %v6265_v57  ;;  %4303 = vmatprep.subr.bf16.mxu0 %v6267_v58  ;;  %v6322_v57 = vcombine.low %v960_v45, %v964_v47  ;;  %v6331_v58 = vcombine.high %v968_v54, %v972_v55  ;;  %v7850_v45 = vld [vmem:[#allocation10 + $0x400] sm:$0xff] }
 0x19c   :  { %v7852_v47 = vld [vmem:[#allocation10 + $0x420] sm:$0xff] }
 0x19e   :  { %4012 = vmatpush1.bf16.msra.mxu1 %v6264_v63  ;;  %4304 = vmatpush1.bf16.msra.mxu0 %v6266_v0  ;;  %v6328_v63 = vcombine.low %v967_v52, %v971_v53  ;;  %v6330_v0 = vcombine.low %v968_v54, %v972_v55  ;;  %v294_v54 = vlaneseq }
 0x19f   :  { %4013 = vmatprep.subr.bf16.mxu1 %v6273_v1  ;;  %4305 = vmatprep.subr.bf16.mxu0 %v6275_v2  ;;  %v6337_v1 = vcombine.high %v975_v59, %v979_v60  ;;  %v6339_v2 = vcombine.high %v976_v61, %v980_v62 }
 0x1a0   :  { %6249 = vmatmul.mubr.msk.bf16.gmra.mrb[20].mxu1 %vm494_vm1, %v7796_v8  ;;  %6253 = vmatmul.mubr.msk.bf16.gmra.mrb[28].mxu0 %vm494_vm1, %v7796_v8  ;;  %v6288_v8 = vcombine.low %v927_v12, %v931_v13  ;;  %v991_v12 = vld [vmem:[#allocation10 + $0x300] sm:$0xff]  ;;  %v7866_v55 = vshrl.u32 %v294_v54, 7 }
 0x1a1   :  { %705 = vmatprep.mubr.bf16.mxu1 %v7603_v46  ;;  %778 = vmatprep.mubr.bf16.mxu0 %v7603_v46  ;;  %v995_v13 = vld [vmem:[#allocation10 + $0x320] sm:$0xff] }
 0x1a2   :  { %4014 = vmatpush1.bf16.msra.mxu1 %v6272_v7  ;;  %4306 = vmatpush1.bf16.msra.mxu0 %v6274_v9  ;;  %v6336_v7 = vcombine.low %v975_v59, %v979_v60  ;;  %v6338_v9 = vcombine.low %v976_v61, %v980_v62  ;;  %8687 = vst [vmem:[#allocation23_spill] sm:$0xff] %v7866_v55  ;;  %v8681_v59 = vsub.s32 3, %v7866_v55 }
 0x1a3   :  { %4015 = vmatprep.subr.bf16.mxu1 %v6281_v10  ;;  %4307 = vmatprep.subr.bf16.mxu0 %v6283_v11  ;;  %v6345_v10 = vcombine.high %v983_v3, %v987_v4  ;;  %v6347_v11 = vcombine.high %v984_v5, %v988_v6 }
 0x1a6   :  { %4016 = vmatpush1.bf16.msra.mxu1 %v6280_v16  ;;  %4308 = vmatpush1.bf16.msra.mxu0 %v6282_v17  ;;  %v6344_v16 = vcombine.low %v983_v3, %v987_v4  ;;  %v6346_v17 = vcombine.low %v984_v5, %v988_v6  ;;  %v7896_v6 = vld [vmem:[#allocation10 + $0x440] sm:$0xff] }
 0x1a7   :  { %4017 = vmatprep.subr.bf16.mxu1 %v6289_v18  ;;  %4309 = vmatprep.subr.bf16.mxu0 %v6291_v19  ;;  %v6353_v18 = vcombine.high %v991_v12, %v995_v13  ;;  %v6355_v19 = vcombine.high %v992_v14, %v996_v15 }
 0x1a8   :  { %6250 = vmatmul.mubr.msk.bf16.gmra.mrb[24].mxu1 %vm494_vm1, %v7808_v37  ;;  %6254 = vmatmul.mubr.msk.bf16.gmra.mrb[32].mxu0 %vm494_vm1, %v7808_v37  ;;  %v6304_v37 = vcombine.low %v943_v27, %v947_v28  ;;  %v6360_v27 = vcombine.low %v999_v20, %v1003_v21  ;;  %v6362_v28 = vcombine.low %v1000_v22, %v1004_v23 }
 0x1a9   :  { %715 = vmatprep.mubr.bf16.mxu1 %v7603_v46  ;;  %788 = vmatprep.mubr.bf16.mxu0 %v7603_v46  ;;  %v6315_v46 = vcombine.high %v952_v39, %v956_v40  ;;  %v1015_v39 = vld [vmem:[#allocation10 + $0x3c0] sm:$0xff] }
 0x1aa   :  { %4018 = vmatpush1.bf16.msra.mxu1 %v6288_v8  ;;  %4310 = vmatpush1.bf16.msra.mxu0 %v6290_v24  ;;  %v6352_v8 = vcombine.low %v991_v12, %v995_v13  ;;  %v6354_v24 = vcombine.low %v992_v14, %v996_v15  ;;  %v1019_v40 = vld [vmem:[#allocation10 + $0x3e0] sm:$0xff] }
 0x1ab   :  { %4019 = vmatprep.subr.bf16.mxu1 %v6297_v25  ;;  %4311 = vmatprep.subr.bf16.mxu0 %v6299_v26  ;;  %v6361_v25 = vcombine.high %v999_v20, %v1003_v21  ;;  %v6363_v26 = vcombine.high %v1000_v22, %v1004_v23  ;;  %v6376_v43 = vcombine.low %v1015_v39, %v1019_v40  ;;  %v7910_v21 = vld [vmem:[#allocation10 + $0x448] sm:$0xff] }
 0x1ac   :  { %v7912_v22 = vld [vmem:[#allocation10 + $0x468] sm:$0xff] }
 0x1ae   :  { %4020 = vmatpush1.bf16.msra.mxu1 %v6296_v31  ;;  %4312 = vmatpush1.bf16.msra.mxu0 %v6298_v32  ;;  %v1008_v31 = vld [vmem:[#allocation10 + $0x388] sm:$0xff]  ;;  %v6369_v32 = vcombine.high %v1007_v29, %v1011_v30 }
 0x1af   :  { %4021 = vmatprep.subr.bf16.mxu1 %v6305_v33  ;;  %4313 = vmatprep.subr.bf16.mxu0 %v6307_v34  ;;  %v1012_v33 = vld [vmem:[#allocation10 + $0x3a8] sm:$0xff] }
 0x1b0   :  { %6251 = vmatmul.mubr.msk.bf16.gmra.mrb[28].mxu1 %vm494_vm1, %v7806_v36  ;;  %6255 = vmatmul.mubr.msk.bf16.gmra.mrb[36].mxu0 %vm494_vm1, %v7806_v36  ;;  %v6329_v36 = vcombine.high %v967_v52, %v971_v53  ;;  %v6371_v34 = vcombine.high %v1008_v31, %v1012_v33  ;;  %v6370_v38 = vcombine.low %v1008_v31, %v1012_v33  ;;  %v7920_v33 = vld [vmem:[#allocation10 + $0x4a8] sm:$0xff] }
 0x1b2   :  { %4022 = vmatpush1.bf16.msra.mxu1 %v6304_v37  ;;  %4314 = vmatpush1.bf16.msra.mxu0 %v6306_v41  ;;  %v1016_v37 = vld [vmem:[#allocation10 + $0x3c8] sm:$0xff]  ;;  %v6377_v41 = vcombine.high %v1015_v39, %v1019_v40  ;;  %v6395_v39 = vcombine.high %v7910_v21, %v7912_v22  ;;  %v7930_v40 = vld [vmem:[#allocation10 + $0x4c0] sm:$0xff] }
 0x1b3   :  { %4023 = vmatprep.subr.bf16.mxu1 %v6313_v42  ;;  %4315 = vmatprep.subr.bf16.mxu0 %v6315_v46  ;;  %v1020_v42 = vld [vmem:[#allocation10 + $0x3e8] sm:$0xff] }
 0x1b4   :  { %v6379_v46 = vcombine.high %v1016_v37, %v1020_v42  ;;  %v6378_v44 = vcombine.low %v1016_v37, %v1020_v42  ;;  %v7932_v37 = vld [vmem:[#allocation10 + $0x4e0] sm:$0xff] }
 0x1b6   :  { %4024 = vmatpush1.bf16.msra.mxu1 %v6312_v48  ;;  %4316 = vmatpush1.bf16.msra.mxu0 %v6314_v49  ;;  %v7854_v48 = vld [vmem:[#allocation10 + $0x408] sm:$0xff]  ;;  %v6385_v49 = vcombine.high %v7850_v45, %v7852_v47 }
 0x1b7   :  { %4025 = vmatprep.subr.bf16.mxu1 %v6321_v50  ;;  %4317 = vmatprep.subr.bf16.mxu0 %v6323_v51  ;;  %v7858_v50 = vld [vmem:[#allocation10 + $0x428] sm:$0xff]  ;;  %v6384_v51 = vcombine.low %v7850_v45, %v7852_v47 }
 0x1b8   :  { %v6386_v52 = vcombine.low %v7854_v48, %v7858_v50  ;;  %v6387_v53 = vcombine.high %v7854_v48, %v7858_v50  ;;  %v7980_v48 = vld [vmem:[#allocation10 + $0x528] sm:$0xff] }
 0x1ba   :  { %4026 = vmatpush1.bf16.msra.mxu1 %v6320_v56  ;;  %4318 = vmatpush1.bf16.msra.mxu0 %v6322_v57  ;;  %v8684_v56 = vsub.s32 0, %v7866_v55  ;;  %v8683_v57 = vsub.s32 2, %v7866_v55 }
 0x1bb   :  { %4027 = vmatprep.subr.bf16.mxu1 %v6329_v36  ;;  %4319 = vmatprep.subr.bf16.mxu0 %v6331_v58  ;;  %v7870_v36 = vld [vmem:[#allocation8] sm:$0xff]  ;;  %v8682_v58 = vsub.s32 1, %v7866_v55 }
 0x1bc   :  { %v7877_v60 = vrot.slane %v7870_v36, %v8684_v56  ;;  %v7882_v61 = vrot.slane %v7870_v36, %v8683_v57 }
 0x1bd   :  { %v7887_v62 = vrot.slane %v7870_v36, %v8682_v58 }
 0x1be   :  { %4028 = vmatpush1.bf16.msra.mxu1 %v6328_v63  ;;  %4320 = vmatpush1.bf16.msra.mxu0 %v6330_v0  ;;  %v7892_v63 = vrot.slane %v7870_v36, %v8681_v59 }
 0x1bf   :  { %4029 = vmatprep.subr.bf16.mxu1 %v6337_v1  ;;  %4321 = vmatprep.subr.bf16.mxu0 %v6339_v2 }
 0x1c2   :  { %4030 = vmatpush1.bf16.msra.mxu1 %v6336_v7  ;;  %4322 = vmatpush1.bf16.msra.mxu0 %v6338_v9  ;;  %v7898_v7 = vld [vmem:[#allocation10 + $0x460] sm:$0xff] }
 0x1c3   :  { %4031 = vmatprep.subr.bf16.mxu1 %v6345_v10  ;;  %4323 = vmatprep.subr.bf16.mxu0 %v6347_v11  ;;  %v6393_v20 = vcombine.high %v7896_v6, %v7898_v7 }
 0x1c6   :  { %4032 = vmatpush1.bf16.msra.mxu1 %v6344_v16  ;;  %4324 = vmatpush1.bf16.msra.mxu0 %v6346_v17 }
 0x1c7   :  { %4033 = vmatprep.subr.bf16.mxu1 %v6353_v18  ;;  %4325 = vmatprep.subr.bf16.mxu0 %v6355_v19  ;;  %v6392_v19 = vcombine.low %v7896_v6, %v7898_v7 }
 0x1ca   :  { %4034 = vmatpush1.bf16.msra.mxu1 %v6352_v8  ;;  %4326 = vmatpush1.bf16.msra.mxu0 %v6354_v24 }
 0x1cb   :  { %4035 = vmatprep.subr.bf16.mxu1 %v6361_v25  ;;  %4327 = vmatprep.subr.bf16.mxu0 %v6363_v26  ;;  %v7914_v26 = vld [vmem:[#allocation10 + $0x480] sm:$0xff] }
 0x1ce   :  { %4036 = vmatpush1.bf16.msra.mxu1 %v6360_v27  ;;  %4328 = vmatpush1.bf16.msra.mxu0 %v6362_v28  ;;  %v7916_v27 = vld [vmem:[#allocation10 + $0x4a0] sm:$0xff] }
 0x1cf   :  { %4037 = vmatprep.subr.bf16.mxu1 %v6369_v32  ;;  %4329 = vmatprep.subr.bf16.mxu0 %v6371_v34  ;;  %v7918_v32 = vld [vmem:[#allocation10 + $0x488] sm:$0xff] }
 0x1d2   :  { %4038 = vmatpush1.bf16.msra.mxu1 %v6368_v35  ;;  %4330 = vmatpush1.bf16.msra.mxu0 %v6370_v38  ;;  %v6394_v38 = vcombine.low %v7910_v21, %v7912_v22 }
 0x1d3   :  { %4039 = vmatprep.subr.bf16.mxu1 %v6377_v41  ;;  %4331 = vmatprep.subr.bf16.mxu0 %v6379_v46 }
 0x1d6   :  { %4040 = vmatpush1.bf16.msra.mxu1 %v6376_v43  ;;  %4332 = vmatpush1.bf16.msra.mxu0 %v6378_v44  ;;  %v6400_v44 = vcombine.low %v7914_v26, %v7916_v27 }
 0x1d7   :  { %4082 = vmatprep.subr.bf16.mxu1 %v6385_v49  ;;  %4374 = vmatprep.subr.bf16.mxu0 %v6387_v53  ;;  %v6401_v49 = vcombine.high %v7914_v26, %v7916_v27  ;;  %v8679_v27 = vsub.s32 6, %v7866_v55 }
 0x24b   :  { %v541_v0 = vpop.f32.mrb[0].mxu1  ;;  %v614_v1 = vpop.f32.mrb[8].mxu0 }
 0x24c   :  { %v542_v2 = vadd.f32 %v541_v0, %v7877_v60  ;;  %v615_v3 = vadd.f32 %v614_v1, %v7882_v61  ;;  %v543_v4 = vpop.f32.mrb[1].mxu1  ;;  %v616_v5 = vpop.f32.mrb[9].mxu0 }
 0x24d   :  { %v544_v9 = vadd.f32 %v543_v4, %v7887_v62  ;;  %v617_v10 = vadd.f32 %v616_v5, %v7892_v63  ;;  %v545_v11 = vpop.f32.mrb[2].mxu1  ;;  %v618_v12 = vpop.f32.mrb[10].mxu0  ;;  %v7948_v4 = vld [vmem:[#allocation10 + $0x4c8] sm:$0xff] }
 0x24e   :  { %v546_v13 = vadd.f32 %v545_v11, %v7877_v60  ;;  %v619_v14 = vadd.f32 %v618_v12, %v7882_v61  ;;  %v547_v15 = vpop.f32.mrb[3].mxu1  ;;  %v620_v16 = vpop.f32.mrb[11].mxu0  ;;  %v799_v23 = vmax.f32 %v542_v2, 0.0  ;;  %v801_v8 = vmax.f32 %v615_v3, 0.0  ;;  %v7950_v5 = vld [vmem:[#allocation10 + $0x4e8] sm:$0xff] }
 0x24f   :  { %v548_v17 = vadd.f32 %v547_v15, %v7887_v62  ;;  %v621_v18 = vadd.f32 %v620_v16, %v7892_v63  ;;  %v800_v28 = vmax.f32 %v544_v9, 0.0  ;;  %v802_v29 = vmax.f32 %v617_v10, 0.0 }
 0x250   :  { %v807_v24 = vmax.f32 %v546_v13, 0.0  ;;  %v809_v25 = vmax.f32 %v619_v14, 0.0  ;;  %v6402_v2 = vcombine.low %v7918_v32, %v7920_v33  ;;  %v6403_v3 = vcombine.high %v7918_v32, %v7920_v33 }
 0x251   :  { %v808_v30 = vmax.f32 %v548_v17, 0.0  ;;  %v810_v31 = vmax.f32 %v621_v18, 0.0  ;;  %v6409_v13 = vcombine.high %v7930_v40, %v7932_v37  ;;  %v6408_v18 = vcombine.low %v7930_v40, %v7932_v37 }
 0x252   :  { %v7922_v34 = vpack.c.bf16 %v807_v24, %v799_v23  ;;  %v7924_v35 = vpack.c.bf16 %v809_v25, %v801_v8  ;;  %v6410_v23 = vcombine.low %v7948_v4, %v7950_v5  ;;  %v7974_v8 = vld [vmem:[#allocation10 + $0x500] sm:$0xff] }
 0x253   :  { %v7934_v41 = vpack.c.bf16 %v808_v30, %v800_v28  ;;  %v7936_v42 = vpack.c.bf16 %v810_v31, %v802_v29  ;;  %v551_v46 = vpop.f32.mrb[4].mxu1  ;;  %v624_v43 = vpop.f32.mrb[12].mxu0  ;;  %v7976_v24 = vld [vmem:[#allocation10 + $0x520] sm:$0xff] }
 0x254   :  { %v552_v53 = vadd.f32 %v551_v46, %v7877_v60  ;;  %v625_v54 = vadd.f32 %v624_v43, %v7882_v61  ;;  %v553_v0 = vpop.f32.mrb[5].mxu1  ;;  %v626_v1 = vpop.f32.mrb[13].mxu0  ;;  %v7978_v46 = vld [vmem:[#allocation10 + $0x508] sm:$0xff]  ;;  %v6411_v43 = vcombine.high %v7948_v4, %v7950_v5  ;;  %v8070_v4 = vrot.slane %v7870_v36, %v8679_v27  ;;  %v8072_v5 = vld [vmem:[#allocation10 + $0x580] sm:$0xff] }
 0x255   :  { %v554_v9 = vadd.f32 %v553_v0, %v7887_v62  ;;  %v627_v10 = vadd.f32 %v626_v1, %v7892_v63  ;;  %v555_v11 = vpop.f32.mrb[6].mxu1  ;;  %v628_v12 = vpop.f32.mrb[14].mxu0  ;;  %4041 = vmatprep.mubr.bf16.mxu1 %v7934_v41  ;;  %4333 = vmatprep.mubr.bf16.mxu0 %v7934_v41  ;;  %v6416_v1 = vcombine.low %v7974_v8, %v7976_v24 }
 0x256   :  { %v556_v14 = vadd.f32 %v555_v11, %v7877_v60  ;;  %v629_v15 = vadd.f32 %v628_v12, %v7882_v61  ;;  %v557_v16 = vpop.f32.mrb[7].mxu1  ;;  %v630_v17 = vpop.f32.mrb[15].mxu0  ;;  %4042 = vmatmul.mubr.bf16.vlgmr.msra.gmra.mrb[32].mxu1 %v7922_v34  ;;  %4334 = vmatmul.mubr.bf16.vlgmr.msra.gmra.mrb[40].mxu0 %v7922_v34  ;;  %v815_v25 = vmax.f32 %v552_v53, 0.0  ;;  %v817_v28 = vmax.f32 %v625_v54, 0.0 }
 0x257   :  { %v558_v21 = vadd.f32 %v557_v16, %v7887_v62  ;;  %v631_v22 = vadd.f32 %v630_v17, %v7892_v63  ;;  %4083 = vmatpush1.bf16.msra.mxu1 %v6384_v51  ;;  %4375 = vmatpush1.bf16.msra.mxu0 %v6386_v52  ;;  %v816_v31 = vmax.f32 %v554_v9, 0.0  ;;  %v818_v45 = vmax.f32 %v627_v10, 0.0 }
 0x258   :  { %v823_v29 = vmax.f32 %v556_v14, 0.0  ;;  %v825_v30 = vmax.f32 %v629_v15, 0.0  ;;  %4084 = vmatprep.subr.bf16.mxu1 %v6393_v20  ;;  %4376 = vmatprep.subr.bf16.mxu0 %v6395_v39  ;;  %v6417_v53 = vcombine.high %v7974_v8, %v7976_v24  ;;  %v6418_v14 = vcombine.low %v7978_v46, %v7980_v48  ;;  %v8011_v15 = vld [vmem:[#allocation10 + $0x560] sm:$0xff] }
 0x259   :  { %v824_v47 = vmax.f32 %v558_v21, 0.0  ;;  %v826_v51 = vmax.f32 %v631_v22, 0.0  ;;  %v8680_v16 = vsub.s32 4, %v7866_v55 }
 0x25a   :  { %v7982_v50 = vpack.c.bf16 %v823_v29, %v815_v25  ;;  %v7984_v52 = vpack.c.bf16 %v825_v30, %v817_v28 }
 0x25b   :  { %v7990_v20 = vpack.c.bf16 %v824_v47, %v816_v31  ;;  %v7992_v39 = vpack.c.bf16 %v826_v51, %v818_v45  ;;  %4085 = vmatpush1.bf16.msra.mxu1 %v6392_v19  ;;  %4377 = vmatpush1.bf16.msra.mxu0 %v6394_v38  ;;  %v561_v54 = vpop.f32.mrb[8].mxu1  ;;  %v634_v0 = vpop.f32.mrb[16].mxu0  ;;  %v8026_v51 = vld [vmem:[#allocation10 + $0x548] sm:$0xff] }
 0x25c   :  { %v562_v9 = vadd.f32 %v561_v54, %v7877_v60  ;;  %v563_v10 = vpop.f32.mrb[9].mxu1  ;;  %4086 = vmatprep.subr.bf16.mxu1 %v6401_v49  ;;  %4378 = vmatprep.subr.bf16.mxu0 %v6403_v3  ;;  %v635_v11 = vadd.f32 %v634_v0, %v7882_v61  ;;  %v636_v12 = vpop.f32.mrb[17].mxu0  ;;  %v6419_v49 = vcombine.high %v7978_v46, %v7980_v48  ;;  %v8009_v3 = vld [vmem:[#allocation10 + $0x540] sm:$0xff]  ;;  %v8028_v54 = vld [vmem:[#allocation10 + $0x568] sm:$0xff] }
 0x25d   :  { %v564_v6 = vadd.f32 %v563_v10, %v7887_v62  ;;  %v565_v7 = vpop.f32.mrb[10].mxu1  ;;  %4051 = vmatprep.mubr.bf16.mxu1 %v7990_v20  ;;  %4343 = vmatprep.mubr.bf16.mxu0 %v7990_v20  ;;  %v637_v19 = vadd.f32 %v636_v12, %v7892_v63  ;;  %v638_v38 = vpop.f32.mrb[18].mxu0  ;;  %v6425_v26 = vcombine.high %v8009_v3, %v8011_v15 }
 0x25e   :  { %v831_v17 = vmax.f32 %v562_v9, 0.0  ;;  %v566_v21 = vadd.f32 %v565_v7, %v7877_v60  ;;  %v567_v22 = vpop.f32.mrb[11].mxu1  ;;  %4052 = vmatmul.mubr.bf16.gmra.mrb[36].mxu1 %v7982_v50  ;;  %4344 = vmatmul.mubr.bf16.gmra.mrb[44].mxu0 %v7982_v50  ;;  %v833_v25 = vmax.f32 %v635_v11, 0.0  ;;  %v639_v28 = vadd.f32 %v638_v38, %v7882_v61  ;;  %v640_v29 = vpop.f32.mrb[19].mxu0 }
 0x25f   :  { %v832_v30 = vmax.f32 %v564_v6, 0.0  ;;  %v568_v31 = vadd.f32 %v567_v22, %v7887_v62  ;;  %4087 = vmatpush1.bf16.msra.mxu1 %v6400_v44  ;;  %4379 = vmatpush1.bf16.msra.mxu0 %v6402_v2  ;;  %v834_v45 = vmax.f32 %v637_v19, 0.0  ;;  %v641_v47 = vadd.f32 %v640_v29, %v7892_v63  ;;  %v8086_v29 = vld [vmem:[#allocation10 + $0x588] sm:$0xff] }
 0x260   :  { %v839_v0 = vmax.f32 %v566_v21, 0.0  ;;  %4088 = vmatprep.subr.bf16.mxu1 %v6409_v13  ;;  %4380 = vmatprep.subr.bf16.mxu0 %v6411_v43  ;;  %v841_v9 = vmax.f32 %v639_v28, 0.0  ;;  %v6424_v44 = vcombine.low %v8009_v3, %v8011_v15  ;;  %v8678_v2 = vsub.s32 5, %v7866_v55  ;;  %v8084_v28 = vld [vmem:[#allocation10 + $0x5a0] sm:$0xff]  ;;  %v8146_v15 = vld [vmem:[#allocation10 + $0x608] sm:$0xff] }
 0x261   :  { %v840_v32 = vmax.f32 %v568_v31, 0.0  ;;  %v842_v33 = vmax.f32 %v641_v47, 0.0  ;;  %v6426_v13 = vcombine.low %v8026_v51, %v8028_v54  ;;  %v6427_v43 = vcombine.high %v8026_v51, %v8028_v54 }
 0x262   :  { %v8039_v10 = vpack.c.bf16 %v839_v0, %v831_v17  ;;  %v8041_v11 = vpack.c.bf16 %v841_v9, %v833_v25  ;;  %v8060_v38 = vrot.slane %v7870_v36, %v8680_v16  ;;  %v8081_v22 = vrot.slane %v7870_v36, %v8678_v2 }
 0x263   :  { %v8047_v12 = vpack.c.bf16 %v840_v32, %v832_v30  ;;  %4089 = vmatpush1.bf16.msra.mxu1 %v6408_v18  ;;  %4381 = vmatpush1.bf16.msra.mxu0 %v6410_v23  ;;  %v571_v6 = vpop.f32.mrb[12].mxu1  ;;  %v8055_v7 = vpack.c.bf16 %v842_v33, %v834_v45  ;;  %v644_v19 = vpop.f32.mrb[20].mxu0  ;;  %v8677_v25 = vsub.s32 7, %v7866_v55  ;;  %v8088_v30 = vld [vmem:[#allocation10 + $0x5a8] sm:$0xff]  ;;  %v6432_v48 = vcombine.low %v8072_v5, %v8084_v28 }
 0x264   :  { %v572_v17 = vadd.f32 %v571_v6, %v7877_v60  ;;  %v573_v21 = vpop.f32.mrb[13].mxu1  ;;  %4090 = vmatprep.subr.bf16.mxu1 %v6417_v53  ;;  %4382 = vmatprep.subr.bf16.mxu0 %v6419_v49  ;;  %v645_v40 = vadd.f32 %v644_v19, %v7882_v61  ;;  %v646_v37 = vpop.f32.mrb[21].mxu0  ;;  %v8102_v6 = vld [vmem:[#allocation10 + $0x5c0] sm:$0xff]  ;;  %v6435_v8 = vcombine.high %v8086_v29, %v8088_v30 }
 0x265   :  { %v574_v18 = vadd.f32 %v573_v21, %v7887_v62  ;;  %v575_v23 = vpop.f32.mrb[14].mxu1  ;;  %4061 = vmatprep.mubr.bf16.mxu1 %v8047_v12  ;;  %4353 = vmatprep.mubr.bf16.mxu0 %v8047_v12  ;;  %v647_v53 = vadd.f32 %v646_v37, %v7892_v63  ;;  %v648_v49 = vpop.f32.mrb[22].mxu0  ;;  %v8104_v19 = vld [vmem:[#allocation10 + $0x5e0] sm:$0xff]  ;;  %v6434_v21 = vcombine.low %v8086_v29, %v8088_v30 }
 0x266   :  { %v847_v31 = vmax.f32 %v572_v17, 0.0  ;;  %v576_v45 = vadd.f32 %v575_v23, %v7877_v60  ;;  %v577_v47 = vpop.f32.mrb[15].mxu1  ;;  %4062 = vmatmul.mubr.bf16.gmra.mrb[40].mxu1 %v8039_v10  ;;  %4354 = vmatmul.mubr.bf16.gmra.mrb[48].mxu0 %v8039_v10  ;;  %v849_v51 = vmax.f32 %v645_v40, 0.0  ;;  %v649_v54 = vadd.f32 %v648_v49, %v7882_v61  ;;  %v650_v0 = vpop.f32.mrb[23].mxu0  ;;  %v8140_v49 = vld [vmem:[#allocation10 + $0x620] sm:$0xff] }
 0x267   :  { %v848_v9 = vmax.f32 %v574_v18, 0.0  ;;  %v578_v32 = vadd.f32 %v577_v47, %v7887_v62  ;;  %4091 = vmatpush1.bf16.msra.mxu1 %v6416_v1  ;;  %4383 = vmatpush1.bf16.msra.mxu0 %v6418_v14  ;;  %v850_v60 = vmax.f32 %v647_v53, 0.0  ;;  %v651_v33 = vadd.f32 %v650_v0, %v7892_v63  ;;  %v8117_v1 = vld [vmem:[#allocation10 + $0x5c8] sm:$0xff]  ;;  %v8138_v53 = vld [vmem:[#allocation10 + $0x600] sm:$0xff] }
 0x268   :  { %v855_v61 = vmax.f32 %v576_v45, 0.0  ;;  %v857_v17 = vmax.f32 %v649_v54, 0.0  ;;  %4092 = vmatprep.subr.bf16.mxu1 %v6425_v26  ;;  %4384 = vmatprep.subr.bf16.mxu0 %v6427_v43  ;;  %v6433_v62 = vcombine.high %v8072_v5, %v8084_v28  ;;  %v8113_v63 = vrot.slane %v7870_v36, %v8677_v25  ;;  %v8119_v14 = vld [vmem:[#allocation10 + $0x5e8] sm:$0xff] }
 0x269   :  { %v856_v24 = vmax.f32 %v578_v32, 0.0  ;;  %v858_v46 = vmax.f32 %v651_v33, 0.0  ;;  %v6441_v40 = vcombine.high %v8102_v6, %v8104_v19  ;;  %v6440_v23 = vcombine.low %v8102_v6, %v8104_v19 }
 0x26a   :  { %v8121_v26 = vpack.c.bf16 %v855_v61, %v847_v31  ;;  %v8123_v43 = vpack.c.bf16 %v857_v17, %v849_v51  ;;  %v6442_v3 = vcombine.low %v8117_v1, %v8119_v14  ;;  %v6443_v54 = vcombine.high %v8117_v1, %v8119_v14  ;;  %v8170_v1 = vld [vmem:[#allocation10 + $0x660] sm:$0xff] }
 0x26b   :  { %v8129_v37 = vpack.c.bf16 %v856_v24, %v848_v9  ;;  %v8131_v36 = vpack.c.bf16 %v858_v46, %v850_v60  ;;  %4093 = vmatpush1.bf16.msra.mxu1 %v6424_v44  ;;  %4385 = vmatpush1.bf16.msra.mxu0 %v6426_v13  ;;  %v687_v5 = vpop.f32.mrb[16].mxu1  ;;  %v760_v18 = vpop.f32.mrb[24].mxu0  ;;  %v8148_v44 = vld [vmem:[#allocation10 + $0x628] sm:$0xff]  ;;  %v6449_v33 = vcombine.high %v8138_v53, %v8140_v49  ;;  %v8168_v46 = vld [vmem:[#allocation10 + $0x640] sm:$0xff] }
 0x26c   :  { %v688_v28 = vadd.f32 %v687_v5, %v8060_v38  ;;  %v761_v29 = vadd.f32 %v760_v18, %v8070_v4  ;;  %v689_v30 = vpop.f32.mrb[17].mxu1  ;;  %v762_v31 = vpop.f32.mrb[25].mxu0  ;;  %4094 = vmatprep.subr.bf16.mxu1 %v6433_v62  ;;  %4386 = vmatprep.subr.bf16.mxu0 %v6435_v8  ;;  %v6451_v61 = vcombine.high %v8146_v15, %v8148_v44 }
 0x26d   :  { %v690_v13 = vadd.f32 %v689_v30, %v8081_v22  ;;  %v763_v45 = vadd.f32 %v762_v31, %v8113_v63  ;;  %v691_v47 = vpop.f32.mrb[18].mxu1  ;;  %v764_v51 = vpop.f32.mrb[26].mxu0  ;;  %4071 = vmatprep.mubr.bf16.mxu1 %v8129_v37  ;;  %4363 = vmatprep.mubr.bf16.mxu0 %v8129_v37  ;;  %v1100_v30 = vld [vmem:[#allocation10 + $0x668] sm:$0xff]  ;;  %v6448_v31 = vcombine.low %v8138_v53, %v8140_v49 }
 0x26e   :  { %v692_v0 = vadd.f32 %v691_v47, %v8060_v38  ;;  %v765_v9 = vadd.f32 %v764_v51, %v8070_v4  ;;  %v693_v32 = vpop.f32.mrb[19].mxu1  ;;  %v766_v60 = vpop.f32.mrb[27].mxu0  ;;  %4072 = vmatmul.mubr.bf16.gmra.mrb[44].mxu1 %v8121_v26  ;;  %4364 = vmatmul.mubr.bf16.gmra.mrb[52].mxu0 %v8121_v26  ;;  %v803_v17 = vmax.f32 %v688_v28, 0.0  ;;  %v805_v62 = vmax.f32 %v761_v29, 0.0 }
 0x26f   :  { %v694_v6 = vadd.f32 %v693_v32, %v8081_v22  ;;  %v767_v19 = vadd.f32 %v766_v60, %v8113_v63  ;;  %4095 = vmatpush1.bf16.msra.mxu1 %v6432_v48  ;;  %4387 = vmatpush1.bf16.msra.mxu0 %v6434_v21  ;;  %v804_v14 = vmax.f32 %v690_v13, 0.0  ;;  %v806_v5 = vmax.f32 %v763_v45, 0.0  ;;  %v1096_v21 = vld [vmem:[#allocation10 + $0x648] sm:$0xff] }
 0x270   :  { %v811_v8 = vmax.f32 %v692_v0, 0.0  ;;  %v813_v24 = vmax.f32 %v765_v9, 0.0  ;;  %4114 = vmatprep.mubr.bf16.mxu1 %v7936_v42  ;;  %4406 = vmatprep.mubr.bf16.mxu0 %v7936_v42  ;;  %v6450_v47 = vcombine.low %v8146_v15, %v8148_v44  ;;  %v8186_v0 = vld [vmem:[#allocation10 + $0x680] sm:$0xff]  ;;  %v6459_v32 = vcombine.high %v1096_v21, %v1100_v30 }
 0x271   :  { %v812_v18 = vmax.f32 %v694_v6, 0.0  ;;  %v814_v48 = vmax.f32 %v767_v19, 0.0  ;;  %4096 = vmatprep.subr.bf16.mxu1 %v6441_v40  ;;  %4388 = vmatprep.subr.bf16.mxu0 %v6443_v54  ;;  %v6457_v54 = vcombine.high %v8168_v46, %v8170_v1  ;;  %v8188_v9 = vld [vmem:[#allocation10 + $0x6a0] sm:$0xff] }
 0x272   :  { %v8172_v28 = vpack.c.bf16 %v811_v8, %v803_v17  ;;  %v8174_v29 = vpack.c.bf16 %v813_v24, %v805_v62  ;;  %v6456_v62 = vcombine.low %v8168_v46, %v8170_v1 }
 0x273   :  { %v8180_v51 = vpack.c.bf16 %v812_v18, %v804_v14  ;;  %v8182_v13 = vpack.c.bf16 %v814_v48, %v806_v5  ;;  %4097 = vmatpush1.bf16.msra.mxu1 %v6440_v23  ;;  %4389 = vmatpush1.bf16.msra.mxu0 %v6442_v3  ;;  %v697_v40 = vpop.f32.mrb[20].mxu1  ;;  %v770_v45 = vpop.f32.mrb[28].mxu0  ;;  %v8192_v23 = vld [vmem:[#allocation10 + $0x688] sm:$0xff]  ;;  %v6458_v14 = vcombine.low %v1096_v21, %v1100_v30  ;;  %v8210_v21 = vld [vmem:[#allocation10 + $0x6e0] sm:$0xff] }
 0x274   :  { %v698_v53 = vadd.f32 %v697_v40, %v8060_v38  ;;  %v771_v49 = vadd.f32 %v770_v45, %v8070_v4  ;;  %v699_v15 = vpop.f32.mrb[21].mxu1  ;;  %v772_v44 = vpop.f32.mrb[29].mxu0  ;;  %4098 = vmatprep.subr.bf16.mxu1 %v6449_v33  ;;  %4390 = vmatprep.subr.bf16.mxu0 %v6451_v61  ;;  %v8194_v3 = vld [vmem:[#allocation10 + $0x6a8] sm:$0xff]  ;;  %v6465_v5 = vcombine.high %v8186_v0, %v8188_v9 }
 0x275   :  { %v700_v60 = vadd.f32 %v699_v15, %v8081_v22  ;;  %v773_v6 = vadd.f32 %v772_v44, %v8113_v63  ;;  %v701_v19 = vpop.f32.mrb[22].mxu1  ;;  %v774_v17 = vpop.f32.mrb[30].mxu0  ;;  %v6467_v40 = vcombine.high %v8192_v23, %v8194_v3  ;;  %v8208_v44 = vld [vmem:[#allocation10 + $0x6c0] sm:$0xff] }
 0x276   :  { %v702_v8 = vadd.f32 %v701_v19, %v8060_v38  ;;  %v775_v24 = vadd.f32 %v774_v17, %v8070_v4  ;;  %v703_v33 = vpop.f32.mrb[23].mxu1  ;;  %v776_v61 = vpop.f32.mrb[31].mxu0  ;;  %v819_v46 = vmax.f32 %v698_v53, 0.0  ;;  %v821_v1 = vmax.f32 %v771_v49, 0.0 }
 0x277   :  { %v704_v18 = vadd.f32 %v703_v33, %v8081_v22  ;;  %v777_v48 = vadd.f32 %v776_v61, %v8113_v63  ;;  %4099 = vmatpush1.bf16.msra.mxu1 %v6448_v31  ;;  %4391 = vmatpush1.bf16.msra.mxu0 %v6450_v47  ;;  %v820_v30 = vmax.f32 %v700_v60, 0.0  ;;  %v822_v19 = vmax.f32 %v773_v6, 0.0  ;;  %v1112_v61 = vld [vmem:[#allocation10 + $0x6c8] sm:$0xff] }
 0x278   :  { %v827_v45 = vmax.f32 %v702_v8, 0.0  ;;  %v829_v15 = vmax.f32 %v775_v24, 0.0  ;;  %4100 = vmatprep.subr.bf16.mxu1 %v6457_v54  ;;  %4392 = vmatprep.subr.bf16.mxu0 %v6459_v32  ;;  %v1116_v31 = vld [vmem:[#allocation10 + $0x6e8] sm:$0xff]  ;;  %v6464_v53 = vcombine.low %v8186_v0, %v8188_v9  ;;  %v6466_v54 = vcombine.low %v8192_v23, %v8194_v3  ;;  %v8226_v24 = vld [vmem:[#allocation10 + $0x700] sm:$0xff] }
 0x279   :  { %v828_v17 = vmax.f32 %v704_v18, 0.0  ;;  %v830_v33 = vmax.f32 %v777_v48, 0.0  ;;  %v6473_v8 = vcombine.high %v8208_v44, %v8210_v21  ;;  %v8228_v18 = vld [vmem:[#allocation10 + $0x720] sm:$0xff]  ;;  %v6475_v48 = vcombine.high %v1112_v61, %v1116_v31 }
 0x27a   :  { %v8212_v47 = vpack.c.bf16 %v827_v45, %v819_v46  ;;  %v8214_v25 = vpack.c.bf16 %v829_v15, %v821_v1 }
 0x27b   :  { %v8220_v49 = vpack.c.bf16 %v828_v17, %v820_v30  ;;  %v8222_v32 = vpack.c.bf16 %v830_v33, %v822_v19  ;;  %4101 = vmatpush1.bf16.msra.mxu1 %v6456_v62  ;;  %4393 = vmatpush1.bf16.msra.mxu0 %v6458_v14  ;;  %v707_v60 = vpop.f32.mrb[24].mxu1  ;;  %v780_v6 = vpop.f32.mrb[32].mxu0  ;;  %v8232_v62 = vld [vmem:[#allocation10 + $0x708] sm:$0xff]  ;;  %v6472_v30 = vcombine.low %v8208_v44, %v8210_v21 }
 0x27c   :  { %v708_v0 = vadd.f32 %v707_v60, %v8060_v38  ;;  %v781_v9 = vadd.f32 %v780_v6, %v8070_v4  ;;  %v709_v23 = vpop.f32.mrb[25].mxu1  ;;  %v782_v3 = vpop.f32.mrb[33].mxu0  ;;  %4102 = vmatprep.subr.bf16.mxu1 %v6465_v5  ;;  %4394 = vmatprep.subr.bf16.mxu0 %v6467_v40  ;;  %v8234_v14 = vld [vmem:[#allocation10 + $0x728] sm:$0xff]  ;;  %v6474_v33 = vcombine.low %v1112_v61, %v1116_v31  ;;  %v8250_v61 = vld [vmem:[#allocation10 + $0x760] sm:$0xff] }
 0x27d   :  { %v710_v46 = vadd.f32 %v709_v23, %v8081_v22  ;;  %v783_v1 = vadd.f32 %v782_v3, %v8113_v63  ;;  %v711_v45 = vpop.f32.mrb[26].mxu1  ;;  %v784_v15 = vpop.f32.mrb[34].mxu0  ;;  %v6481_v60 = vcombine.high %v8226_v24, %v8228_v18  ;;  %v6483_v3 = vcombine.high %v8232_v62, %v8234_v14 }
 0x27e   :  { %v712_v19 = vadd.f32 %v711_v45, %v8060_v38  ;;  %v785_v17 = vadd.f32 %v784_v15, %v8070_v4  ;;  %v713_v5 = vpop.f32.mrb[27].mxu1  ;;  %v786_v40 = vpop.f32.mrb[35].mxu0  ;;  %v835_v44 = vmax.f32 %v708_v0, 0.0  ;;  %v837_v21 = vmax.f32 %v781_v9, 0.0  ;;  %v8248_v15 = vld [vmem:[#allocation10 + $0x740] sm:$0xff] }
 0x27f   :  { %v714_v6 = vadd.f32 %v713_v5, %v8081_v22  ;;  %v787_v23 = vadd.f32 %v786_v40, %v8113_v63  ;;  %4103 = vmatpush1.bf16.msra.mxu1 %v6464_v53  ;;  %4395 = vmatpush1.bf16.msra.mxu0 %v6466_v54  ;;  %v836_v31 = vmax.f32 %v710_v46, 0.0  ;;  %v838_v27 = vmax.f32 %v783_v1, 0.0  ;;  %v1128_v40 = vld [vmem:[#allocation10 + $0x748] sm:$0xff] }
 0x280   :  { %v843_v45 = vmax.f32 %v712_v19, 0.0  ;;  %v845_v2 = vmax.f32 %v785_v17, 0.0  ;;  %4104 = vmatprep.subr.bf16.mxu1 %v6473_v8  ;;  %4396 = vmatprep.subr.bf16.mxu0 %v6475_v48  ;;  %v1132_v53 = vld [vmem:[#allocation10 + $0x768] sm:$0xff]  ;;  %v6480_v0 = vcombine.low %v8226_v24, %v8228_v18  ;;  %v6482_v8 = vcombine.low %v8232_v62, %v8234_v14  ;;  %v1135_v17 = vld [vmem:[#allocation10 + $0x780] sm:$0xff] }
 0x281   :  { %v844_v5 = vmax.f32 %v714_v6, 0.0  ;;  %v846_v16 = vmax.f32 %v787_v23, 0.0  ;;  %v6489_v19 = vcombine.high %v8248_v15, %v8250_v61  ;;  %v6491_v62 = vcombine.high %v1128_v40, %v1132_v53 }
 0x282   :  { %v8252_v54 = vpack.c.bf16 %v843_v45, %v835_v44  ;;  %v8254_v59 = vpack.c.bf16 %v845_v2, %v837_v21  ;;  %v1139_v2 = vld [vmem:[#allocation10 + $0x7a0] sm:$0xff]  ;;  %v6488_v21 = vcombine.low %v8248_v15, %v8250_v61 }
 0x283   :  { %v8260_v9 = vpack.c.bf16 %v844_v5, %v836_v31  ;;  %v8262_v48 = vpack.c.bf16 %v846_v16, %v838_v27  ;;  %4105 = vmatpush1.bf16.msra.mxu1 %v6472_v30  ;;  %4397 = vmatpush1.bf16.msra.mxu0 %v6474_v33  ;;  %v717_v46 = vpop.f32.mrb[28].mxu1  ;;  %v790_v1 = vpop.f32.mrb[36].mxu0  ;;  %v1136_v16 = vld [vmem:[#allocation10 + $0x788] sm:$0xff]  ;;  %v1147_v15 = vld [vmem:[#allocation10 + $0x7e0] sm:$0xff] }
 0x284   :  { %v718_v6 = vadd.f32 %v717_v46, %v8060_v38  ;;  %v791_v24 = vadd.f32 %v790_v1, %v8070_v4  ;;  %v719_v18 = vpop.f32.mrb[29].mxu1  ;;  %v792_v23 = vpop.f32.mrb[37].mxu0  ;;  %4106 = vmatprep.subr.bf16.mxu1 %v6481_v60  ;;  %4398 = vmatprep.subr.bf16.mxu0 %v6483_v3  ;;  %v1140_v27 = vld [vmem:[#allocation10 + $0x7a8] sm:$0xff]  ;;  %v6490_v60 = vcombine.low %v1128_v40, %v1132_v53 }
 0x285   :  { %v720_v14 = vadd.f32 %v719_v18, %v8081_v22  ;;  %v793_v30 = vadd.f32 %v792_v23, %v8113_v63  ;;  %v721_v33 = vpop.f32.mrb[30].mxu1  ;;  %v794_v44 = vpop.f32.mrb[38].mxu0  ;;  %v6497_v3 = vcombine.high %v1135_v17, %v1139_v2  ;;  %v6499_v18 = vcombine.high %v1136_v16, %v1140_v27  ;;  %v1144_v53 = vld [vmem:[#allocation10 + $0x7c8] sm:$0xff] }
 0x286   :  { %v722_v45 = vadd.f32 %v721_v33, %v8060_v38  ;;  %v795_v31 = vadd.f32 %v794_v44, %v8070_v4  ;;  %v723_v5 = vpop.f32.mrb[31].mxu1  ;;  %v796_v46 = vpop.f32.mrb[39].mxu0  ;;  %v851_v23 = vmax.f32 %v718_v6, 0.0  ;;  %v853_v57 = vmax.f32 %v791_v24, 0.0  ;;  %v1143_v38 = vld [vmem:[#allocation10 + $0x7c0] sm:$0xff]  ;;  %v1148_v44 = vld [vmem:[#allocation10 + $0x7e8] sm:$0xff] }
 0x287   :  { %v724_v1 = vadd.f32 %v723_v5, %v8081_v22  ;;  %v797_v58 = vadd.f32 %v796_v46, %v8113_v63  ;;  %4107 = vmatpush1.bf16.msra.mxu1 %v6480_v0  ;;  %4399 = vmatpush1.bf16.msra.mxu0 %v6482_v8  ;;  %v852_v4 = vmax.f32 %v720_v14, 0.0  ;;  %v854_v61 = vmax.f32 %v793_v30, 0.0  ;;  %v1151_v14 = vld [vmem:[#allocation10 + $0x800] sm:$0xff]  ;;  %v1152_v30 = vld [vmem:[#allocation10 + $0x808] sm:$0xff] }
 0x288   :  { %v859_v56 = vmax.f32 %v722_v45, 0.0  ;;  %v861_v55 = vmax.f32 %v795_v31, 0.0  ;;  %4108 = vmatprep.subr.bf16.mxu1 %v6489_v19  ;;  %4400 = vmatprep.subr.bf16.mxu0 %v6491_v62  ;;  %v6496_v0 = vcombine.low %v1135_v17, %v1139_v2  ;;  %v6498_v19 = vcombine.low %v1136_v16, %v1140_v27  ;;  %v1156_v45 = vld [vmem:[#allocation10 + $0x828] sm:$0xff]  ;;  %v1159_v2 = vld [vmem:[#allocation10 + $0x840] sm:$0xff] }
 0x289   :  { %v860_v33 = vmax.f32 %v724_v1, 0.0  ;;  %v862_v40 = vmax.f32 %v797_v58, 0.0  ;;  %v6505_v24 = vcombine.high %v1143_v38, %v1147_v15  ;;  %v6507_v62 = vcombine.high %v1144_v53, %v1148_v44  ;;  %v1155_v58 = vld [vmem:[#allocation10 + $0x820] sm:$0xff]  ;;  %v1160_v31 = vld [vmem:[#allocation10 + $0x848] sm:$0xff] }
 0x28a   :  { %v8276_v22 = vpack.c.bf16 %v859_v56, %v851_v23  ;;  %v8278_v63 = vpack.c.bf16 %v861_v55, %v853_v57  ;;  %v6504_v55 = vcombine.low %v1143_v38, %v1147_v15  ;;  %v6506_v56 = vcombine.low %v1144_v53, %v1148_v44  ;;  %v1164_v16 = vld [vmem:[#allocation10 + $0x868] sm:$0xff]  ;;  %v1171_v1 = vld [vmem:[#allocation10 + $0x8a0] sm:$0xff] }
 0x28b   :  { %v8280_v8 = vpack.c.bf16 %v860_v33, %v852_v4  ;;  %v8282_v6 = vpack.c.bf16 %v862_v40, %v854_v61  ;;  %4109 = vmatpush1.bf16.msra.mxu1 %v6488_v21  ;;  %4401 = vmatpush1.bf16.msra.mxu0 %v6490_v60  ;;  %v6513_v57 = vcombine.high %v1151_v14, %v1155_v58  ;;  %v1163_v21 = vld [vmem:[#allocation10 + $0x860] sm:$0xff]  ;;  %v1172_v23 = vld [vmem:[#allocation10 + $0x8a8] sm:$0xff] }
 0x28c   :  { %4110 = vmatprep.subr.bf16.mxu1 %v6497_v3  ;;  %4402 = vmatprep.subr.bf16.mxu0 %v6499_v18  ;;  %v6515_v17 = vcombine.high %v1152_v30, %v1156_v45  ;;  %v6512_v27 = vcombine.low %v1151_v14, %v1155_v58  ;;  %v6514_v5 = vcombine.low %v1152_v30, %v1156_v45  ;;  %v1167_v3 = vld [vmem:[#allocation10 + $0x880] sm:$0xff]  ;;  %v1168_v18 = vld [vmem:[#allocation10 + $0x888] sm:$0xff] }
 0x28d   :  { %v6521_v46 = vcombine.high %v1159_v2, %v1163_v21  ;;  %v6523_v60 = vcombine.high %v1160_v31, %v1164_v16  ;;  %v6520_v38 = vcombine.low %v1159_v2, %v1163_v21  ;;  %v6522_v15 = vcombine.low %v1160_v31, %v1164_v16  ;;  %v1175_v33 = vld [vmem:[#allocation10 + $0x8c0] sm:$0xff]  ;;  %v1176_v53 = vld [vmem:[#allocation10 + $0x8c8] sm:$0xff] }
 0x28e   :  { %v6529_v4 = vcombine.high %v1167_v3, %v1171_v1  ;;  %v6531_v61 = vcombine.high %v1168_v18, %v1172_v23  ;;  %v1179_v40 = vld [vmem:[#allocation10 + $0x8e0] sm:$0xff]  ;;  %v1180_v44 = vld [vmem:[#allocation10 + $0x8e8] sm:$0xff] }
 0x28f   :  { %4111 = vmatpush1.bf16.msra.mxu1 %v6496_v0  ;;  %4403 = vmatpush1.bf16.msra.mxu0 %v6498_v19  ;;  %v6528_v0 = vcombine.low %v1167_v3, %v1171_v1  ;;  %v6530_v19 = vcombine.low %v1168_v18, %v1172_v23  ;;  %v1183_v14 = vld [vmem:[#allocation10 + $0x900] sm:$0xff]  ;;  %v1184_v30 = vld [vmem:[#allocation10 + $0x908] sm:$0xff] }
 0x290   :  { %4112 = vmatprep.subr.bf16.mxu1 %v6505_v24  ;;  %4404 = vmatprep.subr.bf16.mxu0 %v6507_v62  ;;  %v6537_v24 = vcombine.high %v1175_v33, %v1179_v40  ;;  %v6539_v62 = vcombine.high %v1176_v53, %v1180_v44  ;;  %v1187_v58 = vld [vmem:[#allocation10 + $0x920] sm:$0xff]  ;;  %v1188_v45 = vld [vmem:[#allocation10 + $0x928] sm:$0xff] }
 0x291   :  { %v1191_v2 = vld [vmem:[#allocation10 + $0x940] sm:$0xff]  ;;  %v1192_v31 = vld [vmem:[#allocation10 + $0x948] sm:$0xff] }
 0x292   :  { %v1195_v21 = vld [vmem:[#allocation10 + $0x960] sm:$0xff]  ;;  %v1196_v16 = vld [vmem:[#allocation10 + $0x968] sm:$0xff] }
 0x293   :  { %4113 = vmatpush1.bf16.msra.mxu1 %v6504_v55  ;;  %4405 = vmatpush1.bf16.msra.mxu0 %v6506_v56  ;;  %v6536_v55 = vcombine.low %v1175_v33, %v1179_v40  ;;  %v6538_v56 = vcombine.low %v1176_v53, %v1180_v44  ;;  %v1199_v3 = vld [vmem:[#allocation10 + $0x980] sm:$0xff]  ;;  %v1200_v18 = vld [vmem:[#allocation10 + $0x988] sm:$0xff] }
 0x294   :  { %4155 = vmatprep.subr.bf16.mxu1 %v6513_v57  ;;  %4447 = vmatprep.subr.bf16.mxu0 %v6515_v17  ;;  %v6545_v57 = vcombine.high %v1183_v14, %v1187_v58  ;;  %v6547_v17 = vcombine.high %v1184_v30, %v1188_v45  ;;  %v1203_v1 = vld [vmem:[#allocation10 + $0x9a0] sm:$0xff]  ;;  %v1204_v23 = vld [vmem:[#allocation10 + $0x9a8] sm:$0xff] }
 0x295   :  { %v1207_v33 = vld [vmem:[#allocation10 + $0x9c0] sm:$0xff]  ;;  %v1208_v53 = vld [vmem:[#allocation10 + $0x9c8] sm:$0xff] }
 0x296   :  { %4115 = vmatmul.mubr.bf16.vlgmr.msra.gmra.mrb[32].mxu1 %v7924_v35  ;;  %4407 = vmatmul.mubr.bf16.vlgmr.msra.gmra.mrb[40].mxu0 %v7924_v35  ;;  %v1211_v40 = vld [vmem:[#allocation10 + $0x9e0] sm:$0xff]  ;;  %v1212_v44 = vld [vmem:[#allocation10 + $0x9e8] sm:$0xff] }
 0x297   :  { %4124 = vmatprep.mubr.bf16.mxu1 %v7992_v39  ;;  %4156 = vmatpush1.bf16.msra.mxu1 %v6512_v27  ;;  %v6544_v27 = vcombine.low %v1183_v14, %v1187_v58  ;;  %v1215_v14 = vld [vmem:[#allocation10 + $0xa00] sm:$0xff] }
 0x298   :  { %4416 = vmatprep.mubr.bf16.mxu0 %v7992_v39  ;;  %4448 = vmatpush1.bf16.msra.mxu0 %v6514_v5  ;;  %v6546_v5 = vcombine.low %v1184_v30, %v1188_v45  ;;  %v1219_v58 = vld [vmem:[#allocation10 + $0xa20] sm:$0xff]  ;;  %v1216_v30 = vld [vmem:[#allocation10 + $0xa08] sm:$0xff] }
 0x299   :  { %4157 = vmatprep.subr.bf16.mxu1 %v6521_v46  ;;  %4449 = vmatprep.subr.bf16.mxu0 %v6523_v60  ;;  %v6553_v46 = vcombine.high %v1191_v2, %v1195_v21  ;;  %v6555_v60 = vcombine.high %v1192_v31, %v1196_v16  ;;  %v1220_v45 = vld [vmem:[#allocation10 + $0xa28] sm:$0xff] }
 0x29b   :  { %4158 = vmatpush1.bf16.msra.mxu1 %v6520_v38  ;;  %v6552_v38 = vcombine.low %v1191_v2, %v1195_v21  ;;  %v1223_v2 = vld [vmem:[#allocation10 + $0xa40] sm:$0xff] }
 0x29c   :  { %4450 = vmatpush1.bf16.msra.mxu0 %v6522_v15  ;;  %4159 = vmatprep.subr.bf16.mxu1 %v6529_v4  ;;  %v6554_v15 = vcombine.low %v1192_v31, %v1196_v16  ;;  %v6561_v4 = vcombine.high %v1199_v3, %v1203_v1  ;;  %v1227_v21 = vld [vmem:[#allocation10 + $0xa60] sm:$0xff]  ;;  %v1224_v31 = vld [vmem:[#allocation10 + $0xa48] sm:$0xff] }
 0x29d   :  { %4451 = vmatprep.subr.bf16.mxu0 %v6531_v61  ;;  %v6563_v61 = vcombine.high %v1200_v18, %v1204_v23  ;;  %v1228_v16 = vld [vmem:[#allocation10 + $0xa68] sm:$0xff] }
 0x29e   :  { %4125 = vmatmul.mubr.bf16.gmra.mrb[36].mxu1 %v7984_v52  ;;  %4417 = vmatmul.mubr.bf16.gmra.mrb[44].mxu0 %v7984_v52 }
 0x29f   :  { %4134 = vmatprep.mubr.bf16.mxu1 %v8055_v7  ;;  %4160 = vmatpush1.bf16.msra.mxu1 %v6528_v0  ;;  %v6560_v0 = vcombine.low %v1199_v3, %v1203_v1  ;;  %v1231_v3 = vld [vmem:[#allocation10 + $0xa80] sm:$0xff] }
 0x2a0   :  { %4426 = vmatprep.mubr.bf16.mxu0 %v8055_v7  ;;  %4452 = vmatpush1.bf16.msra.mxu0 %v6530_v19  ;;  %v6562_v19 = vcombine.low %v1200_v18, %v1204_v23  ;;  %v1235_v1 = vld [vmem:[#allocation10 + $0xaa0] sm:$0xff]  ;;  %v1232_v18 = vld [vmem:[#allocation10 + $0xa88] sm:$0xff] }
 0x2a1   :  { %4161 = vmatprep.subr.bf16.mxu1 %v6537_v24  ;;  %4453 = vmatprep.subr.bf16.mxu0 %v6539_v62  ;;  %v6569_v24 = vcombine.high %v1207_v33, %v1211_v40  ;;  %v6571_v62 = vcombine.high %v1208_v53, %v1212_v44  ;;  %v1236_v23 = vld [vmem:[#allocation10 + $0xaa8] sm:$0xff] }
 0x2a3   :  { %4162 = vmatpush1.bf16.msra.mxu1 %v6536_v55  ;;  %v6568_v55 = vcombine.low %v1207_v33, %v1211_v40  ;;  %v1239_v33 = vld [vmem:[#allocation10 + $0xac0] sm:$0xff] }
 0x2a4   :  { %4454 = vmatpush1.bf16.msra.mxu0 %v6538_v56  ;;  %4163 = vmatprep.subr.bf16.mxu1 %v6545_v57  ;;  %v6570_v56 = vcombine.low %v1208_v53, %v1212_v44  ;;  %v6577_v57 = vcombine.high %v1215_v14, %v1219_v58  ;;  %v1243_v40 = vld [vmem:[#allocation10 + $0xae0] sm:$0xff]  ;;  %v1240_v53 = vld [vmem:[#allocation10 + $0xac8] sm:$0xff] }
 0x2a5   :  { %4455 = vmatprep.subr.bf16.mxu0 %v6547_v17  ;;  %v6579_v17 = vcombine.high %v1216_v30, %v1220_v45  ;;  %v1244_v44 = vld [vmem:[#allocation10 + $0xae8] sm:$0xff] }
 0x2a6   :  { %4135 = vmatmul.mubr.bf16.gmra.mrb[40].mxu1 %v8041_v11  ;;  %4427 = vmatmul.mubr.bf16.gmra.mrb[48].mxu0 %v8041_v11 }
 0x2a7   :  { %4144 = vmatprep.mubr.bf16.mxu1 %v8131_v36  ;;  %4164 = vmatpush1.bf16.msra.mxu1 %v6544_v27  ;;  %v6576_v27 = vcombine.low %v1215_v14, %v1219_v58  ;;  %v1247_v14 = vld [vmem:[#allocation10 + $0xb00] sm:$0xff] }
 0x2a8   :  { %4436 = vmatprep.mubr.bf16.mxu0 %v8131_v36  ;;  %4456 = vmatpush1.bf16.msra.mxu0 %v6546_v5  ;;  %v6578_v5 = vcombine.low %v1216_v30, %v1220_v45  ;;  %v1251_v58 = vld [vmem:[#allocation10 + $0xb20] sm:$0xff]  ;;  %v1248_v30 = vld [vmem:[#allocation10 + $0xb08] sm:$0xff] }
 0x2a9   :  { %4165 = vmatprep.subr.bf16.mxu1 %v6553_v46  ;;  %4457 = vmatprep.subr.bf16.mxu0 %v6555_v60  ;;  %v6585_v46 = vcombine.high %v1223_v2, %v1227_v21  ;;  %v6587_v60 = vcombine.high %v1224_v31, %v1228_v16  ;;  %v1252_v45 = vld [vmem:[#allocation10 + $0xb28] sm:$0xff] }
 0x2ab   :  { %4166 = vmatpush1.bf16.msra.mxu1 %v6552_v38  ;;  %v6584_v38 = vcombine.low %v1223_v2, %v1227_v21  ;;  %v1255_v2 = vld [vmem:[#allocation10 + $0xb40] sm:$0xff] }
 0x2ac   :  { %4458 = vmatpush1.bf16.msra.mxu0 %v6554_v15  ;;  %4167 = vmatprep.subr.bf16.mxu1 %v6561_v4  ;;  %v6586_v15 = vcombine.low %v1224_v31, %v1228_v16  ;;  %v6593_v4 = vcombine.high %v1231_v3, %v1235_v1  ;;  %v1259_v21 = vld [vmem:[#allocation10 + $0xb60] sm:$0xff]  ;;  %v1256_v31 = vld [vmem:[#allocation10 + $0xb48] sm:$0xff] }
 0x2ad   :  { %4459 = vmatprep.subr.bf16.mxu0 %v6563_v61  ;;  %v6595_v61 = vcombine.high %v1232_v18, %v1236_v23  ;;  %v1260_v16 = vld [vmem:[#allocation10 + $0xb68] sm:$0xff] }
 0x2ae   :  { %4145 = vmatmul.mubr.bf16.gmra.mrb[44].mxu1 %v8123_v43  ;;  %4437 = vmatmul.mubr.bf16.gmra.mrb[52].mxu0 %v8123_v43 }
 0x2af   :  { %4168 = vmatpush1.bf16.msra.mxu1 %v6560_v0  ;;  %4187 = vmatprep.mubr.bf16.mxu1 %v8180_v51  ;;  %v6592_v0 = vcombine.low %v1231_v3, %v1235_v1  ;;  %v1263_v3 = vld [vmem:[#allocation10 + $0xb80] sm:$0xff] }
 0x2b0   :  { %4460 = vmatpush1.bf16.msra.mxu0 %v6562_v19  ;;  %4479 = vmatprep.mubr.bf16.mxu0 %v8180_v51  ;;  %v6594_v19 = vcombine.low %v1232_v18, %v1236_v23  ;;  %v1267_v1 = vld [vmem:[#allocation10 + $0xba0] sm:$0xff]  ;;  %v1264_v18 = vld [vmem:[#allocation10 + $0xb88] sm:$0xff] }
 0x2b1   :  { %4169 = vmatprep.subr.bf16.mxu1 %v6569_v24  ;;  %4461 = vmatprep.subr.bf16.mxu0 %v6571_v62  ;;  %v6601_v24 = vcombine.high %v1239_v33, %v1243_v40  ;;  %v6603_v62 = vcombine.high %v1240_v53, %v1244_v44  ;;  %v1268_v23 = vld [vmem:[#allocation10 + $0xba8] sm:$0xff] }
 0x2b3   :  { %4170 = vmatpush1.bf16.msra.mxu1 %v6568_v55  ;;  %v6600_v55 = vcombine.low %v1239_v33, %v1243_v40  ;;  %v1271_v33 = vld [vmem:[#allocation10 + $0xbc0] sm:$0xff] }
 0x2b4   :  { %4462 = vmatpush1.bf16.msra.mxu0 %v6570_v56  ;;  %4171 = vmatprep.subr.bf16.mxu1 %v6577_v57  ;;  %v6602_v56 = vcombine.low %v1240_v53, %v1244_v44  ;;  %v6609_v57 = vcombine.high %v1247_v14, %v1251_v58  ;;  %v1275_v40 = vld [vmem:[#allocation10 + $0xbe0] sm:$0xff]  ;;  %v1272_v53 = vld [vmem:[#allocation10 + $0xbc8] sm:$0xff] }
 0x2b5   :  { %4463 = vmatprep.subr.bf16.mxu0 %v6579_v17  ;;  %v6611_v17 = vcombine.high %v1248_v30, %v1252_v45  ;;  %v1276_v44 = vld [vmem:[#allocation10 + $0xbe8] sm:$0xff] }
 0x2b7   :  { %4172 = vmatpush1.bf16.msra.mxu1 %v6576_v27  ;;  %v6608_v27 = vcombine.low %v1247_v14, %v1251_v58  ;;  %v1279_v14 = vld [vmem:[#allocation10 + $0xc00] sm:$0xff] }
 0x2b8   :  { %4464 = vmatpush1.bf16.msra.mxu0 %v6578_v5  ;;  %4173 = vmatprep.subr.bf16.mxu1 %v6585_v46  ;;  %v6610_v5 = vcombine.low %v1248_v30, %v1252_v45  ;;  %v6617_v46 = vcombine.high %v1255_v2, %v1259_v21  ;;  %v1283_v58 = vld [vmem:[#allocation10 + $0xc20] sm:$0xff]  ;;  %v1280_v30 = vld [vmem:[#allocation10 + $0xc08] sm:$0xff] }
 0x2b9   :  { %4465 = vmatprep.subr.bf16.mxu0 %v6587_v60  ;;  %v6619_v60 = vcombine.high %v1256_v31, %v1260_v16  ;;  %v1284_v45 = vld [vmem:[#allocation10 + $0xc28] sm:$0xff] }
 0x2bb   :  { %4174 = vmatpush1.bf16.msra.mxu1 %v6584_v38  ;;  %v6616_v38 = vcombine.low %v1255_v2, %v1259_v21  ;;  %v1287_v2 = vld [vmem:[#allocation10 + $0xc40] sm:$0xff] }
 0x2bc   :  { %4466 = vmatpush1.bf16.msra.mxu0 %v6586_v15  ;;  %4175 = vmatprep.subr.bf16.mxu1 %v6593_v4  ;;  %v6618_v15 = vcombine.low %v1256_v31, %v1260_v16  ;;  %v6625_v4 = vcombine.high %v1263_v3, %v1267_v1  ;;  %v1291_v21 = vld [vmem:[#allocation10 + $0xc60] sm:$0xff]  ;;  %v1288_v31 = vld [vmem:[#allocation10 + $0xc48] sm:$0xff] }
 0x2bd   :  { %4467 = vmatprep.subr.bf16.mxu0 %v6595_v61  ;;  %v6627_v61 = vcombine.high %v1264_v18, %v1268_v23  ;;  %v1292_v16 = vld [vmem:[#allocation10 + $0xc68] sm:$0xff] }
 0x2bf   :  { %4176 = vmatpush1.bf16.msra.mxu1 %v6592_v0  ;;  %v6624_v0 = vcombine.low %v1263_v3, %v1267_v1  ;;  %v1295_v3 = vld [vmem:[#allocation10 + $0xc80] sm:$0xff] }
 0x2c0   :  { %4468 = vmatpush1.bf16.msra.mxu0 %v6594_v19  ;;  %4177 = vmatprep.subr.bf16.mxu1 %v6601_v24  ;;  %v6626_v19 = vcombine.low %v1264_v18, %v1268_v23  ;;  %v6633_v24 = vcombine.high %v1271_v33, %v1275_v40  ;;  %v1299_v1 = vld [vmem:[#allocation10 + $0xca0] sm:$0xff]  ;;  %v1296_v18 = vld [vmem:[#allocation10 + $0xc88] sm:$0xff] }
 0x2c1   :  { %4469 = vmatprep.subr.bf16.mxu0 %v6603_v62  ;;  %v6635_v62 = vcombine.high %v1272_v53, %v1276_v44  ;;  %v1300_v23 = vld [vmem:[#allocation10 + $0xca8] sm:$0xff] }
 0x2c3   :  { %4178 = vmatpush1.bf16.msra.mxu1 %v6600_v55  ;;  %v6632_v55 = vcombine.low %v1271_v33, %v1275_v40  ;;  %v1303_v33 = vld [vmem:[#allocation10 + $0xcc0] sm:$0xff] }
 0x2c4   :  { %4470 = vmatpush1.bf16.msra.mxu0 %v6602_v56  ;;  %4179 = vmatprep.subr.bf16.mxu1 %v6609_v57  ;;  %v6634_v56 = vcombine.low %v1272_v53, %v1276_v44  ;;  %v6641_v57 = vcombine.high %v1279_v14, %v1283_v58  ;;  %v1307_v40 = vld [vmem:[#allocation10 + $0xce0] sm:$0xff]  ;;  %v1304_v53 = vld [vmem:[#allocation10 + $0xcc8] sm:$0xff] }
 0x2c5   :  { %4471 = vmatprep.subr.bf16.mxu0 %v6611_v17  ;;  %v6643_v17 = vcombine.high %v1280_v30, %v1284_v45  ;;  %v1308_v44 = vld [vmem:[#allocation10 + $0xce8] sm:$0xff] }
 0x2c7   :  { %4180 = vmatpush1.bf16.msra.mxu1 %v6608_v27  ;;  %v6640_v27 = vcombine.low %v1279_v14, %v1283_v58  ;;  %v1311_v14 = vld [vmem:[#allocation10 + $0xd00] sm:$0xff] }
 0x2c8   :  { %4472 = vmatpush1.bf16.msra.mxu0 %v6610_v5  ;;  %4181 = vmatprep.subr.bf16.mxu1 %v6617_v46  ;;  %v6642_v5 = vcombine.low %v1280_v30, %v1284_v45  ;;  %v6649_v46 = vcombine.high %v1287_v2, %v1291_v21  ;;  %v1315_v58 = vld [vmem:[#allocation10 + $0xd20] sm:$0xff]  ;;  %v1312_v30 = vld [vmem:[#allocation10 + $0xd08] sm:$0xff] }
 0x2c9   :  { %4473 = vmatprep.subr.bf16.mxu0 %v6619_v60  ;;  %v6651_v60 = vcombine.high %v1288_v31, %v1292_v16  ;;  %v1316_v45 = vld [vmem:[#allocation10 + $0xd28] sm:$0xff] }
 0x2cb   :  { %4182 = vmatpush1.bf16.msra.mxu1 %v6616_v38  ;;  %v6648_v38 = vcombine.low %v1287_v2, %v1291_v21  ;;  %v1319_v2 = vld [vmem:[#allocation10 + $0xd40] sm:$0xff] }
 0x2cc   :  { %4474 = vmatpush1.bf16.msra.mxu0 %v6618_v15  ;;  %4183 = vmatprep.subr.bf16.mxu1 %v6625_v4  ;;  %v6650_v15 = vcombine.low %v1288_v31, %v1292_v16  ;;  %v6657_v4 = vcombine.high %v1295_v3, %v1299_v1  ;;  %v1323_v21 = vld [vmem:[#allocation10 + $0xd60] sm:$0xff]  ;;  %v1320_v31 = vld [vmem:[#allocation10 + $0xd48] sm:$0xff] }
 0x2cd   :  { %4475 = vmatprep.subr.bf16.mxu0 %v6627_v61  ;;  %v6659_v61 = vcombine.high %v1296_v18, %v1300_v23  ;;  %v1324_v16 = vld [vmem:[#allocation10 + $0xd68] sm:$0xff] }
 0x2cf   :  { %4184 = vmatpush1.bf16.msra.mxu1 %v6624_v0  ;;  %v6656_v0 = vcombine.low %v1295_v3, %v1299_v1  ;;  %v1327_v3 = vld [vmem:[#allocation10 + $0xd80] sm:$0xff] }
 0x2d0   :  { %4476 = vmatpush1.bf16.msra.mxu0 %v6626_v19  ;;  %4185 = vmatprep.subr.bf16.mxu1 %v6633_v24  ;;  %v6658_v19 = vcombine.low %v1296_v18, %v1300_v23  ;;  %v6665_v24 = vcombine.high %v1303_v33, %v1307_v40  ;;  %v1331_v1 = vld [vmem:[#allocation10 + $0xda0] sm:$0xff]  ;;  %v1328_v18 = vld [vmem:[#allocation10 + $0xd88] sm:$0xff] }
 0x2d1   :  { %4477 = vmatprep.subr.bf16.mxu0 %v6635_v62  ;;  %v6667_v62 = vcombine.high %v1304_v53, %v1308_v44  ;;  %v1332_v23 = vld [vmem:[#allocation10 + $0xda8] sm:$0xff] }
 0x2d3   :  { %4186 = vmatpush1.bf16.msra.mxu1 %v6632_v55  ;;  %v6664_v55 = vcombine.low %v1303_v33, %v1307_v40  ;;  %v1335_v33 = vld [vmem:[#allocation10 + $0xdc0] sm:$0xff] }
 0x2d4   :  { %4478 = vmatpush1.bf16.msra.mxu0 %v6634_v56  ;;  %4228 = vmatprep.subr.bf16.mxu1 %v6641_v57  ;;  %v6666_v56 = vcombine.low %v1304_v53, %v1308_v44  ;;  %v6673_v57 = vcombine.high %v1311_v14, %v1315_v58  ;;  %v1339_v40 = vld [vmem:[#allocation10 + $0xde0] sm:$0xff]  ;;  %v1336_v53 = vld [vmem:[#allocation10 + $0xdc8] sm:$0xff] }
 0x2d5   :  { %4520 = vmatprep.subr.bf16.mxu0 %v6643_v17  ;;  %v6675_v17 = vcombine.high %v1312_v30, %v1316_v45  ;;  %v1340_v44 = vld [vmem:[#allocation10 + $0xde8] sm:$0xff] }
 0x2d6   :  { %4188 = vmatmul.mubr.bf16.vlgmr.msra.gmra.mrb[32].mxu1 %v8172_v28 }
 0x2d7   :  { %4480 = vmatmul.mubr.bf16.vlgmr.msra.gmra.mrb[40].mxu0 %v8172_v28  ;;  %4197 = vmatprep.mubr.bf16.mxu1 %v8220_v49 }
 0x2d8   :  { %4229 = vmatpush1.bf16.msra.mxu1 %v6640_v27  ;;  %4489 = vmatprep.mubr.bf16.mxu0 %v8220_v49  ;;  %v6672_v27 = vcombine.low %v1311_v14, %v1315_v58  ;;  %v1343_v14 = vld [vmem:[#allocation10 + $0xe00] sm:$0xff] }
 0x2d9   :  { %4521 = vmatpush1.bf16.msra.mxu0 %v6642_v5  ;;  %4230 = vmatprep.subr.bf16.mxu1 %v6649_v46  ;;  %v6674_v5 = vcombine.low %v1312_v30, %v1316_v45  ;;  %v6681_v46 = vcombine.high %v1319_v2, %v1323_v21  ;;  %v1347_v58 = vld [vmem:[#allocation10 + $0xe20] sm:$0xff]  ;;  %v1344_v30 = vld [vmem:[#allocation10 + $0xe08] sm:$0xff] }
 0x2da   :  { %4522 = vmatprep.subr.bf16.mxu0 %v6651_v60  ;;  %v6683_v60 = vcombine.high %v1320_v31, %v1324_v16  ;;  %v1348_v45 = vld [vmem:[#allocation10 + $0xe28] sm:$0xff] }
 0x2dc   :  { %4231 = vmatpush1.bf16.msra.mxu1 %v6648_v38  ;;  %v6680_v38 = vcombine.low %v1319_v2, %v1323_v21  ;;  %v1351_v2 = vld [vmem:[#allocation10 + $0xe40] sm:$0xff] }
 0x2dd   :  { %4523 = vmatpush1.bf16.msra.mxu0 %v6650_v15  ;;  %4232 = vmatprep.subr.bf16.mxu1 %v6657_v4  ;;  %v6682_v15 = vcombine.low %v1320_v31, %v1324_v16  ;;  %v6689_v4 = vcombine.high %v1327_v3, %v1331_v1  ;;  %v1355_v21 = vld [vmem:[#allocation10 + $0xe60] sm:$0xff]  ;;  %v1352_v31 = vld [vmem:[#allocation10 + $0xe48] sm:$0xff] }
 0x2de   :  { %4198 = vmatmul.mubr.bf16.gmra.mrb[36].mxu1 %v8212_v47  ;;  %4524 = vmatprep.subr.bf16.mxu0 %v6659_v61  ;;  %v6691_v61 = vcombine.high %v1328_v18, %v1332_v23  ;;  %v1356_v16 = vld [vmem:[#allocation10 + $0xe68] sm:$0xff] }
 0x2df   :  { %4490 = vmatmul.mubr.bf16.gmra.mrb[44].mxu0 %v8212_v47  ;;  %4207 = vmatprep.mubr.bf16.mxu1 %v8260_v9 }
 0x2e0   :  { %4233 = vmatpush1.bf16.msra.mxu1 %v6656_v0  ;;  %4499 = vmatprep.mubr.bf16.mxu0 %v8260_v9  ;;  %v6688_v0 = vcombine.low %v1327_v3, %v1331_v1  ;;  %v1359_v3 = vld [vmem:[#allocation10 + $0xe80] sm:$0xff] }
 0x2e1   :  { %4525 = vmatpush1.bf16.msra.mxu0 %v6658_v19  ;;  %4234 = vmatprep.subr.bf16.mxu1 %v6665_v24  ;;  %v6690_v19 = vcombine.low %v1328_v18, %v1332_v23  ;;  %v6697_v24 = vcombine.high %v1335_v33, %v1339_v40  ;;  %v1363_v1 = vld [vmem:[#allocation10 + $0xea0] sm:$0xff]  ;;  %v1360_v18 = vld [vmem:[#allocation10 + $0xe88] sm:$0xff] }
 0x2e2   :  { %4526 = vmatprep.subr.bf16.mxu0 %v6667_v62  ;;  %v6699_v62 = vcombine.high %v1336_v53, %v1340_v44  ;;  %v1364_v23 = vld [vmem:[#allocation10 + $0xea8] sm:$0xff] }
 0x2e4   :  { %4235 = vmatpush1.bf16.msra.mxu1 %v6664_v55  ;;  %v6696_v55 = vcombine.low %v1335_v33, %v1339_v40  ;;  %v1367_v33 = vld [vmem:[#allocation10 + $0xec0] sm:$0xff] }
 0x2e5   :  { %4527 = vmatpush1.bf16.msra.mxu0 %v6666_v56  ;;  %4236 = vmatprep.subr.bf16.mxu1 %v6673_v57  ;;  %v6698_v56 = vcombine.low %v1336_v53, %v1340_v44  ;;  %v6705_v57 = vcombine.high %v1343_v14, %v1347_v58  ;;  %v1371_v40 = vld [vmem:[#allocation10 + $0xee0] sm:$0xff]  ;;  %v1368_v53 = vld [vmem:[#allocation10 + $0xec8] sm:$0xff] }
 0x2e6   :  { %4208 = vmatmul.mubr.bf16.gmra.mrb[40].mxu1 %v8252_v54  ;;  %4528 = vmatprep.subr.bf16.mxu0 %v6675_v17  ;;  %v6707_v17 = vcombine.high %v1344_v30, %v1348_v45  ;;  %v1372_v44 = vld [vmem:[#allocation10 + $0xee8] sm:$0xff] }
 0x2e7   :  { %4500 = vmatmul.mubr.bf16.gmra.mrb[48].mxu0 %v8252_v54  ;;  %4217 = vmatprep.mubr.bf16.mxu1 %v8280_v8 }
 0x2e8   :  { %4237 = vmatpush1.bf16.msra.mxu1 %v6672_v27  ;;  %4509 = vmatprep.mubr.bf16.mxu0 %v8280_v8  ;;  %v6704_v27 = vcombine.low %v1343_v14, %v1347_v58  ;;  %v1375_v14 = vld [vmem:[#allocation10 + $0xf00] sm:$0xff] }
 0x2e9   :  { %4529 = vmatpush1.bf16.msra.mxu0 %v6674_v5  ;;  %4238 = vmatprep.subr.bf16.mxu1 %v6681_v46  ;;  %v6706_v5 = vcombine.low %v1344_v30, %v1348_v45  ;;  %v6713_v46 = vcombine.high %v1351_v2, %v1355_v21  ;;  %v1379_v58 = vld [vmem:[#allocation10 + $0xf20] sm:$0xff]  ;;  %v1376_v30 = vld [vmem:[#allocation10 + $0xf08] sm:$0xff] }
 0x2ea   :  { %4530 = vmatprep.subr.bf16.mxu0 %v6683_v60  ;;  %v6715_v60 = vcombine.high %v1352_v31, %v1356_v16  ;;  %v1380_v45 = vld [vmem:[#allocation10 + $0xf28] sm:$0xff] }
 0x2ec   :  { %4239 = vmatpush1.bf16.msra.mxu1 %v6680_v38  ;;  %v6712_v38 = vcombine.low %v1351_v2, %v1355_v21  ;;  %v1383_v2 = vld [vmem:[#allocation10 + $0xf40] sm:$0xff] }
 0x2ed   :  { %4531 = vmatpush1.bf16.msra.mxu0 %v6682_v15  ;;  %4240 = vmatprep.subr.bf16.mxu1 %v6689_v4  ;;  %v6714_v15 = vcombine.low %v1352_v31, %v1356_v16  ;;  %v6721_v4 = vcombine.high %v1359_v3, %v1363_v1  ;;  %v1387_v21 = vld [vmem:[#allocation10 + $0xf60] sm:$0xff]  ;;  %v1384_v31 = vld [vmem:[#allocation10 + $0xf48] sm:$0xff] }
 0x2ee   :  { %4218 = vmatmul.mubr.bf16.gmra.mrb[44].mxu1 %v8276_v22  ;;  %4532 = vmatprep.subr.bf16.mxu0 %v6691_v61  ;;  %v6723_v61 = vcombine.high %v1360_v18, %v1364_v23  ;;  %v1388_v16 = vld [vmem:[#allocation10 + $0xf68] sm:$0xff] }
 0x2ef   :  { %4510 = vmatmul.mubr.bf16.gmra.mrb[52].mxu0 %v8276_v22  ;;  %4260 = vmatprep.mubr.bf16.mxu1 %v8182_v13 }
 0x2f0   :  { %4241 = vmatpush1.bf16.msra.mxu1 %v6688_v0  ;;  %4552 = vmatprep.mubr.bf16.mxu0 %v8182_v13  ;;  %v6720_v0 = vcombine.low %v1359_v3, %v1363_v1  ;;  %v1391_v3 = vld [vmem:[#allocation10 + $0xf80] sm:$0xff] }
 0x2f1   :  { %4533 = vmatpush1.bf16.msra.mxu0 %v6690_v19  ;;  %4242 = vmatprep.subr.bf16.mxu1 %v6697_v24  ;;  %v6722_v19 = vcombine.low %v1360_v18, %v1364_v23  ;;  %v6729_v24 = vcombine.high %v1367_v33, %v1371_v40  ;;  %v1395_v1 = vld [vmem:[#allocation10 + $0xfa0] sm:$0xff]  ;;  %v1392_v18 = vld [vmem:[#allocation10 + $0xf88] sm:$0xff] }
 0x2f2   :  { %4534 = vmatprep.subr.bf16.mxu0 %v6699_v62  ;;  %v6731_v62 = vcombine.high %v1368_v53, %v1372_v44  ;;  %v1396_v23 = vld [vmem:[#allocation10 + $0xfa8] sm:$0xff] }
 0x2f4   :  { %4243 = vmatpush1.bf16.msra.mxu1 %v6696_v55  ;;  %v6728_v55 = vcombine.low %v1367_v33, %v1371_v40  ;;  %v1399_v33 = vld [vmem:[#allocation10 + $0xfc0] sm:$0xff] }
 0x2f5   :  { %4535 = vmatpush1.bf16.msra.mxu0 %v6698_v56  ;;  %4244 = vmatprep.subr.bf16.mxu1 %v6705_v57  ;;  %v6730_v56 = vcombine.low %v1368_v53, %v1372_v44  ;;  %v6737_v57 = vcombine.high %v1375_v14, %v1379_v58  ;;  %v1403_v40 = vld [vmem:[#allocation10 + $0xfe0] sm:$0xff]  ;;  %v1400_v53 = vld [vmem:[#allocation10 + $0xfc8] sm:$0xff] }
 0x2f6   :  { %4536 = vmatprep.subr.bf16.mxu0 %v6707_v17  ;;  %v6739_v17 = vcombine.high %v1376_v30, %v1380_v45  ;;  %v1404_v44 = vld [vmem:[#allocation10 + $0xfe8] sm:$0xff] }
 0x2f8   :  { %4245 = vmatpush1.bf16.msra.mxu1 %v6704_v27  ;;  %v6736_v27 = vcombine.low %v1375_v14, %v1379_v58  ;;  %v897_v14 = vld [vmem:[#allocation10 + $0x10] sm:$0xff] }
 0x2f9   :  { %4537 = vmatpush1.bf16.msra.mxu0 %v6706_v5  ;;  %4246 = vmatprep.subr.bf16.mxu1 %v6713_v46  ;;  %v6738_v5 = vcombine.low %v1376_v30, %v1380_v45  ;;  %v6745_v46 = vcombine.high %v1383_v2, %v1387_v21  ;;  %v901_v58 = vld [vmem:[#allocation10 + $0x30] sm:$0xff]  ;;  %v898_v30 = vld [vmem:[#allocation10 + $0x18] sm:$0xff] }
 0x2fa   :  { %4538 = vmatprep.subr.bf16.mxu0 %v6715_v60  ;;  %v6747_v60 = vcombine.high %v1384_v31, %v1388_v16  ;;  %v902_v45 = vld [vmem:[#allocation10 + $0x38] sm:$0xff] }
 0x2fc   :  { %4247 = vmatpush1.bf16.msra.mxu1 %v6712_v38  ;;  %v6744_v38 = vcombine.low %v1383_v2, %v1387_v21  ;;  %v905_v2 = vld [vmem:[#allocation10 + $0x50] sm:$0xff] }
 0x2fd   :  { %4539 = vmatpush1.bf16.msra.mxu0 %v6714_v15  ;;  %4248 = vmatprep.subr.bf16.mxu1 %v6721_v4  ;;  %v6746_v15 = vcombine.low %v1384_v31, %v1388_v16  ;;  %v6753_v4 = vcombine.high %v1391_v3, %v1395_v1  ;;  %v909_v21 = vld [vmem:[#allocation10 + $0x70] sm:$0xff]  ;;  %v906_v31 = vld [vmem:[#allocation10 + $0x58] sm:$0xff] }
 0x2fe   :  { %4540 = vmatprep.subr.bf16.mxu0 %v6723_v61  ;;  %v6755_v61 = vcombine.high %v1392_v18, %v1396_v23  ;;  %v910_v16 = vld [vmem:[#allocation10 + $0x78] sm:$0xff] }
 0x300   :  { %4249 = vmatpush1.bf16.msra.mxu1 %v6720_v0  ;;  %v6752_v0 = vcombine.low %v1391_v3, %v1395_v1  ;;  %v913_v3 = vld [vmem:[#allocation10 + $0x90] sm:$0xff] }
 0x301   :  { %4541 = vmatpush1.bf16.msra.mxu0 %v6722_v19  ;;  %4250 = vmatprep.subr.bf16.mxu1 %v6729_v24  ;;  %v6754_v19 = vcombine.low %v1392_v18, %v1396_v23  ;;  %v6761_v24 = vcombine.high %v1399_v33, %v1403_v40  ;;  %v917_v1 = vld [vmem:[#allocation10 + $0xb0] sm:$0xff]  ;;  %v914_v18 = vld [vmem:[#allocation10 + $0x98] sm:$0xff] }
 0x302   :  { %4542 = vmatprep.subr.bf16.mxu0 %v6731_v62  ;;  %v6763_v62 = vcombine.high %v1400_v53, %v1404_v44  ;;  %v918_v23 = vld [vmem:[#allocation10 + $0xb8] sm:$0xff] }
 0x304   :  { %4251 = vmatpush1.bf16.msra.mxu1 %v6728_v55  ;;  %v6760_v55 = vcombine.low %v1399_v33, %v1403_v40  ;;  %v921_v33 = vld [vmem:[#allocation10 + $0xd0] sm:$0xff] }
 0x305   :  { %4543 = vmatpush1.bf16.msra.mxu0 %v6730_v56  ;;  %4252 = vmatprep.subr.bf16.mxu1 %v6737_v57  ;;  %v6762_v56 = vcombine.low %v1400_v53, %v1404_v44  ;;  %v6261_v57 = vcombine.high %v897_v14, %v901_v58  ;;  %v925_v40 = vld [vmem:[#allocation10 + $0xf0] sm:$0xff]  ;;  %v922_v53 = vld [vmem:[#allocation10 + $0xd8] sm:$0xff] }
 0x306   :  { %4544 = vmatprep.subr.bf16.mxu0 %v6739_v17  ;;  %v6263_v17 = vcombine.high %v898_v30, %v902_v45  ;;  %v926_v44 = vld [vmem:[#allocation10 + $0xf8] sm:$0xff] }
 0x308   :  { %4253 = vmatpush1.bf16.msra.mxu1 %v6736_v27  ;;  %v6260_v27 = vcombine.low %v897_v14, %v901_v58  ;;  %v929_v14 = vld [vmem:[#allocation10 + $0x110] sm:$0xff] }
 0x309   :  { %4545 = vmatpush1.bf16.msra.mxu0 %v6738_v5  ;;  %4254 = vmatprep.subr.bf16.mxu1 %v6745_v46  ;;  %v6262_v5 = vcombine.low %v898_v30, %v902_v45  ;;  %v6269_v46 = vcombine.high %v905_v2, %v909_v21  ;;  %v933_v58 = vld [vmem:[#allocation10 + $0x130] sm:$0xff]  ;;  %v930_v30 = vld [vmem:[#allocation10 + $0x118] sm:$0xff] }
 0x30a   :  { %4546 = vmatprep.subr.bf16.mxu0 %v6747_v60  ;;  %v6271_v60 = vcombine.high %v906_v31, %v910_v16  ;;  %v934_v45 = vld [vmem:[#allocation10 + $0x138] sm:$0xff] }
 0x30c   :  { %4255 = vmatpush1.bf16.msra.mxu1 %v6744_v38  ;;  %v6268_v38 = vcombine.low %v905_v2, %v909_v21  ;;  %v937_v2 = vld [vmem:[#allocation10 + $0x150] sm:$0xff] }
 0x30d   :  { %4547 = vmatpush1.bf16.msra.mxu0 %v6746_v15  ;;  %4256 = vmatprep.subr.bf16.mxu1 %v6753_v4  ;;  %v6270_v15 = vcombine.low %v906_v31, %v910_v16  ;;  %v6277_v4 = vcombine.high %v913_v3, %v917_v1  ;;  %v941_v21 = vld [vmem:[#allocation10 + $0x170] sm:$0xff]  ;;  %v938_v31 = vld [vmem:[#allocation10 + $0x158] sm:$0xff] }
 0x30e   :  { %4548 = vmatprep.subr.bf16.mxu0 %v6755_v61  ;;  %v6279_v61 = vcombine.high %v914_v18, %v918_v23  ;;  %v942_v16 = vld [vmem:[#allocation10 + $0x178] sm:$0xff] }
 0x310   :  { %4257 = vmatpush1.bf16.msra.mxu1 %v6752_v0  ;;  %v6276_v0 = vcombine.low %v913_v3, %v917_v1  ;;  %v945_v3 = vld [vmem:[#allocation10 + $0x190] sm:$0xff] }
 0x311   :  { %4549 = vmatpush1.bf16.msra.mxu0 %v6754_v19  ;;  %4258 = vmatprep.subr.bf16.mxu1 %v6761_v24  ;;  %v6278_v19 = vcombine.low %v914_v18, %v918_v23  ;;  %v6285_v24 = vcombine.high %v921_v33, %v925_v40  ;;  %v949_v1 = vld [vmem:[#allocation10 + $0x1b0] sm:$0xff]  ;;  %v946_v18 = vld [vmem:[#allocation10 + $0x198] sm:$0xff] }
 0x312   :  { %4550 = vmatprep.subr.bf16.mxu0 %v6763_v62  ;;  %v6287_v62 = vcombine.high %v922_v53, %v926_v44  ;;  %v950_v23 = vld [vmem:[#allocation10 + $0x1b8] sm:$0xff] }
 0x314   :  { %4259 = vmatpush1.bf16.msra.mxu1 %v6760_v55  ;;  %v6284_v55 = vcombine.low %v921_v33, %v925_v40  ;;  %v953_v33 = vld [vmem:[#allocation10 + $0x1d0] sm:$0xff] }
 0x315   :  { %4551 = vmatpush1.bf16.msra.mxu0 %v6762_v56  ;;  %4593 = vmatprep.subr.bf16.mxu1 %v6261_v57  ;;  %v6286_v56 = vcombine.low %v922_v53, %v926_v44  ;;  %v6293_v57 = vcombine.high %v929_v14, %v933_v58  ;;  %v957_v40 = vld [vmem:[#allocation10 + $0x1f0] sm:$0xff]  ;;  %v954_v53 = vld [vmem:[#allocation10 + $0x1d8] sm:$0xff] }
 0x316   :  { %4885 = vmatprep.subr.bf16.mxu0 %v6263_v17  ;;  %v6295_v17 = vcombine.high %v930_v30, %v934_v45  ;;  %v958_v44 = vld [vmem:[#allocation10 + $0x1f8] sm:$0xff] }
 0x317   :  { %4261 = vmatmul.mubr.bf16.vlgmr.msra.gmra.mrb[32].mxu1 %v8174_v29 }
 0x318   :  { %4553 = vmatmul.mubr.bf16.vlgmr.msra.gmra.mrb[40].mxu0 %v8174_v29  ;;  %4270 = vmatprep.mubr.bf16.mxu1 %v8222_v32 }
 0x319   :  { %4562 = vmatprep.mubr.bf16.mxu0 %v8222_v32  ;;  %4594 = vmatpush1.bf16.msra.mxu1 %v6260_v27  ;;  %v6292_v27 = vcombine.low %v929_v14, %v933_v58  ;;  %v961_v14 = vld [vmem:[#allocation10 + $0x210] sm:$0xff] }
 0x31a   :  { %4886 = vmatpush1.bf16.msra.mxu0 %v6262_v5  ;;  %4595 = vmatprep.subr.bf16.mxu1 %v6269_v46  ;;  %v6294_v5 = vcombine.low %v930_v30, %v934_v45  ;;  %v6301_v46 = vcombine.high %v937_v2, %v941_v21  ;;  %v965_v58 = vld [vmem:[#allocation10 + $0x230] sm:$0xff]  ;;  %v962_v30 = vld [vmem:[#allocation10 + $0x218] sm:$0xff] }
 0x31b   :  { %4887 = vmatprep.subr.bf16.mxu0 %v6271_v60  ;;  %v6303_v60 = vcombine.high %v938_v31, %v942_v16  ;;  %v966_v45 = vld [vmem:[#allocation10 + $0x238] sm:$0xff] }
 0x31d   :  { %4596 = vmatpush1.bf16.msra.mxu1 %v6268_v38  ;;  %v6300_v38 = vcombine.low %v937_v2, %v941_v21  ;;  %v969_v2 = vld [vmem:[#allocation10 + $0x250] sm:$0xff] }
 0x31e   :  { %4888 = vmatpush1.bf16.msra.mxu0 %v6270_v15  ;;  %4597 = vmatprep.subr.bf16.mxu1 %v6277_v4  ;;  %v6302_v15 = vcombine.low %v938_v31, %v942_v16  ;;  %v6309_v4 = vcombine.high %v945_v3, %v949_v1  ;;  %v973_v21 = vld [vmem:[#allocation10 + $0x270] sm:$0xff]  ;;  %v970_v31 = vld [vmem:[#allocation10 + $0x258] sm:$0xff] }
 0x31f   :  { %4271 = vmatmul.mubr.bf16.gmra.mrb[36].mxu1 %v8214_v25  ;;  %4889 = vmatprep.subr.bf16.mxu0 %v6279_v61  ;;  %v6311_v61 = vcombine.high %v946_v18, %v950_v23  ;;  %v974_v16 = vld [vmem:[#allocation10 + $0x278] sm:$0xff] }
 0x320   :  { %4563 = vmatmul.mubr.bf16.gmra.mrb[44].mxu0 %v8214_v25  ;;  %4280 = vmatprep.mubr.bf16.mxu1 %v8262_v48 }
 0x321   :  { %4572 = vmatprep.mubr.bf16.mxu0 %v8262_v48  ;;  %4598 = vmatpush1.bf16.msra.mxu1 %v6276_v0  ;;  %v6308_v0 = vcombine.low %v945_v3, %v949_v1  ;;  %v981_v3 = vld [vmem:[#allocation10 + $0x2b0] sm:$0xff]  ;;  %v978_v1 = vld [vmem:[#allocation10 + $0x298] sm:$0xff] }
 0x322   :  { %4890 = vmatpush1.bf16.msra.mxu0 %v6278_v19  ;;  %4599 = vmatprep.subr.bf16.mxu1 %v6285_v24  ;;  %v6310_v19 = vcombine.low %v946_v18, %v950_v23  ;;  %v6317_v24 = vcombine.high %v953_v33, %v957_v40  ;;  %v982_v18 = vld [vmem:[#allocation10 + $0x2b8] sm:$0xff]  ;;  %v6332_v23 = vcombine.low %v969_v2, %v973_v21 }
 0x323   :  { %4891 = vmatprep.subr.bf16.mxu0 %v6287_v62  ;;  %v6319_v62 = vcombine.high %v954_v53, %v958_v44 }
 0x325   :  { %4600 = vmatpush1.bf16.msra.mxu1 %v6284_v55  ;;  %v6316_v55 = vcombine.low %v953_v33, %v957_v40  ;;  %v989_v33 = vld [vmem:[#allocation10 + $0x2f0] sm:$0xff]  ;;  %v986_v40 = vld [vmem:[#allocation10 + $0x2d8] sm:$0xff] }
 0x326   :  { %4892 = vmatpush1.bf16.msra.mxu0 %v6286_v56  ;;  %4601 = vmatprep.subr.bf16.mxu1 %v6293_v57  ;;  %v6318_v56 = vcombine.low %v954_v53, %v958_v44  ;;  %v6325_v57 = vcombine.high %v961_v14, %v965_v58  ;;  %v990_v53 = vld [vmem:[#allocation10 + $0x2f8] sm:$0xff] }
 0x327   :  { %4281 = vmatmul.mubr.bf16.gmra.mrb[40].mxu1 %v8254_v59  ;;  %4893 = vmatprep.subr.bf16.mxu0 %v6295_v17  ;;  %v6327_v17 = vcombine.high %v962_v30, %v966_v45 }
 0x328   :  { %4573 = vmatmul.mubr.bf16.gmra.mrb[48].mxu0 %v8254_v59  ;;  %4290 = vmatprep.mubr.bf16.mxu1 %v8282_v6 }
 0x329   :  { %4582 = vmatprep.mubr.bf16.mxu0 %v8282_v6  ;;  %4602 = vmatpush1.bf16.msra.mxu1 %v6292_v27  ;;  %v6324_v27 = vcombine.low %v961_v14, %v965_v58  ;;  %v997_v14 = vld [vmem:[#allocation10 + $0x330] sm:$0xff]  ;;  %v994_v58 = vld [vmem:[#allocation10 + $0x318] sm:$0xff] }
 0x32a   :  { %4894 = vmatpush1.bf16.msra.mxu0 %v6294_v5  ;;  %4603 = vmatprep.subr.bf16.mxu1 %v6301_v46  ;;  %v6326_v5 = vcombine.low %v962_v30, %v966_v45  ;;  %v6333_v46 = vcombine.high %v969_v2, %v973_v21  ;;  %v998_v30 = vld [vmem:[#allocation10 + $0x338] sm:$0xff]  ;;  %v1005_v2 = vld [vmem:[#allocation10 + $0x370] sm:$0xff] }
 0x32b   :  { %4895 = vmatprep.subr.bf16.mxu0 %v6303_v60  ;;  %v6335_v60 = vcombine.high %v970_v31, %v974_v16  ;;  %v1002_v21 = vld [vmem:[#allocation10 + $0x358] sm:$0xff] }
 0x32d   :  { %4604 = vmatpush1.bf16.msra.mxu1 %v6300_v38  ;;  %v6334_v38 = vcombine.low %v970_v31, %v974_v16  ;;  %v1006_v31 = vld [vmem:[#allocation10 + $0x378] sm:$0xff] }
 0x32e   :  { %4896 = vmatpush1.bf16.msra.mxu0 %v6302_v15  ;;  %4605 = vmatprep.subr.bf16.mxu1 %v6309_v4  ;;  %v6343_v4 = vcombine.high %v978_v1, %v982_v18 }
 0x32f   :  { %4291 = vmatmul.mubr.bf16.gmra.mrb[44].mxu1 %v8278_v63  ;;  %4897 = vmatprep.subr.bf16.mxu0 %v6311_v61  ;;  %v985_v61 = vld [vmem:[#allocation10 + $0x2d0] sm:$0xff] }
 0x330   :  { %4583 = vmatmul.mubr.bf16.gmra.mrb[52].mxu0 %v8278_v63  ;;  %4625 = vmatprep.mubr.bf16.mxu1 %v7934_v41  ;;  %v6348_v45 = vcombine.low %v985_v61, %v989_v33 }
 0x331   :  { %4606 = vmatpush1.bf16.msra.mxu1 %v6308_v0  ;;  %4917 = vmatprep.mubr.bf16.mxu0 %v7934_v41  ;;  %v977_v41 = vld [vmem:[#allocation10 + $0x290] sm:$0xff]  ;;  %v6342_v0 = vcombine.low %v978_v1, %v982_v18  ;;  %v1014_v1 = vld [vmem:[#allocation10 + $0x3b8] sm:$0xff] }
 0x332   :  { %4898 = vmatpush1.bf16.msra.mxu0 %v6310_v19  ;;  %4607 = vmatprep.subr.bf16.mxu1 %v6317_v24  ;;  %v6341_v15 = vcombine.high %v977_v41, %v981_v3  ;;  %v6340_v44 = vcombine.low %v977_v41, %v981_v3  ;;  %v6349_v19 = vcombine.high %v985_v61, %v989_v33  ;;  %v1013_v41 = vld [vmem:[#allocation10 + $0x3b0] sm:$0xff]  ;;  %v1010_v3 = vld [vmem:[#allocation10 + $0x398] sm:$0xff] }
 0x333   :  { %4899 = vmatprep.subr.bf16.mxu0 %v6319_v62  ;;  %v6351_v24 = vcombine.high %v986_v40, %v990_v53  ;;  %v993_v62 = vld [vmem:[#allocation10 + $0x310] sm:$0xff]  ;;  %v1018_v33 = vld [vmem:[#allocation10 + $0x3d8] sm:$0xff] }
 0x334   :  { %v6356_v16 = vcombine.low %v993_v62, %v997_v14  ;;  %v1021_v61 = vld [vmem:[#allocation10 + $0x3f0] sm:$0xff] }
 0x335   :  { %4608 = vmatpush1.bf16.msra.mxu1 %v6316_v55  ;;  %v6350_v55 = vcombine.low %v986_v40, %v990_v53  ;;  %v1022_v40 = vld [vmem:[#allocation10 + $0x3f8] sm:$0xff] }
 0x336   :  { %4900 = vmatpush1.bf16.msra.mxu0 %v6318_v56  ;;  %4609 = vmatprep.subr.bf16.mxu1 %v6325_v57  ;;  %v6357_v56 = vcombine.high %v993_v62, %v997_v14  ;;  %v6359_v57 = vcombine.high %v994_v58, %v998_v30  ;;  %v1029_v62 = vld [vmem:[#allocation10 + $0x430] sm:$0xff]  ;;  %v1026_v14 = vld [vmem:[#allocation10 + $0x418] sm:$0xff] }
 0x337   :  { %4901 = vmatprep.subr.bf16.mxu0 %v6327_v17  ;;  %v1001_v17 = vld [vmem:[#allocation10 + $0x350] sm:$0xff] }
 0x338   :  { %v6364_v18 = vcombine.low %v1001_v17, %v1005_v2 }
 0x339   :  { %4610 = vmatpush1.bf16.msra.mxu1 %v6324_v27  ;;  %v6358_v27 = vcombine.low %v994_v58, %v998_v30  ;;  %v1030_v58 = vld [vmem:[#allocation10 + $0x438] sm:$0xff] }
 0x33a   :  { %4902 = vmatpush1.bf16.msra.mxu0 %v6326_v5  ;;  %4611 = vmatprep.subr.bf16.mxu1 %v6333_v46  ;;  %v6365_v5 = vcombine.high %v1001_v17, %v1005_v2  ;;  %v6367_v46 = vcombine.high %v1002_v21, %v1006_v31  ;;  %v1037_v17 = vld [vmem:[#allocation10 + $0x470] sm:$0xff]  ;;  %v1034_v2 = vld [vmem:[#allocation10 + $0x458] sm:$0xff] }
 0x33b   :  { %4903 = vmatprep.subr.bf16.mxu0 %v6335_v60  ;;  %v1009_v60 = vld [vmem:[#allocation10 + $0x390] sm:$0xff] }
 0x33c   :  { %v6372_v53 = vcombine.low %v1009_v60, %v1013_v41 }
 0x33d   :  { %4612 = vmatpush1.bf16.msra.mxu1 %v6332_v23  ;;  %v6366_v23 = vcombine.low %v1002_v21, %v1006_v31  ;;  %v1038_v21 = vld [vmem:[#allocation10 + $0x478] sm:$0xff] }
 0x33e   :  { %4904 = vmatpush1.bf16.msra.mxu0 %v6334_v38  ;;  %4613 = vmatprep.subr.bf16.mxu1 %v6341_v15  ;;  %v6373_v38 = vcombine.high %v1009_v60, %v1013_v41  ;;  %v6375_v15 = vcombine.high %v1010_v3, %v1014_v1  ;;  %v1045_v60 = vld [vmem:[#allocation10 + $0x4b0] sm:$0xff]  ;;  %v1042_v41 = vld [vmem:[#allocation10 + $0x498] sm:$0xff] }
 0x33f   :  { %4905 = vmatprep.subr.bf16.mxu0 %v6343_v4  ;;  %v1017_v4 = vld [vmem:[#allocation10 + $0x3d0] sm:$0xff] }
 0x340   :  { %v6380_v30 = vcombine.low %v1017_v4, %v1021_v61 }
 0x341   :  { %4614 = vmatpush1.bf16.msra.mxu1 %v6340_v44  ;;  %v6374_v44 = vcombine.low %v1010_v3, %v1014_v1  ;;  %v1046_v3 = vld [vmem:[#allocation10 + $0x4b8] sm:$0xff] }
 0x342   :  { %4906 = vmatpush1.bf16.msra.mxu0 %v6342_v0  ;;  %4615 = vmatprep.subr.bf16.mxu1 %v6349_v19  ;;  %v6381_v0 = vcombine.high %v1017_v4, %v1021_v61  ;;  %v6383_v19 = vcombine.high %v1018_v33, %v1022_v40  ;;  %v1053_v4 = vld [vmem:[#allocation10 + $0x4f0] sm:$0xff]  ;;  %v1050_v61 = vld [vmem:[#allocation10 + $0x4d8] sm:$0xff] }
 0x343   :  { %4907 = vmatprep.subr.bf16.mxu0 %v6351_v24  ;;  %v1025_v24 = vld [vmem:[#allocation10 + $0x410] sm:$0xff] }
 0x344   :  { %v6388_v31 = vcombine.low %v1025_v24, %v1029_v62 }
 0x345   :  { %4616 = vmatpush1.bf16.msra.mxu1 %v6348_v45  ;;  %v6382_v45 = vcombine.low %v1018_v33, %v1022_v40  ;;  %v1054_v33 = vld [vmem:[#allocation10 + $0x4f8] sm:$0xff]  ;;  %v6406_v40 = vcombine.low %v1042_v41, %v1046_v3 }
 0x346   :  { %4908 = vmatpush1.bf16.msra.mxu0 %v6350_v55  ;;  %4617 = vmatprep.subr.bf16.mxu1 %v6357_v56  ;;  %v6389_v55 = vcombine.high %v1025_v24, %v1029_v62  ;;  %v6391_v56 = vcombine.high %v1026_v14, %v1030_v58  ;;  %v1062_v24 = vld [vmem:[#allocation10 + $0x538] sm:$0xff] }
 0x347   :  { %4909 = vmatprep.subr.bf16.mxu0 %v6359_v57  ;;  %v1033_v57 = vld [vmem:[#allocation10 + $0x450] sm:$0xff] }
 0x348   :  { %v6396_v1 = vcombine.low %v1033_v57, %v1037_v17 }
 0x349   :  { %4618 = vmatpush1.bf16.msra.mxu1 %v6356_v16  ;;  %v6390_v16 = vcombine.low %v1026_v14, %v1030_v58  ;;  %v6414_v14 = vcombine.low %v1050_v61, %v1054_v33 }
 0x34a   :  { %4910 = vmatpush1.bf16.msra.mxu0 %v6358_v27  ;;  %4619 = vmatprep.subr.bf16.mxu1 %v6365_v5  ;;  %v6397_v27 = vcombine.high %v1033_v57, %v1037_v17  ;;  %v6399_v5 = vcombine.high %v1034_v2, %v1038_v21  ;;  %v1070_v57 = vld [vmem:[#allocation10 + $0x578] sm:$0xff] }
 0x34b   :  { %4911 = vmatprep.subr.bf16.mxu0 %v6367_v46  ;;  %v1041_v46 = vld [vmem:[#allocation10 + $0x490] sm:$0xff] }
 0x34d   :  { %4620 = vmatpush1.bf16.msra.mxu1 %v6364_v18  ;;  %v6398_v18 = vcombine.low %v1034_v2, %v1038_v21  ;;  %v1073_v21 = vld [vmem:[#allocation10 + $0x590] sm:$0xff] }
 0x34e   :  { %4912 = vmatpush1.bf16.msra.mxu0 %v6366_v23  ;;  %4621 = vmatprep.subr.bf16.mxu1 %v6373_v38  ;;  %v6405_v23 = vcombine.high %v1041_v46, %v1045_v60  ;;  %v6407_v38 = vcombine.high %v1042_v41, %v1046_v3  ;;  %v1081_v3 = vld [vmem:[#allocation10 + $0x5d0] sm:$0xff] }
 0x34f   :  { %4913 = vmatprep.subr.bf16.mxu0 %v6375_v15  ;;  %v1049_v15 = vld [vmem:[#allocation10 + $0x4d0] sm:$0xff] }
 0x350   :  { %v6412_v62 = vcombine.low %v1049_v15, %v1053_v4 }
 0x351   :  { %4622 = vmatpush1.bf16.msra.mxu1 %v6372_v53  ;;  %v6413_v53 = vcombine.high %v1049_v15, %v1053_v4  ;;  %v1089_v4 = vld [vmem:[#allocation10 + $0x610] sm:$0xff] }
 0x352   :  { %4914 = vmatpush1.bf16.msra.mxu0 %v6374_v44  ;;  %4623 = vmatprep.subr.bf16.mxu1 %v6381_v0  ;;  %v1057_v44 = vld [vmem:[#allocation10 + $0x510] sm:$0xff] }
 0x353   :  { %4915 = vmatprep.subr.bf16.mxu0 %v6383_v19  ;;  %v1061_v0 = vld [vmem:[#allocation10 + $0x530] sm:$0xff]  ;;  %v1058_v19 = vld [vmem:[#allocation10 + $0x518] sm:$0xff] }
 0x354   :  { %v6421_v58 = vcombine.high %v1057_v44, %v1061_v0  ;;  %v6422_v17 = vcombine.low %v1058_v19, %v1062_v24 }
 0x355   :  { %4624 = vmatpush1.bf16.msra.mxu1 %v6380_v30  ;;  %v6423_v30 = vcombine.high %v1058_v19, %v1062_v24  ;;  %v1101_v19 = vld [vmem:[#allocation10 + $0x670] sm:$0xff]  ;;  %v1098_v24 = vld [vmem:[#allocation10 + $0x658] sm:$0xff] }
 0x356   :  { %4916 = vmatpush1.bf16.msra.mxu0 %v6382_v45  ;;  %4666 = vmatprep.subr.bf16.mxu1 %v6389_v55  ;;  %v1065_v45 = vld [vmem:[#allocation10 + $0x550] sm:$0xff] }
 0x357   :  { %4958 = vmatprep.subr.bf16.mxu0 %v6391_v56  ;;  %v1069_v55 = vld [vmem:[#allocation10 + $0x570] sm:$0xff]  ;;  %v1066_v56 = vld [vmem:[#allocation10 + $0x558] sm:$0xff] }
 0x358   :  { %4626 = vmatmul.mubr.bf16.vlgmr.msra.gmra.mrb[48].mxu1 %v7922_v34  ;;  %v6429_v2 = vcombine.high %v1065_v45, %v1069_v55 }
 0x359   :  { %4918 = vmatmul.mubr.bf16.vlgmr.msra.gmra.mrb[56].mxu0 %v7922_v34  ;;  %4635 = vmatprep.mubr.bf16.mxu1 %v7990_v20  ;;  %v6404_v34 = vcombine.low %v1041_v46, %v1045_v60  ;;  %v6430_v46 = vcombine.low %v1066_v56, %v1070_v57 }
 0x35a   :  { %4667 = vmatpush1.bf16.msra.mxu1 %v6388_v31  ;;  %4927 = vmatprep.mubr.bf16.mxu0 %v7990_v20  ;;  %v6415_v20 = vcombine.high %v1050_v61, %v1054_v33  ;;  %v1077_v31 = vld [vmem:[#allocation10 + $0x5b0] sm:$0xff]  ;;  %v1090_v33 = vld [vmem:[#allocation10 + $0x618] sm:$0xff] }
 0x35b   :  { %4959 = vmatpush1.bf16.msra.mxu0 %v6390_v16  ;;  %4668 = vmatprep.subr.bf16.mxu1 %v6397_v27  ;;  %v1074_v16 = vld [vmem:[#allocation10 + $0x598] sm:$0xff]  ;;  %v6437_v60 = vcombine.high %v1073_v21, %v1077_v31  ;;  %v1093_v61 = vld [vmem:[#allocation10 + $0x630] sm:$0xff] }
 0x35c   :  { %4960 = vmatprep.subr.bf16.mxu0 %v6399_v5  ;;  %v1078_v27 = vld [vmem:[#allocation10 + $0x5b8] sm:$0xff]  ;;  %v6428_v5 = vcombine.low %v1065_v45, %v1069_v55  ;;  %v1109_v45 = vld [vmem:[#allocation10 + $0x6b0] sm:$0xff] }
 0x35d   :  { %v6439_v41 = vcombine.high %v1074_v16, %v1078_v27  ;;  %v1106_v55 = vld [vmem:[#allocation10 + $0x698] sm:$0xff] }
 0x35e   :  { %4669 = vmatpush1.bf16.msra.mxu1 %v6396_v1  ;;  %v1085_v1 = vld [vmem:[#allocation10 + $0x5f0] sm:$0xff] }
 0x35f   :  { %4961 = vmatpush1.bf16.msra.mxu0 %v6398_v18  ;;  %4670 = vmatprep.subr.bf16.mxu1 %v6405_v23  ;;  %v1082_v18 = vld [vmem:[#allocation10 + $0x5d8] sm:$0xff]  ;;  %v6445_v15 = vcombine.high %v1081_v3, %v1085_v1 }
 0x360   :  { %4636 = vmatmul.mubr.bf16.gmra.mrb[52].mxu1 %v7982_v50  ;;  %4962 = vmatprep.subr.bf16.mxu0 %v6407_v38  ;;  %v1086_v23 = vld [vmem:[#allocation10 + $0x5f8] sm:$0xff]  ;;  %v6438_v38 = vcombine.low %v1074_v16, %v1078_v27 }
 0x361   :  { %4928 = vmatmul.mubr.bf16.gmra.mrb[60].mxu0 %v7982_v50  ;;  %4645 = vmatprep.mubr.bf16.mxu1 %v8047_v12  ;;  %v6420_v50 = vcombine.low %v1057_v44, %v1061_v0  ;;  %v1097_v0 = vld [vmem:[#allocation10 + $0x650] sm:$0xff]  ;;  %v1118_v16 = vld [vmem:[#allocation10 + $0x6f8] sm:$0xff] }
 0x362   :  { %4671 = vmatpush1.bf16.msra.mxu1 %v6404_v34  ;;  %4937 = vmatprep.mubr.bf16.mxu0 %v8047_v12  ;;  %v6431_v12 = vcombine.high %v1066_v56, %v1070_v57  ;;  %v1094_v34 = vld [vmem:[#allocation10 + $0x638] sm:$0xff]  ;;  %v6460_v57 = vcombine.low %v1097_v0, %v1101_v19 }
 0x363   :  { %4963 = vmatpush1.bf16.msra.mxu0 %v6406_v40  ;;  %4672 = vmatprep.subr.bf16.mxu1 %v6413_v53  ;;  %v6444_v40 = vcombine.low %v1081_v3, %v1085_v1  ;;  %v6446_v53 = vcombine.low %v1082_v18, %v1086_v23  ;;  %v6455_v44 = vcombine.high %v1090_v33, %v1094_v34  ;;  %v1110_v56 = vld [vmem:[#allocation10 + $0x6b8] sm:$0xff]  ;;  %v1125_v3 = vld [vmem:[#allocation10 + $0x730] sm:$0xff] }
 0x364   :  { %4964 = vmatprep.subr.bf16.mxu0 %v6415_v20  ;;  %v6453_v20 = vcombine.high %v1089_v4, %v1093_v61  ;;  %v1122_v1 = vld [vmem:[#allocation10 + $0x718] sm:$0xff] }
 0x366   :  { %4673 = vmatpush1.bf16.msra.mxu1 %v6412_v62  ;;  %v1102_v62 = vld [vmem:[#allocation10 + $0x678] sm:$0xff] }
 0x367   :  { %4965 = vmatpush1.bf16.msra.mxu0 %v6414_v14  ;;  %4674 = vmatprep.subr.bf16.mxu1 %v6421_v58  ;;  %v6454_v14 = vcombine.low %v1090_v33, %v1094_v34  ;;  %v6461_v58 = vcombine.high %v1097_v0, %v1101_v19  ;;  %v1134_v33 = vld [vmem:[#allocation10 + $0x778] sm:$0xff]  ;;  %v1141_v0 = vld [vmem:[#allocation10 + $0x7b0] sm:$0xff] }
 0x368   :  { %4646 = vmatmul.mubr.bf16.gmra.mrb[56].mxu1 %v8039_v10  ;;  %4966 = vmatprep.subr.bf16.mxu0 %v6423_v30  ;;  %v6463_v30 = vcombine.high %v1098_v24, %v1102_v62  ;;  %v1138_v19 = vld [vmem:[#allocation10 + $0x798] sm:$0xff] }
 0x369   :  { %4938 = vmatmul.mubr.bf16.gmra.mrb[64].mxu0 %v8039_v10  ;;  %4655 = vmatprep.mubr.bf16.mxu1 %v8129_v37  ;;  %v6436_v10 = vcombine.low %v1073_v21, %v1077_v31  ;;  %v1117_v21 = vld [vmem:[#allocation10 + $0x6f0] sm:$0xff]  ;;  %v1114_v31 = vld [vmem:[#allocation10 + $0x6d8] sm:$0xff] }
 0x36a   :  { %4675 = vmatpush1.bf16.msra.mxu1 %v6420_v50  ;;  %4947 = vmatprep.mubr.bf16.mxu0 %v8129_v37  ;;  %v6447_v37 = vcombine.high %v1082_v18, %v1086_v23  ;;  %v6462_v50 = vcombine.low %v1098_v24, %v1102_v62  ;;  %v1126_v18 = vld [vmem:[#allocation10 + $0x738] sm:$0xff] }
 0x36b   :  { %4967 = vmatpush1.bf16.msra.mxu0 %v6422_v17  ;;  %4676 = vmatprep.subr.bf16.mxu1 %v6429_v2  ;;  %v6471_v2 = vcombine.high %v1106_v55, %v1110_v56  ;;  %v1142_v24 = vld [vmem:[#allocation10 + $0x7b8] sm:$0xff] }
 0x36c   :  { %4968 = vmatprep.subr.bf16.mxu0 %v6431_v12  ;;  %v1113_v12 = vld [vmem:[#allocation10 + $0x6d0] sm:$0xff] }
 0x36d   :  { %v6476_v23 = vcombine.low %v1113_v12, %v1117_v21 }
 0x36e   :  { %4677 = vmatpush1.bf16.msra.mxu1 %v6428_v5  ;;  %v6470_v5 = vcombine.low %v1106_v55, %v1110_v56  ;;  %v1150_v55 = vld [vmem:[#allocation10 + $0x7f8] sm:$0xff] }
 0x36f   :  { %4969 = vmatpush1.bf16.msra.mxu0 %v6430_v46  ;;  %4678 = vmatprep.subr.bf16.mxu1 %v6437_v60  ;;  %v6477_v46 = vcombine.high %v1113_v12, %v1117_v21  ;;  %v6479_v60 = vcombine.high %v1114_v31, %v1118_v16  ;;  %v1157_v12 = vld [vmem:[#allocation10 + $0x830] sm:$0xff]  ;;  %v1154_v21 = vld [vmem:[#allocation10 + $0x818] sm:$0xff] }
 0x370   :  { %4656 = vmatmul.mubr.bf16.gmra.mrb[60].mxu1 %v8121_v26  ;;  %4970 = vmatprep.subr.bf16.mxu0 %v6439_v41  ;;  %v1121_v41 = vld [vmem:[#allocation10 + $0x710] sm:$0xff] }
 0x371   :  { %4948 = vmatmul.mubr.bf16.gmra.mrb[68].mxu0 %v8121_v26  ;;  %4698 = vmatprep.mubr.bf16.mxu1 %v7936_v42  ;;  %v6452_v26 = vcombine.low %v1089_v4, %v1093_v61  ;;  %v1133_v4 = vld [vmem:[#allocation10 + $0x770] sm:$0xff]  ;;  %v1130_v61 = vld [vmem:[#allocation10 + $0x758] sm:$0xff]  ;;  %v6484_v34 = vcombine.low %v1121_v41, %v1125_v3 }
 0x372   :  { %4679 = vmatpush1.bf16.msra.mxu1 %v6436_v10  ;;  %4990 = vmatprep.mubr.bf16.mxu0 %v7936_v42  ;;  %v1105_v42 = vld [vmem:[#allocation10 + $0x690] sm:$0xff]  ;;  %v6478_v10 = vcombine.low %v1114_v31, %v1118_v16  ;;  %v1158_v31 = vld [vmem:[#allocation10 + $0x838] sm:$0xff] }
 0x373   :  { %4971 = vmatpush1.bf16.msra.mxu0 %v6438_v38  ;;  %4680 = vmatprep.subr.bf16.mxu1 %v6445_v15  ;;  %v6469_v17 = vcombine.high %v1105_v42, %v1109_v45  ;;  %v6468_v27 = vcombine.low %v1105_v42, %v1109_v45  ;;  %v6485_v38 = vcombine.high %v1121_v41, %v1125_v3  ;;  %v1149_v42 = vld [vmem:[#allocation10 + $0x7f0] sm:$0xff]  ;;  %v1146_v45 = vld [vmem:[#allocation10 + $0x7d8] sm:$0xff] }
 0x374   :  { %4972 = vmatprep.subr.bf16.mxu0 %v6447_v37  ;;  %v6487_v15 = vcombine.high %v1122_v1, %v1126_v18  ;;  %v1129_v37 = vld [vmem:[#allocation10 + $0x750] sm:$0xff]  ;;  %v1162_v3 = vld [vmem:[#allocation10 + $0x858] sm:$0xff] }
 0x375   :  { %v6492_v62 = vcombine.low %v1129_v37, %v1133_v4  ;;  %v1165_v41 = vld [vmem:[#allocation10 + $0x870] sm:$0xff] }
 0x376   :  { %4681 = vmatpush1.bf16.msra.mxu1 %v6444_v40  ;;  %v6486_v40 = vcombine.low %v1122_v1, %v1126_v18  ;;  %v1166_v1 = vld [vmem:[#allocation10 + $0x878] sm:$0xff] }
 0x377   :  { %4973 = vmatpush1.bf16.msra.mxu0 %v6446_v53  ;;  %4682 = vmatprep.subr.bf16.mxu1 %v6453_v20  ;;  %v6493_v53 = vcombine.high %v1129_v37, %v1133_v4  ;;  %v6495_v20 = vcombine.high %v1130_v61, %v1134_v33  ;;  %v1173_v37 = vld [vmem:[#allocation10 + $0x8b0] sm:$0xff]  ;;  %v1170_v4 = vld [vmem:[#allocation10 + $0x898] sm:$0xff] }
 0x378   :  { %4974 = vmatprep.subr.bf16.mxu0 %v6455_v44  ;;  %v1137_v44 = vld [vmem:[#allocation10 + $0x790] sm:$0xff] }
 0x379   :  { %v6500_v56 = vcombine.low %v1137_v44, %v1141_v0 }
 0x37a   :  { %4683 = vmatpush1.bf16.msra.mxu1 %v6452_v26  ;;  %v6494_v26 = vcombine.low %v1130_v61, %v1134_v33  ;;  %v1174_v61 = vld [vmem:[#allocation10 + $0x8b8] sm:$0xff] }
 0x37b   :  { %4975 = vmatpush1.bf16.msra.mxu0 %v6454_v14  ;;  %4684 = vmatprep.subr.bf16.mxu1 %v6461_v58  ;;  %v6501_v14 = vcombine.high %v1137_v44, %v1141_v0  ;;  %v6503_v58 = vcombine.high %v1138_v19, %v1142_v24  ;;  %v1181_v44 = vld [vmem:[#allocation10 + $0x8f0] sm:$0xff]  ;;  %v1178_v0 = vld [vmem:[#allocation10 + $0x8d8] sm:$0xff] }
 0x37c   :  { %4976 = vmatprep.subr.bf16.mxu0 %v6463_v30  ;;  %v1145_v30 = vld [vmem:[#allocation10 + $0x7d0] sm:$0xff] }
 0x37d   :  { %v6508_v16 = vcombine.low %v1145_v30, %v1149_v42 }
 0x37e   :  { %4685 = vmatpush1.bf16.msra.mxu1 %v6460_v57  ;;  %v6502_v57 = vcombine.low %v1138_v19, %v1142_v24  ;;  %v1182_v19 = vld [vmem:[#allocation10 + $0x8f8] sm:$0xff]  ;;  %v6534_v24 = vcombine.low %v1170_v4, %v1174_v61 }
 0x37f   :  { %4977 = vmatpush1.bf16.msra.mxu0 %v6462_v50  ;;  %4686 = vmatprep.subr.bf16.mxu1 %v6469_v17  ;;  %v6509_v50 = vcombine.high %v1145_v30, %v1149_v42  ;;  %v6511_v17 = vcombine.high %v1146_v45, %v1150_v55  ;;  %v1190_v30 = vld [vmem:[#allocation10 + $0x938] sm:$0xff] }
 0x380   :  { %4978 = vmatprep.subr.bf16.mxu0 %v6471_v2  ;;  %v1153_v2 = vld [vmem:[#allocation10 + $0x810] sm:$0xff] }
 0x381   :  { %v6516_v18 = vcombine.low %v1153_v2, %v1157_v12 }
 0x382   :  { %4687 = vmatpush1.bf16.msra.mxu1 %v6468_v27  ;;  %v6510_v27 = vcombine.low %v1146_v45, %v1150_v55  ;;  %v6542_v45 = vcombine.low %v1178_v0, %v1182_v19 }
 0x383   :  { %4979 = vmatpush1.bf16.msra.mxu0 %v6470_v5  ;;  %4688 = vmatprep.subr.bf16.mxu1 %v6477_v46  ;;  %v6517_v5 = vcombine.high %v1153_v2, %v1157_v12  ;;  %v6519_v46 = vcombine.high %v1154_v21, %v1158_v31  ;;  %v1198_v2 = vld [vmem:[#allocation10 + $0x978] sm:$0xff] }
 0x384   :  { %4980 = vmatprep.subr.bf16.mxu0 %v6479_v60  ;;  %v1161_v60 = vld [vmem:[#allocation10 + $0x850] sm:$0xff] }
 0x385   :  { %v6524_v33 = vcombine.low %v1161_v60, %v1165_v41 }
 0x386   :  { %4689 = vmatpush1.bf16.msra.mxu1 %v6476_v23  ;;  %v6518_v23 = vcombine.low %v1154_v21, %v1158_v31  ;;  %v1201_v31 = vld [vmem:[#allocation10 + $0x990] sm:$0xff] }
 0x387   :  { %4981 = vmatpush1.bf16.msra.mxu0 %v6478_v10  ;;  %4690 = vmatprep.subr.bf16.mxu1 %v6485_v38  ;;  %v6525_v10 = vcombine.high %v1161_v60, %v1165_v41  ;;  %v6527_v38 = vcombine.high %v1162_v3, %v1166_v1 }
 0x388   :  { %4982 = vmatprep.subr.bf16.mxu0 %v6487_v15  ;;  %v1169_v15 = vld [vmem:[#allocation10 + $0x890] sm:$0xff] }
 0x38a   :  { %4691 = vmatpush1.bf16.msra.mxu1 %v6484_v34  ;;  %v6526_v34 = vcombine.low %v1162_v3, %v1166_v1  ;;  %v1209_v1 = vld [vmem:[#allocation10 + $0x9d0] sm:$0xff] }
 0x38b   :  { %4983 = vmatpush1.bf16.msra.mxu0 %v6486_v40  ;;  %4692 = vmatprep.subr.bf16.mxu1 %v6493_v53  ;;  %v6533_v40 = vcombine.high %v1169_v15, %v1173_v37  ;;  %v6535_v53 = vcombine.high %v1170_v4, %v1174_v61  ;;  %v1221_v4 = vld [vmem:[#allocation10 + $0xa30] sm:$0xff]  ;;  %v1218_v61 = vld [vmem:[#allocation10 + $0xa18] sm:$0xff] }
 0x38c   :  { %4984 = vmatprep.subr.bf16.mxu0 %v6495_v20  ;;  %v1177_v20 = vld [vmem:[#allocation10 + $0x8d0] sm:$0xff] }
 0x38d   :  { %v6540_v42 = vcombine.low %v1177_v20, %v1181_v44 }
 0x38e   :  { %4693 = vmatpush1.bf16.msra.mxu1 %v6492_v62  ;;  %v6541_v62 = vcombine.high %v1177_v20, %v1181_v44  ;;  %v1225_v44 = vld [vmem:[#allocation10 + $0xa50] sm:$0xff] }
 0x38f   :  { %4985 = vmatpush1.bf16.msra.mxu0 %v6494_v26  ;;  %4694 = vmatprep.subr.bf16.mxu1 %v6501_v14  ;;  %v1185_v26 = vld [vmem:[#allocation10 + $0x910] sm:$0xff] }
 0x390   :  { %4986 = vmatprep.subr.bf16.mxu0 %v6503_v58  ;;  %v1189_v14 = vld [vmem:[#allocation10 + $0x930] sm:$0xff]  ;;  %v1186_v58 = vld [vmem:[#allocation10 + $0x918] sm:$0xff] }
 0x391   :  { %v6549_v55 = vcombine.high %v1185_v26, %v1189_v14  ;;  %v6550_v12 = vcombine.low %v1186_v58, %v1190_v30 }
 0x392   :  { %4695 = vmatpush1.bf16.msra.mxu1 %v6500_v56  ;;  %v6551_v56 = vcombine.high %v1186_v58, %v1190_v30  ;;  %v1238_v58 = vld [vmem:[#allocation10 + $0xab8] sm:$0xff] }
 0x393   :  { %4987 = vmatpush1.bf16.msra.mxu0 %v6502_v57  ;;  %4696 = vmatprep.subr.bf16.mxu1 %v6509_v50  ;;  %v1193_v57 = vld [vmem:[#allocation10 + $0x950] sm:$0xff] }
 0x394   :  { %4988 = vmatprep.subr.bf16.mxu0 %v6511_v17  ;;  %v1197_v50 = vld [vmem:[#allocation10 + $0x970] sm:$0xff]  ;;  %v1194_v17 = vld [vmem:[#allocation10 + $0x958] sm:$0xff] }
 0x395   :  { %v6557_v21 = vcombine.high %v1193_v57, %v1197_v50  ;;  %v6558_v60 = vcombine.low %v1194_v17, %v1198_v2 }
 0x396   :  { %4697 = vmatpush1.bf16.msra.mxu1 %v6508_v16  ;;  %v1205_v16 = vld [vmem:[#allocation10 + $0x9b0] sm:$0xff] }
 0x397   :  { %4989 = vmatpush1.bf16.msra.mxu0 %v6510_v27  ;;  %4739 = vmatprep.subr.bf16.mxu1 %v6517_v5  ;;  %v1202_v27 = vld [vmem:[#allocation10 + $0x998] sm:$0xff]  ;;  %v6565_v41 = vcombine.high %v1201_v31, %v1205_v16 }
 0x398   :  { %5031 = vmatprep.subr.bf16.mxu0 %v6519_v46  ;;  %v1206_v5 = vld [vmem:[#allocation10 + $0x9b8] sm:$0xff]  ;;  %v6556_v46 = vcombine.low %v1193_v57, %v1197_v50  ;;  %v1245_v57 = vld [vmem:[#allocation10 + $0xaf0] sm:$0xff] }
 0x399   :  { %4699 = vmatmul.mubr.bf16.vlgmr.msra.gmra.mrb[48].mxu1 %v7924_v35  ;;  %v6567_v3 = vcombine.high %v1202_v27, %v1206_v5  ;;  %v1242_v50 = vld [vmem:[#allocation10 + $0xad8] sm:$0xff] }
 0x39a   :  { %4991 = vmatmul.mubr.bf16.vlgmr.msra.gmra.mrb[56].mxu0 %v7924_v35  ;;  %4708 = vmatprep.mubr.bf16.mxu1 %v7992_v39  ;;  %v6532_v35 = vcombine.low %v1169_v15, %v1173_v37  ;;  %v1217_v37 = vld [vmem:[#allocation10 + $0xa10] sm:$0xff] }
 0x39b   :  { %4740 = vmatpush1.bf16.msra.mxu1 %v6516_v18  ;;  %5000 = vmatprep.mubr.bf16.mxu0 %v7992_v39  ;;  %v6543_v39 = vcombine.high %v1178_v0, %v1182_v19  ;;  %v1213_v18 = vld [vmem:[#allocation10 + $0x9f0] sm:$0xff]  ;;  %v1226_v19 = vld [vmem:[#allocation10 + $0xa58] sm:$0xff] }
 0x39c   :  { %5032 = vmatpush1.bf16.msra.mxu0 %v6518_v23  ;;  %4741 = vmatprep.subr.bf16.mxu1 %v6525_v10  ;;  %v1210_v23 = vld [vmem:[#allocation10 + $0x9d8] sm:$0xff]  ;;  %v6573_v15 = vcombine.high %v1209_v1, %v1213_v18  ;;  %v1229_v0 = vld [vmem:[#allocation10 + $0xa70] sm:$0xff] }
 0x39d   :  { %5033 = vmatprep.subr.bf16.mxu0 %v6527_v38  ;;  %v1214_v10 = vld [vmem:[#allocation10 + $0x9f8] sm:$0xff]  ;;  %v6566_v38 = vcombine.low %v1202_v27, %v1206_v5  ;;  %v6588_v30 = vcombine.low %v1225_v44, %v1229_v0 }
 0x39e   :  { %v1254_v27 = vld [vmem:[#allocation10 + $0xb38] sm:$0xff] }
 0x39f   :  { %4742 = vmatpush1.bf16.msra.mxu1 %v6524_v33  ;;  %v1222_v33 = vld [vmem:[#allocation10 + $0xa38] sm:$0xff] }
 0x3a0   :  { %5034 = vmatpush1.bf16.msra.mxu0 %v6526_v34  ;;  %4743 = vmatprep.subr.bf16.mxu1 %v6533_v40  ;;  %v6572_v34 = vcombine.low %v1209_v1, %v1213_v18  ;;  %v6574_v40 = vcombine.low %v1210_v23, %v1214_v10  ;;  %v6583_v20 = vcombine.high %v1218_v61, %v1222_v33  ;;  %v1261_v1 = vld [vmem:[#allocation10 + $0xb70] sm:$0xff]  ;;  %v1258_v18 = vld [vmem:[#allocation10 + $0xb58] sm:$0xff] }
 0x3a1   :  { %4709 = vmatmul.mubr.bf16.gmra.mrb[52].mxu1 %v7984_v52  ;;  %5035 = vmatprep.subr.bf16.mxu0 %v6535_v53  ;;  %v6581_v53 = vcombine.high %v1217_v37, %v1221_v4 }
 0x3a2   :  { %5001 = vmatmul.mubr.bf16.gmra.mrb[60].mxu0 %v7984_v52  ;;  %4718 = vmatprep.mubr.bf16.mxu1 %v8055_v7  ;;  %v6548_v52 = vcombine.low %v1185_v26, %v1189_v14  ;;  %v1237_v26 = vld [vmem:[#allocation10 + $0xab0] sm:$0xff]  ;;  %v1234_v14 = vld [vmem:[#allocation10 + $0xa98] sm:$0xff] }
 0x3a3   :  { %4744 = vmatpush1.bf16.msra.mxu1 %v6532_v35  ;;  %5010 = vmatprep.mubr.bf16.mxu0 %v8055_v7  ;;  %v6559_v7 = vcombine.high %v1194_v17, %v1198_v2  ;;  %v1230_v35 = vld [vmem:[#allocation10 + $0xa78] sm:$0xff] }
 0x3a4   :  { %5036 = vmatpush1.bf16.msra.mxu0 %v6534_v24  ;;  %4745 = vmatprep.subr.bf16.mxu1 %v6541_v62  ;;  %v6582_v24 = vcombine.low %v1218_v61, %v1222_v33  ;;  %v6589_v62 = vcombine.high %v1225_v44, %v1229_v0  ;;  %v1246_v17 = vld [vmem:[#allocation10 + $0xaf8] sm:$0xff]  ;;  %v1277_v44 = vld [vmem:[#allocation10 + $0xbf0] sm:$0xff] }
 0x3a5   :  { %5037 = vmatprep.subr.bf16.mxu0 %v6543_v39  ;;  %v6591_v39 = vcombine.high %v1226_v19, %v1230_v35  ;;  %v1270_v61 = vld [vmem:[#allocation10 + $0xbb8] sm:$0xff] }
 0x3a6   :  { %v1274_v0 = vld [vmem:[#allocation10 + $0xbd8] sm:$0xff] }
 0x3a7   :  { %4746 = vmatpush1.bf16.msra.mxu1 %v6540_v42  ;;  %v6590_v42 = vcombine.low %v1226_v19, %v1230_v35  ;;  %v1278_v19 = vld [vmem:[#allocation10 + $0xbf8] sm:$0xff] }
 0x3a8   :  { %5038 = vmatpush1.bf16.msra.mxu0 %v6542_v45  ;;  %4747 = vmatprep.subr.bf16.mxu1 %v6549_v55  ;;  %v6599_v55 = vcombine.high %v1234_v14, %v1238_v58 }
 0x3a9   :  { %4719 = vmatmul.mubr.bf16.gmra.mrb[56].mxu1 %v8041_v11  ;;  %5039 = vmatprep.subr.bf16.mxu0 %v6551_v56  ;;  %v1241_v56 = vld [vmem:[#allocation10 + $0xad0] sm:$0xff] }
 0x3aa   :  { %5011 = vmatmul.mubr.bf16.gmra.mrb[64].mxu0 %v8041_v11  ;;  %4728 = vmatprep.mubr.bf16.mxu1 %v8131_v36  ;;  %v6564_v11 = vcombine.low %v1201_v31, %v1205_v16  ;;  %v1253_v31 = vld [vmem:[#allocation10 + $0xb30] sm:$0xff]  ;;  %v1250_v16 = vld [vmem:[#allocation10 + $0xb18] sm:$0xff]  ;;  %v6604_v5 = vcombine.low %v1241_v56, %v1245_v57 }
 0x3ab   :  { %4748 = vmatpush1.bf16.msra.mxu1 %v6548_v52  ;;  %5020 = vmatprep.mubr.bf16.mxu0 %v8131_v36  ;;  %v6575_v36 = vcombine.high %v1210_v23, %v1214_v10  ;;  %v6598_v52 = vcombine.low %v1234_v14, %v1238_v58  ;;  %v1262_v23 = vld [vmem:[#allocation10 + $0xb78] sm:$0xff] }
 0x3ac   :  { %5040 = vmatpush1.bf16.msra.mxu0 %v6550_v12  ;;  %4749 = vmatprep.subr.bf16.mxu1 %v6557_v21  ;;  %v6605_v12 = vcombine.high %v1241_v56, %v1245_v57  ;;  %v6607_v21 = vcombine.high %v1242_v50, %v1246_v17  ;;  %v1286_v14 = vld [vmem:[#allocation10 + $0xc38] sm:$0xff]  ;;  %v1293_v56 = vld [vmem:[#allocation10 + $0xc70] sm:$0xff] }
 0x3ad   :  { %5041 = vmatprep.subr.bf16.mxu0 %v6559_v7  ;;  %v1249_v7 = vld [vmem:[#allocation10 + $0xb10] sm:$0xff]  ;;  %v1290_v57 = vld [vmem:[#allocation10 + $0xc58] sm:$0xff] }
 0x3ae   :  { %v6612_v10 = vcombine.low %v1249_v7, %v1253_v31 }
 0x3af   :  { %4750 = vmatpush1.bf16.msra.mxu1 %v6556_v46  ;;  %v6606_v46 = vcombine.low %v1242_v50, %v1246_v17  ;;  %v1294_v50 = vld [vmem:[#allocation10 + $0xc78] sm:$0xff] }
 0x3b0   :  { %5042 = vmatpush1.bf16.msra.mxu0 %v6558_v60  ;;  %4751 = vmatprep.subr.bf16.mxu1 %v6565_v41  ;;  %v6613_v60 = vcombine.high %v1249_v7, %v1253_v31  ;;  %v6615_v41 = vcombine.high %v1250_v16, %v1254_v27  ;;  %v1301_v7 = vld [vmem:[#allocation10 + $0xcb0] sm:$0xff]  ;;  %v1298_v31 = vld [vmem:[#allocation10 + $0xc98] sm:$0xff] }
 0x3b1   :  { %4729 = vmatmul.mubr.bf16.gmra.mrb[60].mxu1 %v8123_v43  ;;  %5043 = vmatprep.subr.bf16.mxu0 %v6567_v3  ;;  %v1257_v3 = vld [vmem:[#allocation10 + $0xb50] sm:$0xff] }
 0x3b2   :  { %5021 = vmatmul.mubr.bf16.gmra.mrb[68].mxu0 %v8123_v43  ;;  %4771 = vmatprep.mubr.bf16.mxu1 %v8180_v51  ;;  %v6580_v43 = vcombine.low %v1217_v37, %v1221_v4  ;;  %v1269_v37 = vld [vmem:[#allocation10 + $0xbb0] sm:$0xff]  ;;  %v1266_v4 = vld [vmem:[#allocation10 + $0xb98] sm:$0xff]  ;;  %v6620_v33 = vcombine.low %v1257_v3, %v1261_v1 }
 0x3b3   :  { %4752 = vmatpush1.bf16.msra.mxu1 %v6564_v11  ;;  %5063 = vmatprep.mubr.bf16.mxu0 %v8180_v51  ;;  %v1233_v51 = vld [vmem:[#allocation10 + $0xa90] sm:$0xff]  ;;  %v6614_v11 = vcombine.low %v1250_v16, %v1254_v27  ;;  %v1302_v16 = vld [vmem:[#allocation10 + $0xcb8] sm:$0xff] }
 0x3b4   :  { %5044 = vmatpush1.bf16.msra.mxu0 %v6566_v38  ;;  %4753 = vmatprep.subr.bf16.mxu1 %v6573_v15  ;;  %v6597_v45 = vcombine.high %v1233_v51, %v1237_v26  ;;  %v6596_v2 = vcombine.low %v1233_v51, %v1237_v26  ;;  %v6621_v38 = vcombine.high %v1257_v3, %v1261_v1  ;;  %v1285_v51 = vld [vmem:[#allocation10 + $0xc30] sm:$0xff]  ;;  %v1282_v26 = vld [vmem:[#allocation10 + $0xc18] sm:$0xff] }
 0x3b5   :  { %5045 = vmatprep.subr.bf16.mxu0 %v6575_v36  ;;  %v6623_v15 = vcombine.high %v1258_v18, %v1262_v23  ;;  %v1265_v36 = vld [vmem:[#allocation10 + $0xb90] sm:$0xff]  ;;  %v1306_v1 = vld [vmem:[#allocation10 + $0xcd8] sm:$0xff] }
 0x3b6   :  { %v6628_v35 = vcombine.low %v1265_v36, %v1269_v37  ;;  %v1309_v3 = vld [vmem:[#allocation10 + $0xcf0] sm:$0xff] }
 0x3b7   :  { %4754 = vmatpush1.bf16.msra.mxu1 %v6572_v34  ;;  %v6622_v34 = vcombine.low %v1258_v18, %v1262_v23  ;;  %v1310_v18 = vld [vmem:[#allocation10 + $0xcf8] sm:$0xff]  ;;  %v6662_v23 = vcombine.low %v1298_v31, %v1302_v16 }
 0x3b8   :  { %5046 = vmatpush1.bf16.msra.mxu0 %v6574_v40  ;;  %4755 = vmatprep.subr.bf16.mxu1 %v6581_v53  ;;  %v6629_v40 = vcombine.high %v1265_v36, %v1269_v37  ;;  %v6631_v53 = vcombine.high %v1266_v4, %v1270_v61  ;;  %v1318_v36 = vld [vmem:[#allocation10 + $0xd38] sm:$0xff] }
 0x3b9   :  { %5047 = vmatprep.subr.bf16.mxu0 %v6583_v20  ;;  %v1273_v20 = vld [vmem:[#allocation10 + $0xbd0] sm:$0xff] }
 0x3ba   :  { %v6636_v58 = vcombine.low %v1273_v20, %v1277_v44 }
 0x3bb   :  { %4756 = vmatpush1.bf16.msra.mxu1 %v6580_v43  ;;  %v6630_v43 = vcombine.low %v1266_v4, %v1270_v61  ;;  %v8372_v4 = vld [vmem:[#allocation11] sm:$0xff]  ;;  %v6670_v61 = vcombine.low %v1306_v1, %v1310_v18 }
 0x3bc   :  { %5048 = vmatpush1.bf16.msra.mxu0 %v6582_v24  ;;  %4757 = vmatprep.subr.bf16.mxu1 %v6589_v62  ;;  %v6637_v24 = vcombine.high %v1273_v20, %v1277_v44  ;;  %v6639_v62 = vcombine.high %v1274_v0, %v1278_v19  ;;  %v8688_v20 = vld [vmem:[#allocation23_spill] sm:$0xff] }
 0x3bd   :  { %5049 = vmatprep.subr.bf16.mxu0 %v6591_v39  ;;  %v1281_v39 = vld [vmem:[#allocation10 + $0xc10] sm:$0xff] }
 0x3be   :  { %v6644_v17 = vcombine.low %v1281_v39, %v1285_v51 }
 0x3bf   :  { %4758 = vmatpush1.bf16.msra.mxu1 %v6588_v30  ;;  %v6638_v30 = vcombine.low %v1274_v0, %v1278_v19  ;;  %v1322_v0 = vld [vmem:[#allocation10 + $0xd58] sm:$0xff] }
 0x3c0   :  { %5050 = vmatpush1.bf16.msra.mxu0 %v6590_v42  ;;  %4759 = vmatprep.subr.bf16.mxu1 %v6597_v45  ;;  %v6645_v42 = vcombine.high %v1281_v39, %v1285_v51  ;;  %v6647_v45 = vcombine.high %v1282_v26, %v1286_v14  ;;  %v1326_v19 = vld [vmem:[#allocation10 + $0xd78] sm:$0xff]  ;;  %v8692_v51 = vsub.s32 3, %v8688_v20 }
 0x3c1   :  { %5051 = vmatprep.subr.bf16.mxu0 %v6599_v55  ;;  %v1289_v55 = vld [vmem:[#allocation10 + $0xc50] sm:$0xff] }
 0x3c2   :  { %v6652_v27 = vcombine.low %v1289_v55, %v1293_v56 }
 0x3c3   :  { %4760 = vmatpush1.bf16.msra.mxu1 %v6596_v2  ;;  %v6646_v2 = vcombine.low %v1282_v26, %v1286_v14  ;;  %v8392_v26 = vrot.slane %v8372_v4, %v8692_v51 }
 0x3c4   :  { %5052 = vmatpush1.bf16.msra.mxu0 %v6598_v52  ;;  %4761 = vmatprep.subr.bf16.mxu1 %v6605_v12  ;;  %v6653_v52 = vcombine.high %v1289_v55, %v1293_v56  ;;  %v6655_v12 = vcombine.high %v1290_v57, %v1294_v50 }
 0x3c5   :  { %5053 = vmatprep.subr.bf16.mxu0 %v6607_v21  ;;  %v1297_v21 = vld [vmem:[#allocation10 + $0xc90] sm:$0xff] }
 0x3c7   :  { %4762 = vmatpush1.bf16.msra.mxu1 %v6604_v5  ;;  %v6654_v5 = vcombine.low %v1290_v57, %v1294_v50 }
 0x3c8   :  { %5054 = vmatpush1.bf16.msra.mxu0 %v6606_v46  ;;  %4763 = vmatprep.subr.bf16.mxu1 %v6613_v60  ;;  %v6661_v46 = vcombine.high %v1297_v21, %v1301_v7  ;;  %v6663_v60 = vcombine.high %v1298_v31, %v1302_v16 }
 0x3c9   :  { %5055 = vmatprep.subr.bf16.mxu0 %v6615_v41  ;;  %v1305_v41 = vld [vmem:[#allocation10 + $0xcd0] sm:$0xff] }
 0x3ca   :  { %v6668_v37 = vcombine.low %v1305_v41, %v1309_v3 }
 0x3cb   :  { %4764 = vmatpush1.bf16.msra.mxu1 %v6612_v10  ;;  %v6669_v10 = vcombine.high %v1305_v41, %v1309_v3 }
 0x3cc   :  { %5056 = vmatpush1.bf16.msra.mxu0 %v6614_v11  ;;  %4765 = vmatprep.subr.bf16.mxu1 %v6621_v38  ;;  %v1313_v11 = vld [vmem:[#allocation10 + $0xd10] sm:$0xff] }
 0x3cd   :  { %5057 = vmatprep.subr.bf16.mxu0 %v6623_v15  ;;  %v1317_v38 = vld [vmem:[#allocation10 + $0xd30] sm:$0xff]  ;;  %v1314_v15 = vld [vmem:[#allocation10 + $0xd18] sm:$0xff] }
 0x3ce   :  { %v6678_v39 = vcombine.low %v1314_v15, %v1318_v36 }
 0x3cf   :  { %4766 = vmatpush1.bf16.msra.mxu1 %v6620_v33  ;;  %v6677_v33 = vcombine.high %v1313_v11, %v1317_v38 }
 0x3d0   :  { %5058 = vmatpush1.bf16.msra.mxu0 %v6622_v34  ;;  %4767 = vmatprep.subr.bf16.mxu1 %v6629_v40  ;;  %v6679_v34 = vcombine.high %v1314_v15, %v1318_v36  ;;  %v1321_v40 = vld [vmem:[#allocation10 + $0xd50] sm:$0xff]  ;;  %v8428_v15 = vld [vmem:[#allocation10 + $0xdf8] sm:$0xff] }
 0x3d1   :  { %5059 = vmatprep.subr.bf16.mxu0 %v6631_v53  ;;  %v1325_v53 = vld [vmem:[#allocation10 + $0xd70] sm:$0xff] }
 0x3d2   :  { %v6685_v14 = vcombine.high %v1321_v40, %v1325_v53  ;;  %v6684_v50 = vcombine.low %v1321_v40, %v1325_v53 }
 0x3d3   :  { %4768 = vmatpush1.bf16.msra.mxu1 %v6628_v35  ;;  %v8690_v35 = vsub.s32 2, %v8688_v20 }
 0x3d4   :  { %5060 = vmatpush1.bf16.msra.mxu0 %v6630_v43  ;;  %4769 = vmatprep.subr.bf16.mxu1 %v6637_v24  ;;  %v8691_v24 = vsub.s32 1, %v8688_v20 }
 0x3d5   :  { %5061 = vmatprep.subr.bf16.mxu0 %v6639_v62  ;;  %v8382_v43 = vrot.slane %v8372_v4, %v8690_v35 }
 0x3d6   :  { %v8387_v62 = vrot.slane %v8372_v4, %v8691_v24  ;;  %v8441_v24 = vld [vmem:[#allocation10 + $0xe10] sm:$0xff] }
 0x3d7   :  { %4770 = vmatpush1.bf16.msra.mxu1 %v6636_v58 }
 0x3d8   :  { %5062 = vmatpush1.bf16.msra.mxu0 %v6638_v30  ;;  %4812 = vmatprep.subr.bf16.mxu1 %v6645_v42  ;;  %v6687_v30 = vcombine.high %v1322_v0, %v1326_v19  ;;  %v8395_v42 = vld [vmem:[#allocation10 + $0xd90] sm:$0xff] }
 0x3d9   :  { %5104 = vmatprep.subr.bf16.mxu0 %v6647_v45  ;;  %v8397_v45 = vld [vmem:[#allocation10 + $0xdb0] sm:$0xff] }
 0x3da   :  { %4772 = vmatmul.mubr.bf16.vlgmr.msra.gmra.mrb[48].mxu1 %v8172_v28  ;;  %v6692_v3 = vcombine.low %v8395_v42, %v8397_v45 }
 0x3db   :  { %5064 = vmatmul.mubr.bf16.vlgmr.msra.gmra.mrb[56].mxu0 %v8172_v28  ;;  %4781 = vmatprep.mubr.bf16.mxu1 %v8220_v49  ;;  %v6660_v28 = vcombine.low %v1297_v21, %v1301_v7 }
 0x3dc   :  { %4813 = vmatpush1.bf16.msra.mxu1 %v6644_v17  ;;  %5073 = vmatprep.mubr.bf16.mxu0 %v8220_v49  ;;  %v6671_v49 = vcombine.high %v1306_v1, %v1310_v18  ;;  %v8402_v17 = vld [vmem:[#allocation10 + $0xd98] sm:$0xff]  ;;  %v8419_v18 = vld [vmem:[#allocation10 + $0xdd0] sm:$0xff] }
 0x3dd   :  { %5105 = vmatpush1.bf16.msra.mxu0 %v6646_v2  ;;  %4814 = vmatprep.subr.bf16.mxu1 %v6653_v52  ;;  %v8404_v2 = vld [vmem:[#allocation10 + $0xdb8] sm:$0xff] }
 0x3de   :  { %5106 = vmatprep.subr.bf16.mxu0 %v6655_v12  ;;  %v6695_v1 = vcombine.high %v8402_v17, %v8404_v2 }
 0x3e0   :  { %4815 = vmatpush1.bf16.msra.mxu1 %v6652_v27 }
 0x3e1   :  { %5107 = vmatpush1.bf16.msra.mxu0 %v6654_v5  ;;  %4816 = vmatprep.subr.bf16.mxu1 %v6661_v46  ;;  %v6693_v46 = vcombine.high %v8395_v42, %v8397_v45  ;;  %v1346_v45 = vld [vmem:[#allocation10 + $0xe18] sm:$0xff] }
 0x3e2   :  { %4782 = vmatmul.mubr.bf16.gmra.mrb[52].mxu1 %v8212_v47  ;;  %5108 = vmatprep.subr.bf16.mxu0 %v6663_v60 }
 0x3e3   :  { %5074 = vmatmul.mubr.bf16.gmra.mrb[60].mxu0 %v8212_v47  ;;  %4791 = vmatprep.mubr.bf16.mxu1 %v8260_v9  ;;  %v8689_v47 = vsub.s32 0, %v8688_v20 }
 0x3e4   :  { %4817 = vmatpush1.bf16.msra.mxu1 %v6660_v28  ;;  %5083 = vmatprep.mubr.bf16.mxu0 %v8260_v9  ;;  %v6676_v9 = vcombine.low %v1313_v11, %v1317_v38  ;;  %v8421_v28 = vld [vmem:[#allocation10 + $0xdf0] sm:$0xff]  ;;  %v6694_v11 = vcombine.low %v8402_v17, %v8404_v2  ;;  %v8426_v38 = vld [vmem:[#allocation10 + $0xdd8] sm:$0xff] }
 0x3e5   :  { %5109 = vmatpush1.bf16.msra.mxu0 %v6662_v23  ;;  %4818 = vmatprep.subr.bf16.mxu1 %v6669_v10  ;;  %v8377_v44 = vrot.slane %v8372_v4, %v8689_v47  ;;  %v6701_v47 = vcombine.high %v8419_v18, %v8421_v28  ;;  %v6703_v35 = vcombine.high %v8426_v38, %v8428_v15 }
 0x3e6   :  { %5110 = vmatprep.subr.bf16.mxu0 %v6671_v49  ;;  %v6700_v42 = vcombine.low %v8419_v18, %v8421_v28  ;;  %v1358_v18 = vld [vmem:[#allocation10 + $0xe78] sm:$0xff] }
 0x3e8   :  { %4819 = vmatpush1.bf16.msra.mxu1 %v6668_v37 }
 0x3e9   :  { %5111 = vmatpush1.bf16.msra.mxu0 %v6670_v61  ;;  %4820 = vmatprep.subr.bf16.mxu1 %v6677_v33 }
 0x3ea   :  { %4792 = vmatmul.mubr.bf16.gmra.mrb[56].mxu1 %v8252_v54  ;;  %5112 = vmatprep.subr.bf16.mxu0 %v6679_v34  ;;  %v4262_v58 = vpop.f32.mrb[32].mxu1 }
 0x3eb   :  { %5084 = vmatmul.mubr.bf16.gmra.mrb[64].mxu0 %v8252_v54  ;;  %4801 = vmatprep.mubr.bf16.mxu1 %v8280_v8  ;;  %v7011_v55 = vadd.f32 %v4262_v58, %v8377_v44  ;;  %v4554_v56 = vpop.f32.mrb[40].mxu0  ;;  %v4264_v57 = vpop.f32.mrb[33].mxu1  ;;  %v6686_v54 = vcombine.low %v1322_v0, %v1326_v19 }
 0x3ec   :  { %4821 = vmatpush1.bf16.msra.mxu1 %v6676_v9  ;;  %5093 = vmatprep.mubr.bf16.mxu0 %v8280_v8  ;;  %v7027_v52 = vadd.f32 %v4554_v56, %v8382_v43  ;;  %v7012_v12 = vadd.f32 %v4264_v57, %v8387_v62  ;;  %v4556_v21 = vpop.f32.mrb[41].mxu0  ;;  %v4266_v7 = vpop.f32.mrb[34].mxu1 }
 0x3ed   :  { %5113 = vmatpush1.bf16.msra.mxu0 %v6678_v39  ;;  %v7028_v31 = vadd.f32 %v4556_v21, %v8392_v26  ;;  %4822 = vmatprep.subr.bf16.mxu1 %v6685_v14  ;;  %v7013_v16 = vadd.f32 %v4266_v7, %v8377_v44  ;;  %v4558_v27 = vpop.f32.mrb[42].mxu0  ;;  %v4268_v5 = vpop.f32.mrb[35].mxu1  ;;  %v5177_v23 = vmax.f32 %v7011_v55, 0.0  ;;  %v1349_v39 = vld [vmem:[#allocation10 + $0xe30] sm:$0xff]  ;;  %v1350_v55 = vld [vmem:[#allocation10 + $0xe38] sm:$0xff] }
 0x3ee   :  { %5114 = vmatprep.subr.bf16.mxu0 %v6687_v30  ;;  %v7029_v8 = vadd.f32 %v4558_v27, %v8382_v43  ;;  %v7014_v60 = vadd.f32 %v4268_v5, %v8387_v62  ;;  %v4560_v41 = vpop.f32.mrb[43].mxu0  ;;  %v5179_v36 = vmax.f32 %v7027_v52, 0.0  ;;  %v5178_v37 = vmax.f32 %v7012_v12, 0.0  ;;  %v8461_v5 = vld [vmem:[#allocation10 + $0xe50] sm:$0xff] }
 0x3ef   :  { %v5185_v10 = vmax.f32 %v7013_v16, 0.0  ;;  %v7030_v49 = vadd.f32 %v4560_v41, %v8392_v26  ;;  %v5180_v34 = vmax.f32 %v7028_v31, 0.0  ;;  %v6708_v16 = vcombine.low %v8441_v24, %v1349_v39 }
 0x3f0   :  { %v5187_v61 = vmax.f32 %v7029_v8, 0.0  ;;  %4823 = vmatpush1.bf16.msra.mxu1 %v6684_v50  ;;  %v5186_v33 = vmax.f32 %v7014_v60, 0.0  ;;  %v6711_v27 = vcombine.high %v1346_v45, %v1350_v55 }
 0x3f1   :  { %v8430_v40 = vpack.c.bf16 %v5185_v10, %v5177_v23  ;;  %5115 = vmatpush1.bf16.msra.mxu0 %v6686_v54  ;;  %v5188_v53 = vmax.f32 %v7030_v49, 0.0  ;;  %4824 = vmatprep.subr.bf16.mxu1 %v6693_v46  ;;  %v6709_v54 = vcombine.high %v8441_v24, %v1349_v39  ;;  %v1357_v46 = vld [vmem:[#allocation10 + $0xe70] sm:$0xff] }
 0x3f2   :  { %v8434_v0 = vpack.c.bf16 %v5187_v61, %v5179_v36  ;;  %v8436_v19 = vpack.c.bf16 %v5186_v33, %v5178_v37  ;;  %4802 = vmatmul.mubr.bf16.gmra.mrb[60].mxu1 %v8276_v22  ;;  %5116 = vmatprep.subr.bf16.mxu0 %v6695_v1  ;;  %v4272_v9 = vpop.f32.mrb[36].mxu1  ;;  %v1354_v1 = vld [vmem:[#allocation10 + $0xe58] sm:$0xff]  ;;  %v6717_v36 = vcombine.high %v8461_v5, %v1357_v46 }
 0x3f3   :  { %v8443_v51 = vpack.c.bf16 %v5188_v53, %v5180_v34  ;;  %5094 = vmatmul.mubr.bf16.gmra.mrb[68].mxu0 %v8276_v22  ;;  %4844 = vmatprep.mubr.bf16.mxu1 %v8182_v13  ;;  %v7015_v14 = vadd.f32 %v4272_v9, %v8377_v44  ;;  %v4564_v58 = vpop.f32.mrb[44].mxu0  ;;  %v4274_v30 = vpop.f32.mrb[37].mxu1  ;;  %v6702_v22 = vcombine.low %v8426_v38, %v8428_v15  ;;  %v1361_v53 = vld [vmem:[#allocation10 + $0xe90] sm:$0xff] }
 0x3f4   :  { %4825 = vmatpush1.bf16.msra.mxu1 %v6692_v3  ;;  %5136 = vmatprep.mubr.bf16.mxu0 %v8182_v13  ;;  %v7031_v56 = vadd.f32 %v4564_v58, %v8382_v43  ;;  %v7016_v57 = vadd.f32 %v4274_v30, %v8387_v62  ;;  %v4566_v50 = vpop.f32.mrb[45].mxu0  ;;  %v4276_v17 = vpop.f32.mrb[38].mxu1  ;;  %v6710_v3 = vcombine.low %v1346_v45, %v1350_v55  ;;  %v1366_v58 = vld [vmem:[#allocation10 + $0xeb8] sm:$0xff] }
 0x3f5   :  { %5117 = vmatpush1.bf16.msra.mxu0 %v6694_v11  ;;  %v7032_v2 = vadd.f32 %v4566_v50, %v8392_v26  ;;  %4826 = vmatprep.subr.bf16.mxu1 %v6701_v47  ;;  %v7017_v52 = vadd.f32 %v4276_v17, %v8377_v44  ;;  %v4568_v12 = vpop.f32.mrb[46].mxu0  ;;  %v4278_v21 = vpop.f32.mrb[39].mxu1  ;;  %v5193_v8 = vmax.f32 %v7015_v14, 0.0  ;;  %v6719_v34 = vcombine.high %v1354_v1, %v1358_v18  ;;  %v1365_v47 = vld [vmem:[#allocation10 + $0xeb0] sm:$0xff]  ;;  %v1362_v14 = vld [vmem:[#allocation10 + $0xe98] sm:$0xff] }
 0x3f6   :  { %5118 = vmatprep.subr.bf16.mxu0 %v6703_v35  ;;  %v7033_v13 = vadd.f32 %v4568_v12, %v8382_v43  ;;  %v7018_v7 = vadd.f32 %v4278_v21, %v8387_v62  ;;  %v4570_v31 = vpop.f32.mrb[47].mxu0  ;;  %v5195_v28 = vmax.f32 %v7031_v56, 0.0  ;;  %v5194_v23 = vmax.f32 %v7016_v57, 0.0 }
 0x3f7   :  { %v5201_v60 = vmax.f32 %v7017_v52, 0.0  ;;  %v7034_v41 = vadd.f32 %v4570_v31, %v8392_v26  ;;  %v5196_v11 = vmax.f32 %v7032_v2, 0.0  ;;  %v6716_v55 = vcombine.low %v8461_v5, %v1357_v46  ;;  %v8481_v31 = vld [vmem:[#allocation10 + $0xed0] sm:$0xff] }
 0x3f8   :  { %v5203_v10 = vmax.f32 %v7033_v13, 0.0  ;;  %4827 = vmatpush1.bf16.msra.mxu1 %v6700_v42  ;;  %v5202_v49 = vmax.f32 %v7018_v7, 0.0  ;;  %v6718_v56 = vcombine.low %v1354_v1, %v1358_v18  ;;  %v6725_v52 = vcombine.high %v1361_v53, %v1365_v47 }
 0x3f9   :  { %v8464_v38 = vpack.c.bf16 %v5201_v60, %v5193_v8  ;;  %5119 = vmatpush1.bf16.msra.mxu0 %v6702_v22  ;;  %v5204_v15 = vmax.f32 %v7034_v41, 0.0  ;;  %4828 = vmatprep.subr.bf16.mxu1 %v6709_v54  ;;  %v6724_v13 = vcombine.low %v1361_v53, %v1365_v47  ;;  %v6727_v7 = vcombine.high %v1362_v14, %v1366_v58  ;;  %v1370_v60 = vld [vmem:[#allocation10 + $0xed8] sm:$0xff]  ;;  %v1377_v53 = vld [vmem:[#allocation10 + $0xf10] sm:$0xff] }
 0x3fa   :  { %v8467_v37 = vpack.c.bf16 %v5203_v10, %v5195_v28  ;;  %v8469_v61 = vpack.c.bf16 %v5202_v49, %v5194_v23  ;;  %5120 = vmatprep.subr.bf16.mxu0 %v6711_v27  ;;  %v4282_v33 = vpop.f32.mrb[40].mxu1  ;;  %v6726_v8 = vcombine.low %v1362_v14, %v1366_v58  ;;  %v1374_v41 = vld [vmem:[#allocation10 + $0xef8] sm:$0xff]  ;;  %v1381_v47 = vld [vmem:[#allocation10 + $0xf30] sm:$0xff] }
 0x3fb   :  { %v8471_v9 = vpack.c.bf16 %v5204_v15, %v5196_v11  ;;  %v7019_v35 = vadd.f32 %v4282_v33, %v8377_v44  ;;  %v4574_v24 = vpop.f32.mrb[48].mxu0  ;;  %v4284_v39 = vpop.f32.mrb[41].mxu1  ;;  %v1378_v58 = vld [vmem:[#allocation10 + $0xf18] sm:$0xff] }
 0x3fc   :  { %4829 = vmatpush1.bf16.msra.mxu1 %v6708_v16  ;;  %v7035_v30 = vadd.f32 %v4574_v24, %v8382_v43  ;;  %v7020_v42 = vadd.f32 %v4284_v39, %v8387_v62  ;;  %v4576_v45 = vpop.f32.mrb[49].mxu0  ;;  %v4286_v57 = vpop.f32.mrb[42].mxu1  ;;  %v1373_v16 = vld [vmem:[#allocation10 + $0xef0] sm:$0xff] }
 0x3fd   :  { %5121 = vmatpush1.bf16.msra.mxu0 %v6710_v3  ;;  %v7036_v50 = vadd.f32 %v4576_v45, %v8392_v26  ;;  %4830 = vmatprep.subr.bf16.mxu1 %v6717_v36  ;;  %v7021_v22 = vadd.f32 %v4286_v57, %v8377_v44  ;;  %v4578_v17 = vpop.f32.mrb[50].mxu0  ;;  %v4288_v2 = vpop.f32.mrb[43].mxu1  ;;  %v5209_v27 = vmax.f32 %v7019_v35, 0.0  ;;  %v6733_v11 = vcombine.high %v8481_v31, %v1373_v16 }
 0x3fe   :  { %5122 = vmatprep.subr.bf16.mxu0 %v6719_v34  ;;  %v7037_v12 = vadd.f32 %v4578_v17, %v8382_v43  ;;  %v7022_v21 = vadd.f32 %v4288_v2, %v8387_v62  ;;  %v4580_v54 = vpop.f32.mrb[51].mxu0  ;;  %v5211_v3 = vmax.f32 %v7035_v30, 0.0  ;;  %v5210_v1 = vmax.f32 %v7020_v42, 0.0  ;;  %v1382_v30 = vld [vmem:[#allocation10 + $0xf38] sm:$0xff] }
 0x3ff   :  { %v5217_v5 = vmax.f32 %v7021_v22, 0.0  ;;  %v7038_v46 = vadd.f32 %v4580_v54, %v8392_v26  ;;  %v5212_v23 = vmax.f32 %v7036_v50, 0.0  ;;  %v6735_v34 = vcombine.high %v1370_v60, %v1374_v41 }
 0x400   :  { %v5219_v18 = vmax.f32 %v7037_v12, 0.0  ;;  %4831 = vmatpush1.bf16.msra.mxu1 %v6716_v55  ;;  %v5218_v28 = vmax.f32 %v7022_v21, 0.0  ;;  %v6734_v57 = vcombine.low %v1370_v60, %v1374_v41  ;;  %v6741_v12 = vcombine.high %v1377_v53, %v1381_v47  ;;  %v1386_v41 = vld [vmem:[#allocation10 + $0xf58] sm:$0xff] }
 0x401   :  { %v8484_v10 = vpack.c.bf16 %v5217_v5, %v5209_v27  ;;  %5123 = vmatpush1.bf16.msra.mxu0 %v6718_v56  ;;  %v5220_v49 = vmax.f32 %v7038_v46, 0.0  ;;  %4832 = vmatprep.subr.bf16.mxu1 %v6725_v52  ;;  %v6732_v56 = vcombine.low %v8481_v31, %v1373_v16  ;;  %v6743_v27 = vcombine.high %v1378_v58, %v1382_v30  ;;  %v1385_v31 = vld [vmem:[#allocation10 + $0xf50] sm:$0xff] }
 0x402   :  { %v8487_v15 = vpack.c.bf16 %v5219_v18, %v5211_v3  ;;  %v8489_v36 = vpack.c.bf16 %v5218_v28, %v5210_v1  ;;  %5124 = vmatprep.subr.bf16.mxu0 %v6727_v7  ;;  %v4292_v33 = vpop.f32.mrb[44].mxu1  ;;  %v6740_v7 = vcombine.low %v1377_v53, %v1381_v47  ;;  %v1389_v16 = vld [vmem:[#allocation10 + $0xf70] sm:$0xff]  ;;  %v6742_v60 = vcombine.low %v1378_v58, %v1382_v30 }
 0x403   :  { %v8491_v35 = vpack.c.bf16 %v5220_v49, %v5212_v23  ;;  %v7023_v24 = vadd.f32 %v4292_v33, %v8377_v44  ;;  %v4584_v39 = vpop.f32.mrb[52].mxu0  ;;  %v4294_v14 = vpop.f32.mrb[45].mxu1  ;;  %v6749_v49 = vcombine.high %v1385_v31, %v1389_v16  ;;  %v1397_v53 = vld [vmem:[#allocation10 + $0xfb0] sm:$0xff] }
 0x404   :  { %4833 = vmatpush1.bf16.msra.mxu1 %v6724_v13  ;;  %v7039_v42 = vadd.f32 %v4584_v39, %v8382_v43  ;;  %v7024_v45 = vadd.f32 %v4294_v14, %v8387_v62  ;;  %v4586_v55 = vpop.f32.mrb[53].mxu0  ;;  %v4296_v50 = vpop.f32.mrb[46].mxu1  ;;  %v1398_v39 = vld [vmem:[#allocation10 + $0xfb8] sm:$0xff]  ;;  %v6748_v14 = vcombine.low %v1385_v31, %v1389_v16  ;;  %v7290_v31 = vld [vmem:[#allocation13 + $0xc8] sm:$0xff]  }
 0x405   :  { %5125 = vmatpush1.bf16.msra.mxu0 %v6726_v8  ;;  %v7040_v22 = vadd.f32 %v4586_v55, %v8392_v26  ;;  %4834 = vmatprep.subr.bf16.mxu1 %v6733_v11  ;;  %v7025_v17 = vadd.f32 %v4296_v50, %v8377_v44  ;;  %v4588_v2 = vpop.f32.mrb[54].mxu0  ;;  %v4298_v52 = vpop.f32.mrb[47].mxu1  ;;  %v5225_v5 = vmax.f32 %v7023_v24, 0.0  ;;  %v1390_v44 = vld [vmem:[#allocation10 + $0xf78] sm:$0xff]  ;;  %v1405_v55 = vld [vmem:[#allocation10 + $0xff0] sm:$0xff] }
 0x406   :  { %5126 = vmatprep.subr.bf16.mxu0 %v6735_v34  ;;  %v7041_v21 = vadd.f32 %v4588_v2, %v8382_v43  ;;  %v7026_v54 = vadd.f32 %v4298_v52, %v8387_v62  ;;  %v4590_v13 = vpop.f32.mrb[55].mxu0  ;;  %v5227_v3 = vmax.f32 %v7039_v42, 0.0  ;;  %v5226_v1 = vmax.f32 %v7024_v45, 0.0  ;;  %v1393_v34 = vld [vmem:[#allocation10 + $0xf90] sm:$0xff]  ;;  %v1394_v24 = vld [vmem:[#allocation10 + $0xf98] sm:$0xff] }
 0x407   :  { %v5233_v46 = vmax.f32 %v7025_v17, 0.0  ;;  %v7042_v8 = vadd.f32 %v4590_v13, %v8392_v26  ;;  %v5228_v43 = vmax.f32 %v7040_v22, 0.0  ;;  %v6751_v26 = vcombine.high %v1386_v41, %v1390_v44  ;;  %v1401_v45 = vld [vmem:[#allocation10 + $0xfd0] sm:$0xff]  ;;  %v7287_v13 = vld [vmem:[#allocation13] sm:$0xff]  }
 0x408   :  { %v5235_v18 = vmax.f32 %v7041_v21, 0.0  ;;  %4835 = vmatpush1.bf16.msra.mxu1 %v6732_v56  ;;  %v5234_v28 = vmax.f32 %v7026_v54, 0.0  ;;  %v6750_v58 = vcombine.low %v1386_v41, %v1390_v44  ;;  %v6757_v30 = vcombine.high %v1393_v34, %v1397_v53  ;;  %v1402_v56 = vld [vmem:[#allocation10 + $0xfd8] sm:$0xff]  ;;  %v7285_v21 = vld [vmem:[#allocation13 + $0x40] sm:$0xff]   ;;  %v7291_v16 = vld [vmem:[#allocation13 + $0x8] sm:$0xff]  }
 0x409   :  { %v8502_v23 = vpack.c.bf16 %v5233_v46, %v5225_v5  ;;  %5127 = vmatpush1.bf16.msra.mxu0 %v6734_v57  ;;  %v5236_v62 = vmax.f32 %v7042_v8, 0.0  ;;  %4836 = vmatprep.subr.bf16.mxu1 %v6741_v12  ;;  %v6759_v42 = vcombine.high %v1394_v24, %v1398_v39  ;;  %v1406_v57 = vld [vmem:[#allocation10 + $0xff8] sm:$0xff]  ;;  %v6756_v50 = vcombine.low %v1393_v34, %v1397_v53  ;;  %v7286_v54 = vld [vmem:[#allocation13 + $0xc0] sm:$0xff]   ;;  %v7292_v5 = vld [vmem:[#allocation13 + $0x88] sm:$0xff]  }
 0x40a   :  { %v8504_v11 = vpack.c.bf16 %v5235_v18, %v5227_v3  ;;  %v8506_v33 = vpack.c.bf16 %v5234_v28, %v5226_v1  ;;  %5128 = vmatprep.subr.bf16.mxu0 %v6743_v27  ;;  %v6758_v22 = vcombine.low %v1394_v24, %v1398_v39  ;;  %v6765_v17 = vcombine.high %v1401_v45, %v1405_v55  ;;  %v7289_v27 = vld [vmem:[#allocation13 + $0x48] sm:$0xff]   ;;  %v7293_v46 = vld [vmem:[#allocation13 + $0x50] sm:$0xff]   ;;  %v7297_v44 = vld [vmem:[#allocation13 + $0x58] sm:$0xff]  }
 0x40b   :  { %v8508_v47 = vpack.c.bf16 %v5236_v62, %v5228_v43  ;;  %v6767_v2 = vcombine.high %v1402_v56, %v1406_v57  ;;  %v6764_v52 = vcombine.low %v1401_v45, %v1405_v55  ;;  %v6766_v12 = vcombine.low %v1402_v56, %v1406_v57  ;;  %v7294_v8 = vld [vmem:[#allocation13 + $0xd0] sm:$0xff]   ;;  %v7300_v3 = vld [vmem:[#allocation13 + $0x98] sm:$0xff]   ;;  %v7301_v1 = vld [vmem:[#allocation13 + $0x60] sm:$0xff]  }
 0x40c   :  { %4837 = vmatpush1.bf16.msra.mxu1 %v6740_v7  ;;  %v7288_v7 = vld [vmem:[#allocation13 + $0x80] sm:$0xff]   ;;  %v7296_v41 = vld [vmem:[#allocation13 + $0x90] sm:$0xff]   ;;  %v7305_v62 = vld [vmem:[#allocation13 + $0x68] sm:$0xff]  }
 0x40d   :  { %5129 = vmatpush1.bf16.msra.mxu0 %v6742_v60  ;;  %4838 = vmatprep.subr.bf16.mxu1 %v6749_v49  ;;  %v7295_v60 = vld [vmem:[#allocation13 + $0x10] sm:$0xff]   ;;  %v7302_v18 = vld [vmem:[#allocation13 + $0xe0] sm:$0xff]   ;;  %v7308_v49 = vld [vmem:[#allocation13 + $0xa8] sm:$0xff]  }
 0x40e   :  { %5130 = vmatprep.subr.bf16.mxu0 %v6751_v26  ;;  %v7303_v28 = vld [vmem:[#allocation13 + $0x20] sm:$0xff]   ;;  %v7309_v26 = vld [vmem:[#allocation13 + $0x70] sm:$0xff]   ;;  %v7313_v39 = vld [vmem:[#allocation13 + $0x78] sm:$0xff]  }
 0x40f   :  { %v7304_v43 = vld [vmem:[#allocation13 + $0xa0] sm:$0xff]   ;;  %v7310_v34 = vld [vmem:[#allocation13 + $0xf0] sm:$0xff]   ;;  %v7321_v55 = vld [vmem:[#allocation13 + $0x148] sm:$0xff]  }
 0x410   :  { %4839 = vmatpush1.bf16.msra.mxu1 %v6748_v14  ;;  %v7311_v53 = vld [vmem:[#allocation13 + $0x30] sm:$0xff]   ;;  %v7316_v14 = vld [vmem:[#allocation13 + $0xb8] sm:$0xff]   ;;  %v7320_v45 = vld [vmem:[#allocation13 + $0x180] sm:$0xff]  }
 0x411   :  { %5131 = vmatpush1.bf16.msra.mxu0 %v6750_v58  ;;  %4840 = vmatprep.subr.bf16.mxu1 %v6757_v30  ;;  %v7312_v24 = vld [vmem:[#allocation13 + $0xb0] sm:$0xff]   ;;  %v7317_v58 = vld [vmem:[#allocation13 + $0x140] sm:$0xff]  }
 0x412   :  { %5132 = vmatprep.subr.bf16.mxu0 %v6759_v42  ;;  %v7319_v30 = vld [vmem:[#allocation13 + $0x1c0] sm:$0xff]   ;;  %v7325_v56 = vld [vmem:[#allocation13 + $0x150] sm:$0xff]  }
 0x413   :  { %v7318_v42 = vld [vmem:[#allocation13 + $0x100] sm:$0xff]   ;;  %v7327_v57 = vld [vmem:[#allocation13 + $0x1d0] sm:$0xff]  }
 0x414   :  { %4841 = vmatpush1.bf16.msra.mxu1 %v6756_v50  ;;  %v7326_v50 = vld [vmem:[#allocation13 + $0x110] sm:$0xff]  }
 0x415   :  { %5133 = vmatpush1.bf16.msra.mxu0 %v6758_v22  ;;  %4842 = vmatprep.subr.bf16.mxu1 %v6765_v17  ;;  %v7329_v22 = vld [vmem:[#allocation13 + $0x158] sm:$0xff]   ;;  %v7333_v17 = vld [vmem:[#allocation13 + $0x160] sm:$0xff]  }
 0x416   :  { %5134 = vmatprep.subr.bf16.mxu0 %v6767_v2  ;;  %v7335_v2 = vld [vmem:[#allocation13 + $0x1e0] sm:$0xff]  }
 0x418   :  { %4843 = vmatpush1.bf16.msra.mxu1 %v6764_v52  ;;  %v7334_v52 = vld [vmem:[#allocation13 + $0x120] sm:$0xff]  }
 0x419   :  { %5135 = vmatpush1.bf16.msra.mxu0 %v6766_v12  ;;  %6839 = vmatprep.subr.bf16.mxu1 %v7285_v21  ;;  %v7337_v12 = vld [vmem:[#allocation13 + $0x168] sm:$0xff]   ;;  %v7343_v21 = vld [vmem:[#allocation13 + $0x1f0] sm:$0xff]  }
 0x41a   :  { %6879 = vmatprep.subr.bf16.mxu0 %v7286_v54  ;;  %v7342_v54 = vld [vmem:[#allocation13 + $0x130] sm:$0xff]  }
 0x41b   :  { %4845 = vmatmul.mubr.bf16.vlgmr.msra.gmra.mrb[48].mxu1 %v8174_v29 }
 0x41c   :  { %5137 = vmatmul.mubr.bf16.vlgmr.msra.gmra.mrb[56].mxu0 %v8174_v29  ;;  %4854 = vmatprep.mubr.bf16.mxu1 %v8222_v32  ;;  %v7298_v29 = vld [vmem:[#allocation13 + $0xd8] sm:$0xff]  }
 0x41d   :  { %5146 = vmatprep.mubr.bf16.mxu0 %v8222_v32  ;;  %6840 = vmatpush3.bf16.msra.mxu1 %v7287_v13  ;;  %v7299_v32 = vld [vmem:[#allocation13 + $0x18] sm:$0xff]  }
 0x41e   :  { %6880 = vmatpush3.bf16.msra.mxu0 %v7288_v7  ;;  %6841 = vmatprep.subr.bf16.mxu1 %v7289_v27  ;;  %v7346_v13 = vld [vmem:[#allocation13 + $0x138] sm:$0xff]   ;;  %v8694_v27 = vsub.s32 6, %v8688_v20 }
 0x41f   :  { %6881 = vmatprep.subr.bf16.mxu0 %v7290_v31  ;;  %v7348_v7 = vld [vmem:[#allocation13 + $0x1b8] sm:$0xff]  }
 0x420   :  { %v8548_v31 = vrot.slane %v8372_v4, %v8694_v27 }
 0x421   :  { %6842 = vmatpush3.bf16.msra.mxu1 %v7291_v16  ;;  %v8695_v16 = vsub.s32 5, %v8688_v20 }
 0x422   :  { %6882 = vmatpush3.bf16.msra.mxu0 %v7292_v5  ;;  %6843 = vmatprep.subr.bf16.mxu1 %v7293_v46  ;;  %v8696_v46 = vsub.s32 7, %v8688_v20 }
 0x423   :  { %4855 = vmatmul.mubr.bf16.gmra.mrb[52].mxu1 %v8214_v25  ;;  %6883 = vmatprep.subr.bf16.mxu0 %v7294_v8  ;;  %v8553_v5 = vrot.slane %v8372_v4, %v8695_v16 }
 0x424   :  { %5147 = vmatmul.mubr.bf16.gmra.mrb[60].mxu0 %v8214_v25  ;;  %4864 = vmatprep.mubr.bf16.mxu1 %v8262_v48  ;;  %v7306_v25 = vld [vmem:[#allocation13 + $0xe8] sm:$0xff]   ;;  %v8558_v8 = vrot.slane %v8372_v4, %v8696_v46 }
 0x425   :  { %5156 = vmatprep.mubr.bf16.mxu0 %v8262_v48  ;;  %6844 = vmatpush3.bf16.msra.mxu1 %v7295_v60  ;;  %v7307_v48 = vld [vmem:[#allocation13 + $0x28] sm:$0xff]  }
 0x426   :  { %6884 = vmatpush3.bf16.msra.mxu0 %v7296_v41  ;;  %6845 = vmatprep.subr.bf16.mxu1 %v7297_v44 }
 0x427   :  { %6885 = vmatprep.subr.bf16.mxu0 %v7298_v29 }
 0x429   :  { %6846 = vmatpush3.bf16.msra.mxu1 %v7299_v32 }
 0x42a   :  { %6886 = vmatpush3.bf16.msra.mxu0 %v7300_v3  ;;  %6847 = vmatprep.subr.bf16.mxu1 %v7301_v1 }
 0x42b   :  { %4865 = vmatmul.mubr.bf16.gmra.mrb[56].mxu1 %v8254_v59  ;;  %6887 = vmatprep.subr.bf16.mxu0 %v7302_v18 }
 0x42c   :  { %5157 = vmatmul.mubr.bf16.gmra.mrb[64].mxu0 %v8254_v59  ;;  %4874 = vmatprep.mubr.bf16.mxu1 %v8282_v6  ;;  %v7314_v59 = vld [vmem:[#allocation13 + $0xf8] sm:$0xff]  }
 0x42d   :  { %5166 = vmatprep.mubr.bf16.mxu0 %v8282_v6  ;;  %6848 = vmatpush3.bf16.msra.mxu1 %v7303_v28  ;;  %v7315_v6 = vld [vmem:[#allocation13 + $0x38] sm:$0xff]  }
 0x42e   :  { %6888 = vmatpush3.bf16.msra.mxu0 %v7304_v43  ;;  %6849 = vmatprep.subr.bf16.mxu1 %v7305_v62 }
 0x42f   :  { %6889 = vmatprep.subr.bf16.mxu0 %v7306_v25 }
 0x431   :  { %6850 = vmatpush3.bf16.msra.mxu1 %v7307_v48 }
 0x432   :  { %6890 = vmatpush3.bf16.msra.mxu0 %v7308_v49  ;;  %6851 = vmatprep.subr.bf16.mxu1 %v7309_v26 }
 0x433   :  { %4875 = vmatmul.mubr.bf16.gmra.mrb[60].mxu1 %v8278_v63  ;;  %6891 = vmatprep.subr.bf16.mxu0 %v7310_v34 }
 0x434   :  { %5167 = vmatmul.mubr.bf16.gmra.mrb[68].mxu0 %v8278_v63  ;;  %5824 = vmatprep.mubr.bf16.mxu1 %v8436_v19  ;;  %v7323_v63 = vld [vmem:[#allocation13 + $0x1c8] sm:$0xff]  }
 0x435   :  { %6852 = vmatpush3.bf16.msra.mxu1 %v7311_v53  ;;  %5889 = vmatprep.mubr.bf16.mxu0 %v8443_v51  ;;  %v7322_v19 = vld [vmem:[#allocation13 + $0x108] sm:$0xff]  }
 0x436   :  { %6892 = vmatpush3.bf16.msra.mxu0 %v7312_v24  ;;  %6853 = vmatprep.subr.bf16.mxu1 %v7313_v39  ;;  %v7324_v51 = vld [vmem:[#allocation13 + $0x188] sm:$0xff]  }
 0x437   :  { %6893 = vmatprep.subr.bf16.mxu0 %v7314_v59 }
 0x439   :  { %6854 = vmatpush3.bf16.msra.mxu1 %v7315_v6 }
 0x43a   :  { %6894 = vmatpush3.bf16.msra.mxu0 %v7316_v14  ;;  %6919 = vmatprep.subr.bf16.mxu1 %v7317_v58 }
 0x43b   :  { %6959 = vmatprep.subr.bf16.mxu0 %v7319_v30 }
 0x43c   :  { %5825 = vmatmul.mubr.bf16.vlgmr.msra.gmra.mrb[64].mxu1 %v8430_v40  ;;  %v7328_v40 = vld [vmem:[#allocation13 + $0x190] sm:$0xff]  }
 0x43d   :  { %5890 = vmatmul.mubr.bf16.vlgmr.msra.gmra.mrb[72].mxu0 %v8434_v0  ;;  %5832 = vmatprep.mubr.bf16.mxu1 %v8469_v61  ;;  %v7331_v0 = vld [vmem:[#allocation13 + $0x1d8] sm:$0xff]  }
 0x43e   :  { %5897 = vmatprep.mubr.bf16.mxu0 %v8471_v9  ;;  %6920 = vmatpush3.bf16.msra.mxu1 %v7318_v42  ;;  %v7330_v61 = vld [vmem:[#allocation13 + $0x118] sm:$0xff]  }
 0x43f   :  { %6960 = vmatpush3.bf16.msra.mxu0 %v7320_v45  ;;  %6921 = vmatprep.subr.bf16.mxu1 %v7321_v55  ;;  %v7332_v9 = vld [vmem:[#allocation13 + $0x198] sm:$0xff]  }
 0x440   :  { %6961 = vmatprep.subr.bf16.mxu0 %v7323_v63 }
 0x442   :  { %6922 = vmatpush3.bf16.msra.mxu1 %v7322_v19 }
 0x443   :  { %6962 = vmatpush3.bf16.msra.mxu0 %v7324_v51  ;;  %6923 = vmatprep.subr.bf16.mxu1 %v7325_v56 }
 0x444   :  { %5833 = vmatmul.mubr.bf16.gmra.mrb[68].mxu1 %v8464_v38  ;;  %6963 = vmatprep.subr.bf16.mxu0 %v7327_v57  ;;  %v7336_v38 = vld [vmem:[#allocation13 + $0x1a0] sm:$0xff]  }
 0x445   :  { %5898 = vmatmul.mubr.bf16.gmra.mrb[76].mxu0 %v8467_v37  ;;  %5840 = vmatprep.mubr.bf16.mxu1 %v8489_v36  ;;  %v7339_v37 = vld [vmem:[#allocation13 + $0x1e8] sm:$0xff]  }
 0x446   :  { %5905 = vmatprep.mubr.bf16.mxu0 %v8491_v35  ;;  %6924 = vmatpush3.bf16.msra.mxu1 %v7326_v50  ;;  %v7338_v36 = vld [vmem:[#allocation13 + $0x128] sm:$0xff]  }
 0x447   :  { %6964 = vmatpush3.bf16.msra.mxu0 %v7328_v40  ;;  %6925 = vmatprep.subr.bf16.mxu1 %v7329_v22  ;;  %v7340_v35 = vld [vmem:[#allocation13 + $0x1a8] sm:$0xff]  }
 0x448   :  { %6965 = vmatprep.subr.bf16.mxu0 %v7331_v0 }
 0x44a   :  { %6926 = vmatpush3.bf16.msra.mxu1 %v7330_v61 }
 0x44b   :  { %6966 = vmatpush3.bf16.msra.mxu0 %v7332_v9  ;;  %6927 = vmatprep.subr.bf16.mxu1 %v7333_v17 }
 0x44c   :  { %5841 = vmatmul.mubr.bf16.gmra.mrb[72].mxu1 %v8484_v10  ;;  %6967 = vmatprep.subr.bf16.mxu0 %v7335_v2  ;;  %v7341_v10 = vld [vmem:[#allocation13 + $0x170] sm:$0xff]  }
 0x44d   :  { %5906 = vmatmul.mubr.bf16.gmra.mrb[80].mxu0 %v8487_v15  ;;  %5848 = vmatprep.mubr.bf16.mxu1 %v8506_v33  ;;  %v7344_v15 = vld [vmem:[#allocation13 + $0x1b0] sm:$0xff]   ;;  %v7345_v33 = vld [vmem:[#allocation13 + $0x178] sm:$0xff]  }
 0x44e   :  { %5913 = vmatprep.mubr.bf16.mxu0 %v8508_v47  ;;  %6928 = vmatpush3.bf16.msra.mxu1 %v7334_v52  ;;  %v7347_v47 = vld [vmem:[#allocation13 + $0x1f8] sm:$0xff]  }
 0x44f   :  { %6968 = vmatpush3.bf16.msra.mxu0 %v7336_v38  ;;  %6929 = vmatprep.subr.bf16.mxu1 %v7337_v12 }
 0x450   :  { %6969 = vmatprep.subr.bf16.mxu0 %v7339_v37 }
 0x452   :  { %6930 = vmatpush3.bf16.msra.mxu1 %v7338_v36 }
 0x453   :  { %6970 = vmatpush3.bf16.msra.mxu0 %v7340_v35  ;;  %6931 = vmatprep.subr.bf16.mxu1 %v7341_v10 }
 0x454   :  { %5849 = vmatmul.mubr.bf16.gmra.mrb[76].mxu1 %v8502_v23  ;;  %6971 = vmatprep.subr.bf16.mxu0 %v7343_v21  ;;  %v8693_v23 = vsub.s32 4, %v8688_v20 }
 0x455   :  { %5914 = vmatmul.mubr.bf16.gmra.mrb[84].mxu0 %v8504_v11 }
 0x456   :  { %6932 = vmatpush3.bf16.msra.mxu1 %v7342_v54  ;;  %v8543_v11 = vrot.slane %v8372_v4, %v8693_v23 }
 0x457   :  { %6972 = vmatpush3.bf16.msra.mxu0 %v7344_v15  ;;  %6933 = vmatprep.subr.bf16.mxu1 %v7345_v33 }
 0x458   :  { %6973 = vmatprep.subr.bf16.mxu0 %v7347_v47 }
 0x45a   :  { %6934 = vmatpush3.bf16.msra.mxu1 %v7346_v13 }
 0x45b   :  { %6974 = vmatpush3.bf16.msra.mxu0 %v7348_v7 }
 0x4ee   :  { %v4846_v60 = vpop.f32.mrb[48].mxu1 }
 0x4ef   :  { %v7043_v41 = vadd.f32 %v4846_v60, %v8543_v11  ;;  %v5138_v44 = vpop.f32.mrb[56].mxu0  ;;  %v4848_v29 = vpop.f32.mrb[49].mxu1 }
 0x4f0   :  { %v7059_v32 = vadd.f32 %v5138_v44, %v8548_v31  ;;  %v7044_v3 = vadd.f32 %v4848_v29, %v8553_v5  ;;  %v5140_v1 = vpop.f32.mrb[57].mxu0  ;;  %v4850_v18 = vpop.f32.mrb[50].mxu1 }
 0x4f1   :  { %v7060_v28 = vadd.f32 %v5140_v1, %v8558_v8  ;;  %v7045_v43 = vadd.f32 %v4850_v18, %v8543_v11  ;;  %v5142_v62 = vpop.f32.mrb[58].mxu0  ;;  %v4852_v20 = vpop.f32.mrb[51].mxu1  ;;  %v5181_v49 = vmax.f32 %v7043_v41, 0.0 }
 0x4f2   :  { %v7061_v4 = vadd.f32 %v5142_v62, %v8548_v31  ;;  %v7046_v25 = vadd.f32 %v4852_v20, %v8553_v5  ;;  %v5144_v48 = vpop.f32.mrb[59].mxu0  ;;  %v5183_v53 = vmax.f32 %v7059_v32, 0.0  ;;  %v5182_v24 = vmax.f32 %v7044_v3, 0.0 }
 0x4f3   :  { %v5189_v26 = vmax.f32 %v7045_v43, 0.0  ;;  %v7062_v34 = vadd.f32 %v5144_v48, %v8558_v8  ;;  %v5184_v6 = vmax.f32 %v7060_v28, 0.0 }
 0x4f4   :  { %v5191_v39 = vmax.f32 %v7061_v4, 0.0  ;;  %v5190_v59 = vmax.f32 %v7046_v25, 0.0 }
 0x4f5   :  { %v5245_v14 = vpack.c.bf16 %v5189_v26, %v5181_v49  ;;  %v5192_v58 = vmax.f32 %v7062_v34, 0.0 }
 0x4f6   :  { %v5247_v30 = vpack.c.bf16 %v5191_v39, %v5183_v53  ;;  %v5246_v42 = vpack.c.bf16 %v5190_v59, %v5182_v24  ;;  %v4856_v45 = vpop.f32.mrb[52].mxu1 }
 0x4f7   :  { %v5248_v55 = vpack.c.bf16 %v5192_v58, %v5184_v6  ;;  %v7047_v63 = vadd.f32 %v4856_v45, %v8543_v11  ;;  %v5148_v19 = vpop.f32.mrb[60].mxu0  ;;  %v4858_v51 = vpop.f32.mrb[53].mxu1 }
 0x4f8   :  { %v7063_v56 = vadd.f32 %v5148_v19, %v8548_v31  ;;  %v7048_v57 = vadd.f32 %v4858_v51, %v8553_v5  ;;  %v5150_v50 = vpop.f32.mrb[61].mxu0  ;;  %v4860_v40 = vpop.f32.mrb[54].mxu1  ;;  %5954 = vmatprep.mubr.bf16.mxu1 %v5246_v42 }
 0x4f9   :  { %v7064_v22 = vadd.f32 %v5150_v50, %v8558_v8  ;;  %v7049_v0 = vadd.f32 %v4860_v40, %v8543_v11  ;;  %v5152_v61 = vpop.f32.mrb[62].mxu0  ;;  %6019 = vmatprep.mubr.bf16.mxu0 %v5248_v55  ;;  %v4862_v9 = vpop.f32.mrb[55].mxu1  ;;  %5955 = vmatmul.mubr.bf16.vlgmr.msra.gmra.mrb[80].mxu1 %v5245_v14  ;;  %v5197_v38 = vmax.f32 %v7047_v63, 0.0 }
 0x4fa   :  { %v7065_v17 = vadd.f32 %v5152_v61, %v8548_v31  ;;  %v7050_v2 = vadd.f32 %v4862_v9, %v8553_v5  ;;  %v5154_v52 = vpop.f32.mrb[63].mxu0  ;;  %6020 = vmatmul.mubr.bf16.vlgmr.msra.gmra.mrb[88].mxu0 %v5247_v30  ;;  %v5199_v36 = vmax.f32 %v7063_v56, 0.0  ;;  %v5198_v35 = vmax.f32 %v7048_v57, 0.0 }
 0x4fb   :  { %v5205_v12 = vmax.f32 %v7049_v0, 0.0  ;;  %v7066_v37 = vadd.f32 %v5154_v52, %v8558_v8  ;;  %v5200_v54 = vmax.f32 %v7064_v22, 0.0 }
 0x4fc   :  { %v5207_v10 = vmax.f32 %v7065_v17, 0.0  ;;  %v5206_v21 = vmax.f32 %v7050_v2, 0.0 }
 0x4fd   :  { %v5253_v15 = vpack.c.bf16 %v5205_v12, %v5197_v38  ;;  %v5208_v33 = vmax.f32 %v7066_v37, 0.0 }
 0x4fe   :  { %v5255_v47 = vpack.c.bf16 %v5207_v10, %v5199_v36  ;;  %v5254_v13 = vpack.c.bf16 %v5206_v21, %v5198_v35  ;;  %v4866_v7 = vpop.f32.mrb[56].mxu1 }
 0x4ff   :  { %v5256_v23 = vpack.c.bf16 %v5208_v33, %v5200_v54  ;;  %v7051_v27 = vadd.f32 %v4866_v7, %v8543_v11  ;;  %v5158_v16 = vpop.f32.mrb[64].mxu0  ;;  %v4868_v46 = vpop.f32.mrb[57].mxu1  ;;  %v8592_v33 = vld [vmem:[#allocation14] ss:$0 sm:$0xff] }
 0x500   :  { %v7067_v60 = vadd.f32 %v5158_v16, %v8548_v31  ;;  %v7052_v41 = vadd.f32 %v4868_v46, %v8553_v5  ;;  %v5160_v44 = vpop.f32.mrb[65].mxu0  ;;  %v4870_v29 = vpop.f32.mrb[58].mxu1  ;;  %5962 = vmatprep.mubr.bf16.mxu1 %v5254_v13 }
 0x501   :  { %v7068_v32 = vadd.f32 %v5160_v44, %v8558_v8  ;;  %v7053_v3 = vadd.f32 %v4870_v29, %v8543_v11  ;;  %v5162_v1 = vpop.f32.mrb[66].mxu0  ;;  %6027 = vmatprep.mubr.bf16.mxu0 %v5256_v23  ;;  %v4872_v18 = vpop.f32.mrb[59].mxu1  ;;  %5963 = vmatmul.mubr.bf16.gmra.mrb[84].mxu1 %v5253_v15  ;;  %v5213_v20 = vmax.f32 %v7051_v27, 0.0 }
 0x502   :  { %v7069_v28 = vadd.f32 %v5162_v1, %v8548_v31  ;;  %v7054_v43 = vadd.f32 %v4872_v18, %v8553_v5  ;;  %v5164_v62 = vpop.f32.mrb[67].mxu0  ;;  %6028 = vmatmul.mubr.bf16.gmra.mrb[92].mxu0 %v5255_v47  ;;  %v5215_v48 = vmax.f32 %v7067_v60, 0.0  ;;  %v5214_v49 = vmax.f32 %v7052_v41, 0.0 }
 0x503   :  { %v5221_v4 = vmax.f32 %v7053_v3, 0.0  ;;  %v7070_v25 = vadd.f32 %v5164_v62, %v8558_v8  ;;  %v5216_v53 = vmax.f32 %v7068_v32, 0.0 }
 0x504   :  { %v5223_v26 = vmax.f32 %v7069_v28, 0.0  ;;  %v5222_v34 = vmax.f32 %v7054_v43, 0.0 }
 0x505   :  { %v5261_v24 = vpack.c.bf16 %v5221_v4, %v5213_v20  ;;  %v5224_v39 = vmax.f32 %v7070_v25, 0.0 }
 0x506   :  { %v5263_v59 = vpack.c.bf16 %v5223_v26, %v5215_v48  ;;  %v5262_v6 = vpack.c.bf16 %v5222_v34, %v5214_v49  ;;  %v4876_v14 = vpop.f32.mrb[60].mxu1 }
 0x507   :  { %v5264_v58 = vpack.c.bf16 %v5224_v39, %v5216_v53  ;;  %v7055_v30 = vadd.f32 %v4876_v14, %v8543_v11  ;;  %v5168_v42 = vpop.f32.mrb[68].mxu0  ;;  %v4878_v45 = vpop.f32.mrb[61].mxu1 }
 0x508   :  { %v7071_v55 = vadd.f32 %v5168_v42, %v8548_v31  ;;  %v7056_v63 = vadd.f32 %v4878_v45, %v8553_v5  ;;  %v5170_v19 = vpop.f32.mrb[69].mxu0  ;;  %v4880_v51 = vpop.f32.mrb[62].mxu1  ;;  %5970 = vmatprep.mubr.bf16.mxu1 %v5262_v6 }
 0x509   :  { %v7072_v56 = vadd.f32 %v5170_v19, %v8558_v8  ;;  %v7057_v57 = vadd.f32 %v4880_v51, %v8543_v11  ;;  %v5172_v50 = vpop.f32.mrb[70].mxu0  ;;  %6035 = vmatprep.mubr.bf16.mxu0 %v5264_v58  ;;  %v4882_v40 = vpop.f32.mrb[63].mxu1  ;;  %5971 = vmatmul.mubr.bf16.gmra.mrb[88].mxu1 %v5261_v24  ;;  %v5229_v9 = vmax.f32 %v7055_v30, 0.0 }
 0x50a   :  { %v7073_v22 = vadd.f32 %v5172_v50, %v8548_v31  ;;  %v7058_v0 = vadd.f32 %v4882_v40, %v8553_v5  ;;  %v5174_v61 = vpop.f32.mrb[71].mxu0  ;;  %6036 = vmatmul.mubr.bf16.gmra.mrb[96].mxu0 %v5263_v59  ;;  %v5231_v52 = vmax.f32 %v7071_v55, 0.0  ;;  %v5230_v38 = vmax.f32 %v7056_v63, 0.0 }
 0x50b   :  { %v5237_v17 = vmax.f32 %v7057_v57, 0.0  ;;  %v7074_v2 = vadd.f32 %v5174_v61, %v8558_v8  ;;  %v5232_v36 = vmax.f32 %v7072_v56, 0.0 }
 0x50c   :  { %v5239_v12 = vmax.f32 %v7073_v22, 0.0  ;;  %v5238_v37 = vmax.f32 %v7058_v0, 0.0 }
 0x50d   :  { %v5269_v11 = vpack.c.bf16 %v5237_v17, %v5229_v9  ;;  %v5240_v35 = vmax.f32 %v7074_v2, 0.0 }
 0x50e   :  { %v5271_v10 = vpack.c.bf16 %v5239_v12, %v5231_v52  ;;  %v5270_v21 = vpack.c.bf16 %v5238_v37, %v5230_v38 }
 0x50f   :  { %v5272_v54 = vpack.c.bf16 %v5240_v35, %v5232_v36  ;;  %v6855_v15 = vpop.f32.mrb[64].mxu1 }
 0x510   :  { %v6895_v31 = vpop.f32.mrb[72].mxu0  ;;  %v6856_v5 = vpop.f32.mrb[65].mxu1  ;;  %5978 = vmatprep.mubr.bf16.mxu1 %v5270_v21 }
 0x511   :  { %v6857_v47 = vadd.f32 %v6856_v5, %v6855_v15  ;;  %v6896_v13 = vpop.f32.mrb[73].mxu0  ;;  %v6858_v7 = vpop.f32.mrb[66].mxu1  ;;  %6043 = vmatprep.mubr.bf16.mxu0 %v5272_v54  ;;  %5979 = vmatmul.mubr.bf16.gmra.mrb[92].mxu1 %v5269_v11 }
 0x512   :  { %v6897_v8 = vadd.f32 %v6896_v13, %v6895_v31  ;;  %v6898_v23 = vpop.f32.mrb[74].mxu0  ;;  %v6859_v27 = vpop.f32.mrb[67].mxu1  ;;  %6044 = vmatmul.mubr.bf16.gmra.mrb[100].mxu0 %v5271_v10 }
 0x513   :  { %v5827_v16 = vadd.f32 %v6857_v47, %v8592_v33  ;;  %v6860_v46 = vadd.f32 %v6859_v27, %v6858_v7  ;;  %v6899_v60 = vpop.f32.mrb[75].mxu0 }
 0x514   :  { %v6900_v41 = vadd.f32 %v6899_v60, %v6898_v23 }
 0x515   :  { %v5892_v44 = vadd.f32 %v6897_v8, %v5827_v16  ;;  %v5830_v29 = vadd.f32 %v6860_v46, %v8592_v33 }
 0x517   :  { %v8596_v32 = vadd.f32 %v6900_v41, %v5830_v29  ;;  %v6861_v3 = vpop.f32.mrb[68].mxu1 }
 0x518   :  { %v6901_v1 = vpop.f32.mrb[76].mxu0  ;;  %v6862_v18 = vpop.f32.mrb[69].mxu1 }
 0x519   :  { %v6863_v28 = vadd.f32 %v6862_v18, %v6861_v3  ;;  %v6902_v43 = vpop.f32.mrb[77].mxu0  ;;  %v6864_v62 = vpop.f32.mrb[70].mxu1 }
 0x51a   :  { %v6903_v20 = vadd.f32 %v6902_v43, %v6901_v1  ;;  %v6904_v4 = vpop.f32.mrb[78].mxu0  ;;  %v6865_v25 = vpop.f32.mrb[71].mxu1 }
 0x51b   :  { %v5835_v48 = vadd.f32 %v6863_v28, %v8592_v33  ;;  %v6866_v49 = vadd.f32 %v6865_v25, %v6864_v62  ;;  %v6905_v26 = vpop.f32.mrb[79].mxu0 }
 0x51c   :  { %v6906_v34 = vadd.f32 %v6905_v26, %v6904_v4 }
 0x51d   :  { %v8599_v53 = vadd.f32 %v6903_v20, %v5835_v48  ;;  %v5838_v24 = vadd.f32 %v6866_v49, %v8592_v33 }
 0x51f   :  { %v8602_v39 = vadd.f32 %v6906_v34, %v5838_v24  ;;  %v6867_v59 = vpop.f32.mrb[72].mxu1 }
 0x520   :  { %v6907_v6 = vpop.f32.mrb[80].mxu0  ;;  %v6868_v14 = vpop.f32.mrb[73].mxu1 }
 0x521   :  { %v6869_v58 = vadd.f32 %v6868_v14, %v6867_v59  ;;  %v6908_v30 = vpop.f32.mrb[81].mxu0  ;;  %v6870_v42 = vpop.f32.mrb[74].mxu1 }
 0x522   :  { %v6909_v45 = vadd.f32 %v6908_v30, %v6907_v6  ;;  %v6910_v55 = vpop.f32.mrb[82].mxu0  ;;  %v6871_v63 = vpop.f32.mrb[75].mxu1 }
 0x523   :  { %v5843_v19 = vadd.f32 %v6869_v58, %v8592_v33  ;;  %v6872_v51 = vadd.f32 %v6871_v63, %v6870_v42  ;;  %v6911_v56 = vpop.f32.mrb[83].mxu0 }
 0x524   :  { %v6912_v57 = vadd.f32 %v6911_v56, %v6910_v55 }
 0x525   :  { %v8605_v50 = vadd.f32 %v6909_v45, %v5843_v19  ;;  %v5846_v40 = vadd.f32 %v6872_v51, %v8592_v33 }
 0x527   :  { %v8608_v22 = vadd.f32 %v6912_v57, %v5846_v40  ;;  %v6873_v0 = vpop.f32.mrb[76].mxu1 }
 0x528   :  { %v6913_v61 = vpop.f32.mrb[84].mxu0  ;;  %v6874_v9 = vpop.f32.mrb[77].mxu1 }
 0x529   :  { %v6875_v17 = vadd.f32 %v6874_v9, %v6873_v0  ;;  %v6914_v2 = vpop.f32.mrb[85].mxu0  ;;  %v6876_v52 = vpop.f32.mrb[78].mxu1 }
 0x52a   :  { %v6915_v38 = vadd.f32 %v6914_v2, %v6913_v61  ;;  %v6916_v12 = vpop.f32.mrb[86].mxu0  ;;  %v6877_v37 = vpop.f32.mrb[79].mxu1 }
 0x52b   :  { %v5851_v36 = vadd.f32 %v6875_v17, %v8592_v33  ;;  %v6878_v11 = vadd.f32 %v6877_v37, %v6876_v52  ;;  %v6917_v35 = vpop.f32.mrb[87].mxu0 }
 0x52c   :  { %v6918_v10 = vadd.f32 %v6917_v35, %v6916_v12 }
 0x52d   :  { %v8611_v21 = vadd.f32 %v6915_v38, %v5851_v36  ;;  %v5854_v54 = vadd.f32 %v6878_v11, %v8592_v33 }
 0x52f   :  { %v8614_v15 = vadd.f32 %v6918_v10, %v5854_v54 }
 0x5cc   :  { %v6935_v31 = vpop.f32.mrb[80].mxu1 }
 0x5cd   :  { %v6975_v5 = vpop.f32.mrb[88].mxu0  ;;  %v6936_v47 = vpop.f32.mrb[81].mxu1 }
 0x5ce   :  { %v6937_v13 = vadd.f32 %v6936_v47, %v6935_v31  ;;  %v6976_v7 = vpop.f32.mrb[89].mxu0  ;;  %v6938_v8 = vpop.f32.mrb[82].mxu1 }
 0x5cf   :  { %v6977_v23 = vadd.f32 %v6976_v7, %v6975_v5  ;;  %v6978_v27 = vpop.f32.mrb[90].mxu0  ;;  %v6939_v16 = vpop.f32.mrb[83].mxu1 }
 0x5d0   :  { %v5957_v46 = vadd.f32 %v6937_v13, %v5892_v44  ;;  %v6940_v60 = vadd.f32 %v6939_v16, %v6938_v8  ;;  %v6979_v41 = vpop.f32.mrb[91].mxu0 }
 0x5d1   :  { %v6980_v29 = vadd.f32 %v6979_v41, %v6978_v27 }
 0x5d2   :  { %v8616_v3 = vadd.f32 %v6977_v23, %v5957_v46  ;;  %v5960_v1 = vadd.f32 %v6940_v60, %v8596_v32 }
 0x5d4   :  { %v6060_v33 = vand.u32 2147483647, %v8616_v3  ;;  %v8620_v18 = vadd.f32 %v6980_v29, %v5960_v1  ;;  %v6941_v28 = vpop.f32.mrb[84].mxu1 }
 0x5d5   :  { %v6981_v43 = vpop.f32.mrb[92].mxu0  ;;  %v6942_v62 = vpop.f32.mrb[85].mxu1 }
 0x5d6   :  { %v6068_v20 = vsub.f32 0.0, %v6060_v33  ;;  %v6061_v4 = vand.u32 2147483647, %v8620_v18  ;;  %v6943_v25 = vadd.f32 %v6942_v62, %v6941_v28  ;;  %v6982_v48 = vpop.f32.mrb[93].mxu0  ;;  %v6944_v44 = vpop.f32.mrb[86].mxu1 }
 0x5d7   :  { %v6983_v49 = vadd.f32 %v6982_v48, %v6981_v43  ;;  %v6984_v26 = vpop.f32.mrb[94].mxu0  ;;  %v6945_v34 = vpop.f32.mrb[87].mxu1 }
 0x5d8   :  { %v6076_v24 = vmul.f32 1.442695, %v6068_v20  ;;  %v6069_v59 = vsub.f32 0.0, %v6061_v4  ;;  %v5965_v32 = vadd.f32 %v6943_v25, %v8599_v53  ;;  %v6946_v6 = vadd.f32 %v6945_v34, %v6944_v44  ;;  %v6985_v14 = vpop.f32.mrb[95].mxu0 }
 0x5d9   :  { %v6986_v58 = vadd.f32 %v6985_v14, %v6984_v26 }
 0x5da   :  { %7349 = vpow2.f32 %v6076_v24  ;;  %v6078_v30 = vmul.f32 1.442695, %v6069_v59  ;;  %v8624_v42 = vadd.f32 %v6983_v49, %v5965_v32  ;;  %v5968_v45 = vadd.f32 %v6946_v6, %v8602_v39 }
 0x5dc   :  { %7351 = vpow2.f32 %v6078_v30  ;;  %v6062_v55 = vand.u32 2147483647, %v8624_v42  ;;  %v8628_v63 = vadd.f32 %v6986_v58, %v5968_v45  ;;  %v6947_v19 = vpop.f32.mrb[88].mxu1 }
 0x5dd   :  { %v6987_v51 = vpop.f32.mrb[96].mxu0  ;;  %v6948_v56 = vpop.f32.mrb[89].mxu1 }
 0x5de   :  { %v6070_v57 = vsub.f32 0.0, %v6062_v55  ;;  %v6063_v53 = vand.u32 2147483647, %v8628_v63  ;;  %v6949_v40 = vadd.f32 %v6948_v56, %v6947_v19  ;;  %v6988_v0 = vpop.f32.mrb[97].mxu0  ;;  %v6950_v61 = vpop.f32.mrb[90].mxu1 }
 0x5df   :  { %v6989_v9 = vadd.f32 %v6988_v0, %v6987_v51  ;;  %v6990_v17 = vpop.f32.mrb[98].mxu0  ;;  %v6951_v2 = vpop.f32.mrb[91].mxu1  ;;  %v6052_v51 = vmax.f32 %v8616_v3, 0.0 }
 0x5e0   :  { %v6080_v52 = vmul.f32 1.442695, %v6070_v57  ;;  %v6071_v38 = vsub.f32 0.0, %v6063_v53  ;;  %v5973_v39 = vadd.f32 %v6949_v40, %v8605_v50  ;;  %v6952_v12 = vadd.f32 %v6951_v2, %v6950_v61  ;;  %v6991_v37 = vpop.f32.mrb[99].mxu0 }
 0x5e1   :  { %v6992_v36 = vadd.f32 %v6991_v37, %v6990_v17 }
 0x5e2   :  { %7353 = vpow2.f32 %v6080_v52  ;;  %v6082_v11 = vmul.f32 1.442695, %v6071_v38  ;;  %v8632_v35 = vadd.f32 %v6989_v9, %v5973_v39  ;;  %v5976_v10 = vadd.f32 %v6952_v12, %v8608_v22 }
 0x5e3   :  { %v6053_v39 = vmax.f32 %v8620_v18, 0.0 }
 0x5e4   :  { %v7350_v54 = vpop.eup %7349  ;;  %7355 = vpow2.f32 %v6082_v11  ;;  %v6064_v31 = vand.u32 2147483647, %v8632_v35  ;;  %v8636_v5 = vadd.f32 %v6992_v36, %v5976_v10  ;;  %v6953_v47 = vpop.f32.mrb[92].mxu1 }
 0x5e5   :  { %v6092_v13 = vadd.f32 1.0, %v7350_v54  ;;  %v6993_v7 = vpop.f32.mrb[100].mxu0  ;;  %v6954_v8 = vpop.f32.mrb[93].mxu1  ;;  %v6095_v20 = vmul.f32 -0.5, %v7350_v54 }
 0x5e6   :  { %v7352_v50 = vpop.eup %7351  ;;  %v6072_v23 = vsub.f32 0.0, %v6064_v31  ;;  %v6065_v27 = vand.u32 2147483647, %v8636_v5  ;;  %v6955_v16 = vadd.f32 %v6954_v8, %v6953_v47  ;;  %v6994_v46 = vpop.f32.mrb[101].mxu0 }
 0x5e7   :  { %v6956_v60 = vpop.f32.mrb[94].mxu1  ;;  %7357 = vlog2.f32 %v6092_v13  ;;  %v6101_v41 = vadd.f32 1.0, %v7352_v50  ;;  %v6996_v22 = vpop.f32.mrb[102].mxu0  ;;  %v6995_v43 = vadd.f32 %v6994_v46, %v6993_v7  ;;  %v6104_v26 = vmul.f32 -0.5, %v7352_v50 }
 0x5e8   :  { %v6957_v29 = vpop.f32.mrb[95].mxu1  ;;  %v6084_v1 = vmul.f32 1.442695, %v6072_v23  ;;  %v6073_v33 = vsub.f32 0.0, %v6065_v27  ;;  %v5981_v28 = vadd.f32 %v6955_v16, %v8611_v21  ;;  %v6997_v62 = vpop.f32.mrb[103].mxu0  ;;  %v6096_v59 = vadd.f32 1.0, %v6095_v20 }
 0x5e9   :  { %7359 = vlog2.f32 %v6101_v41  ;;  %v6958_v48 = vadd.f32 %v6957_v29, %v6956_v60  ;;  %v6998_v44 = vadd.f32 %v6997_v62, %v6996_v22  ;;  %v6098_v21 = vand.u32 2147483647, %v7350_v54 }
 0x5ea   :  { %7361 = vpow2.f32 %v6084_v1  ;;  %v6086_v4 = vmul.f32 1.442695, %v6073_v33  ;;  %v8640_v25 = vadd.f32 %v6995_v43, %v5981_v28  ;;  %v6105_v58 = vadd.f32 1.0, %v6104_v26 }
 0x5eb   :  { %v5984_v6 = vadd.f32 %v6958_v48, %v8614_v15  ;;  %v6107_v19 = vand.u32 2147483647, %v7352_v50  ;;  %v6097_v57 = vmul.f32 %v7350_v54, %v6096_v59  ;;  %vm6099_vm2 = vcmp.lt.f32.partialorder %v6098_v21, 0.0004427343 }
 0x5ec   :  { %v7354_v49 = vpop.eup %7353  ;;  %7363 = vpow2.f32 %v6086_v4  ;;  %v6066_v32 = vand.u32 2147483647, %v8640_v25  ;;  %v6106_v2 = vmul.f32 %v7352_v50, %v6105_v58  ;;  %v6054_v16 = vmax.f32 %v8624_v42, 0.0 }
 0x5ed   :  { %v6110_v34 = vadd.f32 1.0, %v7354_v49  ;;  %v8644_v45 = vadd.f32 %v6998_v44, %v5984_v6  ;;  %v6113_v53 = vmul.f32 -0.5, %v7354_v49  ;;  %vm6108_vm3 = vcmp.lt.f32.partialorder %v6107_v19, 0.0004427343 }
 0x5ee   :  { %v7356_v24 = vpop.eup %7355  ;;  %v6074_v30 = vsub.f32 0.0, %v6066_v32  ;;  %v6116_v54 = vand.u32 2147483647, %v7354_v49  ;;  %v6055_v29 = vmax.f32 %v8628_v63, 0.0 }
 0x5ef   :  { %7365 = vlog2.f32 %v6110_v34  ;;  %v6119_v14 = vadd.f32 1.0, %v7356_v24  ;;  %v6067_v15 = vand.u32 2147483647, %v8644_v45  ;;  %v6122_v52 = vmul.f32 -0.5, %v7356_v24 }
 0x5f0   :  { %v6088_v0 = vmul.f32 1.442695, %v6074_v30  ;;  %v6114_v36 = vadd.f32 1.0, %v6113_v53  ;;  %v6125_v8 = vand.u32 2147483647, %v7356_v24  ;;  %v6056_v34 = vmax.f32 %v8632_v35, 0.0 }
 0x5f1   :  { %v7358_v55 = vpop.eup %7357  ;;  %7367 = vlog2.f32 %v6119_v14  ;;  %v6075_v11 = vsub.f32 0.0, %v6067_v15  ;;  %v6123_v31 = vadd.f32 1.0, %v6122_v52  ;;  %vm6117_vm4 = vcmp.lt.f32.partialorder %v6116_v54, 0.0004427343 }
 0x5f2   :  { %v6094_v56 = vmul.f32 0.6931472, %v7358_v55  ;;  %7369 = vpow2.f32 %v6088_v0  ;;  %v6115_v23 = vmul.f32 %v7354_v49, %v6114_v36  ;;  %vm6126_vm5 = vcmp.lt.f32.partialorder %v6125_v8, 0.0004427343 }
 0x5f3   :  { %v7360_v40 = vpop.eup %7359  ;;  %v6090_v13 = vmul.f32 1.442695, %v6075_v11  ;;  %v6124_v41 = vmul.f32 %v7356_v24, %v6123_v31  ;;  %v6057_v14 = vmax.f32 %v8636_v5, 0.0  ;;  %v6058_v0 = vmax.f32 %v8640_v25, 0.0 }
 0x5f4   :  { %v7362_v61 = vpop.eup %7361  ;;  %v6100_v9 = vsel %vm6099_vm2, %v6097_v57, %v6094_v56  ;;  %v6103_v17 = vmul.f32 0.6931472, %v7360_v40 }
 0x5f5   :  { %v6164_v38 = vadd.f32 %v6100_v9, %v6052_v51  ;;  %v6128_v12 = vadd.f32 1.0, %v7362_v61  ;;  %v6131_v18 = vmul.f32 -0.5, %v7362_v61  ;;  %v6134_v62 = vand.u32 2147483647, %v7362_v61 }
 0x5f6   :  { %v7364_v37 = vpop.eup %7363  ;;  %v6109_v3 = vsel %vm6108_vm3, %v6106_v2, %v6103_v17 }
 0x5f7   :  { %6172 = vst [vmem:[#allocation16] sm:$0xff] %v6164_v38  ;;  %v6165_v10 = vadd.f32 %v6109_v3, %v6053_v39  ;;  %7371 = vlog2.f32 %v6128_v12  ;;  %v6137_v47 = vadd.f32 1.0, %v7364_v37  ;;  %v6140_v1 = vmul.f32 -0.5, %v7364_v37 }
 0x5f8   :  { %v6132_v28 = vadd.f32 1.0, %v6131_v18  ;;  %v6143_v26 = vand.u32 2147483647, %v7364_v37  ;;  %vm6135_vm6 = vcmp.lt.f32.partialorder %v6134_v62, 0.0004427343  ;;  %v6059_v38 = vmax.f32 %v8644_v45, 0.0 }
 0x5f9   :  { %v7366_v7 = vpop.eup %7365  ;;  %6173 = vst [vmem:[#allocation16 + $0x8] sm:$0xff] %v6165_v10  ;;  %7373 = vlog2.f32 %v6137_v47  ;;  %v6141_v48 = vadd.f32 1.0, %v6140_v1 }
 0x5fa   :  { %v6112_v50 = vmul.f32 0.6931472, %v7366_v7  ;;  %7375 = vpow2.f32 %v6090_v13  ;;  %v6133_v49 = vmul.f32 %v7362_v61, %v6132_v28  ;;  %vm6144_vm7 = vcmp.lt.f32.partialorder %v6143_v26, 0.0004427343 }
 0x5fb   :  { %v7368_v27 = vpop.eup %7367  ;;  %v6142_v21 = vmul.f32 %v7364_v37, %v6141_v48 }
 0x5fc   :  { %v6118_v46 = vsel %vm6117_vm4, %v6115_v23, %v6112_v50  ;;  %v6121_v60 = vmul.f32 0.6931472, %v7368_v27  ;;  %v7370_v20 = vpop.eup %7369 }
 0x5fd   :  { %v6166_v22 = vadd.f32 %v6118_v46, %v6054_v16  ;;  %v6146_v42 = vadd.f32 1.0, %v7370_v20  ;;  %v6149_v58 = vmul.f32 -0.5, %v7370_v20  ;;  %v6152_v35 = vand.u32 2147483647, %v7370_v20 }
 0x5fe   :  { %v6127_v33 = vsel %vm6126_vm5, %v6124_v41, %v6121_v60 }
 0x5ff   :  { %6174 = vst [vmem:[#allocation16 + $0x10] sm:$0xff] %v6166_v22  ;;  %v6167_v43 = vadd.f32 %v6127_v33, %v6055_v29  ;;  %7377 = vlog2.f32 %v6146_v42  ;;  %v6150_v51 = vadd.f32 1.0, %v6149_v58  ;;  %vm6153_vm8 = vcmp.lt.f32.partialorder %v6152_v35, 0.0004427343 }
 0x601   :  { %v7372_v4 = vpop.eup %7371  ;;  %6175 = vst [vmem:[#allocation16 + $0x18] sm:$0xff] %v6167_v43  ;;  %v6151_v40 = vmul.f32 %v7370_v20, %v6150_v51 }
 0x602   :  { %v6130_v44 = vmul.f32 0.6931472, %v7372_v4 }
 0x603   :  { %v7374_v63 = vpop.eup %7373 }
 0x604   :  { %v6136_v24 = vsel %vm6135_vm6, %v6133_v49, %v6130_v44  ;;  %v7376_v59 = vpop.eup %7375  ;;  %v6139_v6 = vmul.f32 0.6931472, %v7374_v63 }
 0x605   :  { %v6168_v32 = vadd.f32 %v6136_v24, %v6056_v34  ;;  %v6155_v30 = vadd.f32 1.0, %v7376_v59  ;;  %v6158_v56 = vmul.f32 -0.5, %v7376_v59  ;;  %v6161_v5 = vand.u32 2147483647, %v7376_v59 }
 0x606   :  { %v6145_v55 = vsel %vm6144_vm7, %v6142_v21, %v6139_v6 }
 0x607   :  { %6176 = vst [vmem:[#allocation16 + $0x20] sm:$0xff] %v6168_v32  ;;  %v6169_v19 = vadd.f32 %v6145_v55, %v6057_v14  ;;  %7379 = vlog2.f32 %v6155_v30  ;;  %v6159_v15 = vadd.f32 1.0, %v6158_v56  ;;  %vm6162_vm9 = vcmp.lt.f32.partialorder %v6161_v5, 0.0004427343 }
 0x609   :  { %6177 = vst [vmem:[#allocation16 + $0x28] sm:$0xff] %v6169_v19  ;;  %v7378_v57 = vpop.eup %7377  ;;  %v6160_v52 = vmul.f32 %v7376_v59, %v6159_v15 }
 0x60a   :  { %v6148_v53 = vmul.f32 0.6931472, %v7378_v57 }
 0x60c   :  { %v6154_v61 = vsel %vm6153_vm8, %v6151_v40, %v6148_v53 }
 0x60d   :  { %v6170_v9 = vadd.f32 %v6154_v61, %v6058_v0 }
 0x60f   :  { %6178 = vst [vmem:[#allocation16 + $0x30] sm:$0xff] %v6170_v9 }
 0x611   :  { %v7380_v17 = vpop.eup %7379 }
 0x612   :  { %v6157_v2 = vmul.f32 0.6931472, %v7380_v17 }
 0x614   :  { %v6163_v39 = vsel %vm6162_vm9, %v6160_v52, %v6157_v2 }
 0x615   :  { %v6171_v12 = vadd.f32 %v6163_v39, %v6059_v38 }
 0x617   :  { %6179 = vst [vmem:[#allocation16 + $0x38] sm:$0xff] %v6171_v12 }
 0x618   :  { %7568 = shalt.err (!%p7565_p12)
}
 0x619   :  { %s7569_s30 = scalar_lea.hbm %s8676_s9, 1024 }
 0x61a   :  { %p7570_p13 = scmp.ne.s32.totalorder %s8676_s9, %s7569_s30  ;;  %p7573_p0 = scmp.lt.u32.totalorder %s7569_s30, %s8676_s9 }
 0x61c   :  { %p7575_p1 = pnand %p7573_p0, %p7570_p13 }
 0x61e   :  { %7578 = shalt.err (!%p7575_p1)
}
 0x61f   :  { %s7605_s15 = smov 128   ;;  %s7606_s7 = smov 8  }
 0x620   :  { %6191 = dma.vmem_to_hbm [thread:$0]  %s6186_s16, 1024, %s8676_s9, [#allocation4], %s7605_s15, %s7605_s15, %s7606_s7  }
 0x621   :  { %7589 = dma.done.wait [#allocation4], 1024  }
 0x622   :  { %7590 = vsyncadd [#allocation4], 4294966272 }
 0x623   :  { %6195 = vsyncpa [#allocation3], 1 }
 0x624   :  { %6196 = vsyncpa [#allocation6], 1 }
 0x625   :  { %6197 = vsyncpa [#allocation9], 1 }
 0x626   :  { %6198 = vsyncpa [#allocation12], 1 }
 0x627   :  { %6199 = vsyncpa [#allocation15], 1 }
 0x628   :  { %6200 = vsyncpa [#allocation4], 1 }

</bundles_post_ra>
